<compile_context>
chip_gen: v7x
topology: tpu7x:2x2x1
jax: 0.10.0
libtpu: 0.0.40
codegen_flags: <defaults>
</compile_context>

<pallas_src>
import functools

import jax
import jax.numpy as jnp
from jax.experimental import pallas as pl
from jax.experimental.pallas import tpu as pltpu


# ----------------------------------------------------------------------------
# Pallas kernel: one grid step = Bw windows (M = Bw*N token rows)
# ----------------------------------------------------------------------------
def _window_attn_kernel(x_ref, wqkv_ref, bqkv_ref, wproj_ref, bproj_ref,
                        bias_ref, o_ref, *, num_heads, head_dim_p,
                        block_windows, tokens, mask_windows):
    """
    x_ref:     (M, C)          bf16  token features of Bw windows (M = Bw*N)
    wqkv_ref:  (C, 3*Cp)       bf16  qkv weight (q-scale folded, head_dim padded)
    bqkv_ref:  (1, 3*Cp)       f32   qkv bias   (q-scale folded, padded)
    wproj_ref: (H, Dp, C)      bf16  output projection per head (padded rows = 0)
    bproj_ref: (1, C)          f32
    bias_ref:  (nWb, H, N, N)  f32   fused rel-pos bias + shift mask; Bw % nWb == 0
    o_ref:     (M, C)          x.dtype
    """
    H, Dp, Bw, N, nWb = num_heads, head_dim_p, block_windows, tokens, mask_windows
    Cp = H * Dp
    M = Bw * N
    R = Bw // nWb                       # mask-cycle repeats inside this block
    C = o_ref.shape[-1]

    # One full-height QKV projection for all Bw windows (MXU, M rows).
    qkv = jnp.dot(x_ref[...], wqkv_ref[...],
                  preferred_element_type=jnp.float32) + bqkv_ref[...]      # (M, 3Cp) f32
    # Cast once: halves the largest live intermediate; all head slices are bf16.
    qkv = qkv.astype(jnp.bfloat16).reshape(Bw, N, 3 * Cp)

    y = jnp.zeros((M, C), jnp.float32)          # output-projection accumulator

    for h in range(H):                          # static, small (H heads)
        qh = qkv[:, :, h * Dp:(h + 1) * Dp]                                # (Bw, N, Dp)
        kh = qkv[:, :, Cp + h * Dp:Cp + (h + 1) * Dp]
        vh = qkv[:, :, 2 * Cp + h * Dp:2 * Cp + (h + 1) * Dp]

        # Scores for all Bw windows of this head at once.
        s = jnp.einsum('bnd,bmd->bnm', qh, kh,
                       preferred_element_type=jnp.float32)                 # (Bw, N, N) f32
        # Fused bias+mask: block reuses the nWb-window mask cycle R times
        # (leading-dim reshape is free; broadcast add, no replication in VMEM).
        s = (s.reshape(R, nWb, N, N) + bias_ref[:, h][None]).reshape(Bw, N, N)

        # Softmax numerator only; normalize after the PV matmul (N/D fewer muls).
        s = s - jnp.max(s, axis=-1, keepdims=True)
        p = jnp.exp(s)                                                     # f32
        l = jnp.sum(p, axis=-1, keepdims=True)                             # (Bw, N, 1)

        oh = jnp.einsum('bnm,bmd->bnd', p.astype(jnp.bfloat16), vh,
                        preferred_element_type=jnp.float32)                # (Bw, N, Dp)
        oh = oh * pl.reciprocal(l, approx=True)                            # EUP slot

        # Per-head slice of the output projection, accumulated into y (no concat).
        y = y + jnp.dot(oh.reshape(M, Dp).astype(jnp.bfloat16), wproj_ref[h],
                        preferred_element_type=jnp.float32)                # (M, C)

    o_ref[...] = (y + bproj_ref[...]).astype(o_ref.dtype)


# ----------------------------------------------------------------------------
# Wrapper
# ----------------------------------------------------------------------------
def window_attention(x, w_qkv, b_qkv, w_proj, b_proj, rel_bias, mask=None):
    """x: (B_, N, C); w_qkv: (C, 3C); b_qkv: (3C,); w_proj: (C, C); b_proj: (C,);
    rel_bias: (H, N, N); mask: (nW, N, N) of 0/-inf-style values or None.
    Assumes the windows in x are ordered with the nW mask cycle innermost
    (as produced by window_partition) and B_ % nW == 0."""
    B_, N, C = x.shape
    H = rel_bias.shape[0]
    assert C % H == 0
    D = C // H
    Dp = ((D + 7) // 8) * 8                    # pad head_dim -> aligned lane slices
    Cp = H * Dp
    scale = D ** (-0.5)

    # ---- weight packing: fold q-scale, head-major columns, head_dim padded ----
    def pack_w(w_part, s=1.0):                 # (C, C) -> (C, H*Dp)
        w = (w_part * s).reshape(C, H, D)
        if Dp != D:
            w = jnp.pad(w, ((0, 0), (0, 0), (0, Dp - D)))
        return w.reshape(C, Cp)

    def pack_b(b_part, s=1.0):                 # (C,) -> (H*Dp,)
        b = (b_part * s).reshape(H, D)
        if Dp != D:
            b = jnp.pad(b, ((0, 0), (0, Dp - D)))
        return b.reshape(Cp)

    wqkv_p = jnp.concatenate([pack_w(w_qkv[:, :C], scale),
                              pack_w(w_qkv[:, C:2 * C]),
                              pack_w(w_qkv[:, 2 * C:])], axis=1)            # (C, 3Cp)
    bqkv_p = jnp.concatenate([pack_b(b_qkv[:C], scale),
                              pack_b(b_qkv[C:2 * C]),
                              pack_b(b_qkv[2 * C:])]).reshape(1, 3 * Cp)

    wproj_p = w_proj.reshape(H, D, C)
    if Dp != D:
        wproj_p = jnp.pad(wproj_p, ((0, 0), (0, Dp - D), (0, 0)))           # zero rows

    # ---- fused rel-pos bias + shift mask, kept at (nW, H, N, N): no replication ----
    if mask is None:
        nW = 1
        bias_pm = rel_bias[None].astype(jnp.float32)                        # (1, H, N, N)
    else:
        nW = mask.shape[0]
        assert B_ % nW == 0, "B_ must be a multiple of the number of mask windows"
        bias_pm = (rel_bias[None] + mask[:, None]).astype(jnp.float32)      # (nW, H, N, N)

    # ---- block-size selection: decoupled from nW; target ~256 MXU rows, <= 512 ----
    target_rows, min_rows, max_rows = 256, 128, 512
    cands = [c for c in range(1, B_ + 1)
             if B_ % c == 0 and (c % nW == 0 or nW % c == 0)]

    def _score(c):
        rows, blocks = c * N, B_ // c
        pen = 0
        if rows < min_rows:
            pen += (min_rows - rows)
        if rows > max_rows:
            pen += (rows - max_rows)
        if blocks < 2:
            pen += 48                            # keep v7x megacore fed when possible
        return (pen, abs(rows - target_rows))

    Bw = min(cands, key=_score)
    M = Bw * N
    n_blocks = B_ // Bw

    # Bias block seen by the kernel: nWb windows of the mask cycle, nWb | Bw.
    if Bw % nW == 0:
        nWb = nW
        bias_index = lambda b: (0, 0, 0, 0)      # resident; never re-fetched
    else:                                        # nW % Bw == 0
        nWb = Bw
        n_cycle = nW // Bw
        bias_index = lambda b: (b % n_cycle, 0, 0, 0)

    # bf16 MXU operands; biases (and all softmax math in-kernel) stay f32.
    x2d = x.reshape(B_ * N, C).astype(jnp.bfloat16)
    wqkv_b = wqkv_p.astype(jnp.bfloat16)
    wproj_b = wproj_p.astype(jnp.bfloat16)
    bqkv_f = bqkv_p.astype(jnp.float32)
    bproj_f = b_proj.reshape(1, C).astype(jnp.float32)

    # Explicit VMEM budget: double-buffered blocks + f32 intermediates, with headroom.
    out_isz = jnp.dtype(x.dtype).itemsize
    est = (2 * M * C * 2 + 2 * M * C * out_isz
           + 2 * (C * 3 * Cp * 2 + 3 * Cp * 4 + H * Dp * C * 2 + C * 4)
           + 2 * nWb * H * N * N * 4
           + M * 3 * Cp * 6 + 3 * Bw * N * N * 4 + M * C * 4 + M * Dp * 4)
    vmem_limit = int(min(56 * 2 ** 20, max(32 * 2 ** 20, 2 * est)))

    kernel = functools.partial(_window_attn_kernel, num_heads=H, head_dim_p=Dp,
                               block_windows=Bw, tokens=N, mask_windows=nWb)

    out2d = pl.pallas_call(
        kernel,
        out_shape=jax.ShapeDtypeStruct((B_ * N, C), x.dtype),
        grid_spec=pltpu.PrefetchScalarGridSpec(
            num_scalar_prefetch=0,
            grid=(n_blocks,),
            in_specs=[
                pl.BlockSpec((M, C), lambda b: (b, 0)),               # Bw windows of tokens
                pl.BlockSpec((C, 3 * Cp), lambda b: (0, 0)),          # qkv weight
                pl.BlockSpec((1, 3 * Cp), lambda b: (0, 0)),          # qkv bias
                pl.BlockSpec((H, Dp, C), lambda b: (0, 0, 0)),        # proj weight per head
                pl.BlockSpec((1, C), lambda b: (0, 0)),               # proj bias
                pl.BlockSpec((nWb, H, N, N), bias_index),             # fused bias + mask
            ],
            out_specs=pl.BlockSpec((M, C), lambda b: (b, 0)),
        ),
        compiler_params=pltpu.CompilerParams(
            dimension_semantics=("parallel",),    # independent window blocks
            vmem_limit_bytes=vmem_limit),
    )(x2d, wqkv_b, bqkv_f, wproj_b, bproj_f, bias_pm)

    # Free reshape outside the kernel back to the module's (B_, N, C) layout.
    return out2d.reshape(B_, N, C)


# ----------------------------------------------------------------------------
# Relative position index / bias table gather (glue, plain JAX)
# ----------------------------------------------------------------------------
def relative_position_bias(table, window_size, num_heads):
    Wh, Ww = window_size
    N = Wh * Ww
    coords = jnp.stack(jnp.meshgrid(jnp.arange(Wh), jnp.arange(Ww),
                                    indexing="ij"))                      # (2, Wh, Ww)
    coords_flat = coords.reshape(2, -1)                                  # (2, N)
    rel = coords_flat[:, :, None] - coords_flat[:, None, :]              # (2, N, N)
    rel = rel.transpose(1, 2, 0)                                         # (N, N, 2)
    rel0 = (rel[..., 0] + Wh - 1) * (2 * Ww - 1)
    rel1 = rel[..., 1] + Ww - 1
    idx = (rel0 + rel1).reshape(-1)                                      # (N*N,)
    bias = table[idx].reshape(N, N, num_heads).transpose(2, 0, 1)        # (H, N, N)
    return bias.astype(jnp.float32)


# ----------------------------------------------------------------------------
# Pure-JAX f32 reference (mirrors the PyTorch forward)
# ----------------------------------------------------------------------------
def reference_forward(x, w_qkv, b_qkv, w_proj, b_proj, rel_bias, mask, num_heads):
    B_, N, C = x.shape
    D = C // num_heads
    scale = D ** (-0.5)
    qkv = x @ w_qkv + b_qkv
    qkv = qkv.reshape(B_, N, 3, num_heads, D).transpose(2, 0, 3, 1, 4)
    q, k, v = qkv[0], qkv[1], qkv[2]
    q = q * scale
    attn = q @ jnp.swapaxes(k, -2, -1)                                   # (B_, H, N, N)
    attn = attn + rel_bias[None]
    if mask is not None:
        nW = mask.shape[0]
        attn = attn.reshape(B_ // nW, nW, num_heads, N, N) + mask[None, :, None]
        attn = attn.reshape(-1, num_heads, N, N)
    attn = jax.nn.softmax(attn, axis=-1)
    out = (attn @ v).transpose(0, 2, 1, 3).reshape(B_, N, C)
    return out @ w_proj + b_proj


if __name__ == "__main__":
    # Small, module-consistent shapes
    dim = 32
    window_size = (4, 4)
    num_heads = 4
    Wh, Ww = window_size
    N = Wh * Ww                 # 16 tokens per window
    B = 2                       # batch
    nW = 4                      # windows per image
    B_ = B * nW                 # 8 windows total

    key = jax.random.PRNGKey(0)
    k1, k2, k3, k4, k5, k6, k7 = jax.random.split(key, 7)

    w_qkv = jax.random.normal(k1, (dim, 3 * dim), jnp.float32) * 0.05
    b_qkv = jax.random.normal(k2, (3 * dim,), jnp.float32) * 0.02
    w_proj = jax.random.normal(k3, (dim, dim), jnp.float32) * 0.05
    b_proj = jax.random.normal(k4, (dim,), jnp.float32) * 0.02
    rpb_table = jax.random.normal(
        k5, ((2 * Wh - 1) * (2 * Ww - 1), num_heads), jnp.float32) * 0.02

    x = jax.random.normal(k6, (B_, N, dim), jnp.float32)

    # Synthetic shifted-window style mask: 0 or -100 per (window, token, token)
    mask_bits = jax.random.bernoulli(k7, 0.15, (nW, N, N))
    mask = jnp.where(mask_bits, -100.0, 0.0).astype(jnp.float32)

    rel_bias = relative_position_bias(rpb_table, window_size, num_heads)

    out = window_attention(x, w_qkv, b_qkv, w_proj, b_proj, rel_bias, mask)
    out = jax.block_until_ready(out)

    ref = reference_forward(x, w_qkv, b_qkv, w_proj, b_proj, rel_bias, mask, num_heads)
    ref = jax.block_until_ready(ref)

    assert out.shape == (B_, N, dim)
    max_err = float(jnp.max(jnp.abs(out - ref)))
    # bf16 MXU operands + approx reciprocal -> looser tolerance than pure f32.
    assert jnp.allclose(out, ref, atol=2e-2, rtol=2e-2), f"max abs err = {max_err}"

    print("KERNEL_OK")
</pallas_src>

<mosaic_0001>
module attributes {stable_mosaic.version = 11 : i64} {
  func.func @_window_attn_kernel(%arg0: i32, %arg1: memref<128x32xbf16, #tpu.memory_space<vmem>>, %arg2: memref<32x96xbf16, #tpu.memory_space<vmem>>, %arg3: memref<1x96xf32, #tpu.memory_space<vmem>>, %arg4: memref<4x8x32xbf16, #tpu.memory_space<vmem>>, %arg5: memref<1x32xf32, #tpu.memory_space<vmem>>, %arg6: memref<4x4x16x16xf32, #tpu.memory_space<vmem>>, %arg7: memref<128x32xf32, #tpu.memory_space<vmem>>) attributes {dimension_semantics = [#tpu.dimension_semantics<parallel>], iteration_bounds = array<i64: 1>, scalar_prefetch = 0 : i64, scratch_operands = 0 : i64, tpu.core_type = #tpu.core_type<tc>, window_params = [{transform_indices = @transform_0, window_bounds = array<i64: 128, 32>}, {pipeline_mode = #tpu.pipeline_mode<synchronous>, transform_indices = @transform_1, window_bounds = array<i64: 32, 96>}, {pipeline_mode = #tpu.pipeline_mode<synchronous>, transform_indices = @transform_2, window_bounds = array<i64: 1, 96>}, {pipeline_mode = #tpu.pipeline_mode<synchronous>, transform_indices = @transform_3, window_bounds = array<i64: 4, 8, 32>}, {pipeline_mode = #tpu.pipeline_mode<synchronous>, transform_indices = @transform_4, window_bounds = array<i64: 1, 32>}, {pipeline_mode = #tpu.pipeline_mode<synchronous>, transform_indices = @transform_5, window_bounds = array<i64: 4, 4, 16, 16>}, {transform_indices = @transform_6, window_bounds = array<i64: 128, 32>}]} {
    %c0 = arith.constant 0 : index
    %c0_0 = arith.constant 0 : index
    %0 = vector.load %arg1[%c0, %c0_0] : memref<128x32xbf16, #tpu.memory_space<vmem>>, vector<128x32xbf16>
    %c0_1 = arith.constant 0 : index
    %c0_2 = arith.constant 0 : index
    %1 = vector.load %arg2[%c0_1, %c0_2] : memref<32x96xbf16, #tpu.memory_space<vmem>>, vector<32x96xbf16>
    %cst = arith.constant dense<0.000000e+00> : vector<128x96xf32>
    %2 = tpu.matmul %0, %1, %cst {dimension_numbers = #tpu.dot_dimension_numbers<[1], [0], [0], [1], [0, 0, 1, 1], [], []>} : vector<128x32xbf16>, vector<32x96xbf16>, vector<128x96xf32> -> vector<128x96xf32>
    %c0_3 = arith.constant 0 : index
    %c0_4 = arith.constant 0 : index
    %3 = vector.load %arg3[%c0_3, %c0_4] : memref<1x96xf32, #tpu.memory_space<vmem>>, vector<1x96xf32>
    %4 = vector.broadcast %3 : vector<1x96xf32> to vector<128x96xf32>
    %5 = arith.addf %2, %4 : vector<128x96xf32>
    %6 = arith.truncf %5 : vector<128x96xf32> to vector<128x96xbf16>
    %7 = vector.shape_cast %6 : vector<128x96xbf16> to vector<8x16x96xbf16>
    %cst_5 = arith.constant 0.000000e+00 : f32
    %8 = vector.broadcast %cst_5 : f32 to vector<128x32xf32>
    %9 = vector.extract_strided_slice %7 {offsets = [0, 0, 0], sizes = [8, 16, 8], strides = [1, 1, 1]} : vector<8x16x96xbf16> to vector<8x16x8xbf16>
    %10 = vector.extract_strided_slice %7 {offsets = [0, 0, 32], sizes = [8, 16, 8], strides = [1, 1, 1]} : vector<8x16x96xbf16> to vector<8x16x8xbf16>
    %11 = vector.extract_strided_slice %7 {offsets = [0, 0, 64], sizes = [8, 16, 8], strides = [1, 1, 1]} : vector<8x16x96xbf16> to vector<8x16x8xbf16>
    "tpu.trace_start"() <{level = 10 : i32, message = "bnd,bmd->bnm"}> : () -> ()
    %cst_6 = arith.constant dense<0.000000e+00> : vector<8x16x16xf32>
    %12 = tpu.matmul %9, %10, %cst_6 {dimension_numbers = #tpu.dot_dimension_numbers<[2], [2], [1], [1], [0, 0, 0, 1, 1, 1], [0], [0]>} : vector<8x16x8xbf16>, vector<8x16x8xbf16>, vector<8x16x16xf32> -> vector<8x16x16xf32>
    "tpu.trace_stop"() : () -> ()
    %13 = vector.shape_cast %12 : vector<8x16x16xf32> to vector<2x4x16x16xf32>
    %c0_7 = arith.constant 0 : index
    %c0_8 = arith.constant 0 : index
    %c0_9 = arith.constant 0 : index
    %c0_10 = arith.constant 0 : index
    %14 = vector.load %arg6[%c0_7, %c0_8, %c0_9, %c0_10] : memref<4x4x16x16xf32, #tpu.memory_space<vmem>>, vector<4x1x16x16xf32>
    %15 = vector.shape_cast %14 : vector<4x1x16x16xf32> to vector<4x16x16xf32>
    %16 = vector.shape_cast %15 : vector<4x16x16xf32> to vector<1x4x16x16xf32>
    %17 = vector.broadcast %16 : vector<1x4x16x16xf32> to vector<2x4x16x16xf32>
    %18 = arith.addf %13, %17 : vector<2x4x16x16xf32>
    %19 = vector.shape_cast %18 : vector<2x4x16x16xf32> to vector<8x16x16xf32>
    %cst_11 = arith.constant dense<0xFF800000> : vector<8x16xf32>
    %20 = vector.multi_reduction <maximumf>, %19, %cst_11 [2] : vector<8x16x16xf32> to vector<8x16xf32>
    %21 = vector.shape_cast %20 : vector<8x16xf32> to vector<8x16x1xf32>
    %22 = vector.broadcast %21 : vector<8x16x1xf32> to vector<8x16x16xf32>
    %23 = arith.subf %19, %22 : vector<8x16x16xf32>
    %24 = math.exp %23 : vector<8x16x16xf32>
    %cst_12 = arith.constant dense<0.000000e+00> : vector<8x16xf32>
    %25 = vector.multi_reduction <add>, %24, %cst_12 [2] : vector<8x16x16xf32> to vector<8x16xf32>
    %26 = vector.shape_cast %25 : vector<8x16xf32> to vector<8x16x1xf32>
    %27 = arith.truncf %24 : vector<8x16x16xf32> to vector<8x16x16xbf16>
    "tpu.trace_start"() <{level = 10 : i32, message = "bnm,bmd->bnd"}> : () -> ()
    %cst_13 = arith.constant dense<0.000000e+00> : vector<8x16x8xf32>
    %28 = tpu.matmul %27, %11, %cst_13 {dimension_numbers = #tpu.dot_dimension_numbers<[2], [1], [1], [2], [0, 0, 0, 1, 1, 2], [0], [0]>} : vector<8x16x16xbf16>, vector<8x16x8xbf16>, vector<8x16x8xf32> -> vector<8x16x8xf32>
    "tpu.trace_stop"() : () -> ()
    %29 = tpu.reciprocal %26 {approx = true} : vector<8x16x1xf32> -> vector<8x16x1xf32>
    %30 = vector.broadcast %29 : vector<8x16x1xf32> to vector<8x16x8xf32>
    %31 = arith.mulf %28, %30 : vector<8x16x8xf32>
    %32 = vector.shape_cast %31 : vector<8x16x8xf32> to vector<128x8xf32>
    %33 = arith.truncf %32 : vector<128x8xf32> to vector<128x8xbf16>
    %c0_14 = arith.constant 0 : index
    %c0_15 = arith.constant 0 : index
    %c0_16 = arith.constant 0 : index
    %34 = vector.load %arg4[%c0_14, %c0_15, %c0_16] : memref<4x8x32xbf16, #tpu.memory_space<vmem>>, vector<1x8x32xbf16>
    %35 = vector.shape_cast %34 : vector<1x8x32xbf16> to vector<8x32xbf16>
    %cst_17 = arith.constant dense<0.000000e+00> : vector<128x32xf32>
    %36 = tpu.matmul %33, %35, %cst_17 {dimension_numbers = #tpu.dot_dimension_numbers<[1], [0], [0], [1], [0, 0, 1, 1], [], []>} : vector<128x8xbf16>, vector<8x32xbf16>, vector<128x32xf32> -> vector<128x32xf32>
    %37 = arith.addf %8, %36 : vector<128x32xf32>
    %38 = vector.extract_strided_slice %7 {offsets = [0, 0, 8], sizes = [8, 16, 8], strides = [1, 1, 1]} : vector<8x16x96xbf16> to vector<8x16x8xbf16>
    %39 = vector.extract_strided_slice %7 {offsets = [0, 0, 40], sizes = [8, 16, 8], strides = [1, 1, 1]} : vector<8x16x96xbf16> to vector<8x16x8xbf16>
    %40 = vector.extract_strided_slice %7 {offsets = [0, 0, 72], sizes = [8, 16, 8], strides = [1, 1, 1]} : vector<8x16x96xbf16> to vector<8x16x8xbf16>
    "tpu.trace_start"() <{level = 10 : i32, message = "bnd,bmd->bnm"}> : () -> ()
    %cst_18 = arith.constant dense<0.000000e+00> : vector<8x16x16xf32>
    %41 = tpu.matmul %38, %39, %cst_18 {dimension_numbers = #tpu.dot_dimension_numbers<[2], [2], [1], [1], [0, 0, 0, 1, 1, 1], [0], [0]>} : vector<8x16x8xbf16>, vector<8x16x8xbf16>, vector<8x16x16xf32> -> vector<8x16x16xf32>
    "tpu.trace_stop"() : () -> ()
    %42 = vector.shape_cast %41 : vector<8x16x16xf32> to vector<2x4x16x16xf32>
    %c0_19 = arith.constant 0 : index
    %c1 = arith.constant 1 : index
    %c0_20 = arith.constant 0 : index
    %c0_21 = arith.constant 0 : index
    %43 = vector.load %arg6[%c0_19, %c1, %c0_20, %c0_21] : memref<4x4x16x16xf32, #tpu.memory_space<vmem>>, vector<4x1x16x16xf32>
    %44 = vector.shape_cast %43 : vector<4x1x16x16xf32> to vector<4x16x16xf32>
    %45 = vector.shape_cast %44 : vector<4x16x16xf32> to vector<1x4x16x16xf32>
    %46 = vector.broadcast %45 : vector<1x4x16x16xf32> to vector<2x4x16x16xf32>
    %47 = arith.addf %42, %46 : vector<2x4x16x16xf32>
    %48 = vector.shape_cast %47 : vector<2x4x16x16xf32> to vector<8x16x16xf32>
    %cst_22 = arith.constant dense<0xFF800000> : vector<8x16xf32>
    %49 = vector.multi_reduction <maximumf>, %48, %cst_22 [2] : vector<8x16x16xf32> to vector<8x16xf32>
    %50 = vector.shape_cast %49 : vector<8x16xf32> to vector<8x16x1xf32>
    %51 = vector.broadcast %50 : vector<8x16x1xf32> to vector<8x16x16xf32>
    %52 = arith.subf %48, %51 : vector<8x16x16xf32>
    %53 = math.exp %52 : vector<8x16x16xf32>
    %cst_23 = arith.constant dense<0.000000e+00> : vector<8x16xf32>
    %54 = vector.multi_reduction <add>, %53, %cst_23 [2] : vector<8x16x16xf32> to vector<8x16xf32>
    %55 = vector.shape_cast %54 : vector<8x16xf32> to vector<8x16x1xf32>
    %56 = arith.truncf %53 : vector<8x16x16xf32> to vector<8x16x16xbf16>
    "tpu.trace_start"() <{level = 10 : i32, message = "bnm,bmd->bnd"}> : () -> ()
    %cst_24 = arith.constant dense<0.000000e+00> : vector<8x16x8xf32>
    %57 = tpu.matmul %56, %40, %cst_24 {dimension_numbers = #tpu.dot_dimension_numbers<[2], [1], [1], [2], [0, 0, 0, 1, 1, 2], [0], [0]>} : vector<8x16x16xbf16>, vector<8x16x8xbf16>, vector<8x16x8xf32> -> vector<8x16x8xf32>
    "tpu.trace_stop"() : () -> ()
    %58 = tpu.reciprocal %55 {approx = true} : vector<8x16x1xf32> -> vector<8x16x1xf32>
    %59 = vector.broadcast %58 : vector<8x16x1xf32> to vector<8x16x8xf32>
    %60 = arith.mulf %57, %59 : vector<8x16x8xf32>
    %61 = vector.shape_cast %60 : vector<8x16x8xf32> to vector<128x8xf32>
    %62 = arith.truncf %61 : vector<128x8xf32> to vector<128x8xbf16>
    %c1_25 = arith.constant 1 : index
    %c0_26 = arith.constant 0 : index
    %c0_27 = arith.constant 0 : index
    %63 = vector.load %arg4[%c1_25, %c0_26, %c0_27] : memref<4x8x32xbf16, #tpu.memory_space<vmem>>, vector<1x8x32xbf16>
    %64 = vector.shape_cast %63 : vector<1x8x32xbf16> to vector<8x32xbf16>
    %cst_28 = arith.constant dense<0.000000e+00> : vector<128x32xf32>
    %65 = tpu.matmul %62, %64, %cst_28 {dimension_numbers = #tpu.dot_dimension_numbers<[1], [0], [0], [1], [0, 0, 1, 1], [], []>} : vector<128x8xbf16>, vector<8x32xbf16>, vector<128x32xf32> -> vector<128x32xf32>
    %66 = arith.addf %37, %65 : vector<128x32xf32>
    %67 = vector.extract_strided_slice %7 {offsets = [0, 0, 16], sizes = [8, 16, 8], strides = [1, 1, 1]} : vector<8x16x96xbf16> to vector<8x16x8xbf16>
    %68 = vector.extract_strided_slice %7 {offsets = [0, 0, 48], sizes = [8, 16, 8], strides = [1, 1, 1]} : vector<8x16x96xbf16> to vector<8x16x8xbf16>
    %69 = vector.extract_strided_slice %7 {offsets = [0, 0, 80], sizes = [8, 16, 8], strides = [1, 1, 1]} : vector<8x16x96xbf16> to vector<8x16x8xbf16>
    "tpu.trace_start"() <{level = 10 : i32, message = "bnd,bmd->bnm"}> : () -> ()
    %cst_29 = arith.constant dense<0.000000e+00> : vector<8x16x16xf32>
    %70 = tpu.matmul %67, %68, %cst_29 {dimension_numbers = #tpu.dot_dimension_numbers<[2], [2], [1], [1], [0, 0, 0, 1, 1, 1], [0], [0]>} : vector<8x16x8xbf16>, vector<8x16x8xbf16>, vector<8x16x16xf32> -> vector<8x16x16xf32>
    "tpu.trace_stop"() : () -> ()
    %71 = vector.shape_cast %70 : vector<8x16x16xf32> to vector<2x4x16x16xf32>
    %c0_30 = arith.constant 0 : index
    %c2 = arith.constant 2 : index
    %c0_31 = arith.constant 0 : index
    %c0_32 = arith.constant 0 : index
    %72 = vector.load %arg6[%c0_30, %c2, %c0_31, %c0_32] : memref<4x4x16x16xf32, #tpu.memory_space<vmem>>, vector<4x1x16x16xf32>
    %73 = vector.shape_cast %72 : vector<4x1x16x16xf32> to vector<4x16x16xf32>
    %74 = vector.shape_cast %73 : vector<4x16x16xf32> to vector<1x4x16x16xf32>
    %75 = vector.broadcast %74 : vector<1x4x16x16xf32> to vector<2x4x16x16xf32>
    %76 = arith.addf %71, %75 : vector<2x4x16x16xf32>
    %77 = vector.shape_cast %76 : vector<2x4x16x16xf32> to vector<8x16x16xf32>
    %cst_33 = arith.constant dense<0xFF800000> : vector<8x16xf32>
    %78 = vector.multi_reduction <maximumf>, %77, %cst_33 [2] : vector<8x16x16xf32> to vector<8x16xf32>
    %79 = vector.shape_cast %78 : vector<8x16xf32> to vector<8x16x1xf32>
    %80 = vector.broadcast %79 : vector<8x16x1xf32> to vector<8x16x16xf32>
    %81 = arith.subf %77, %80 : vector<8x16x16xf32>
    %82 = math.exp %81 : vector<8x16x16xf32>
    %cst_34 = arith.constant dense<0.000000e+00> : vector<8x16xf32>
    %83 = vector.multi_reduction <add>, %82, %cst_34 [2] : vector<8x16x16xf32> to vector<8x16xf32>
    %84 = vector.shape_cast %83 : vector<8x16xf32> to vector<8x16x1xf32>
    %85 = arith.truncf %82 : vector<8x16x16xf32> to vector<8x16x16xbf16>
    "tpu.trace_start"() <{level = 10 : i32, message = "bnm,bmd->bnd"}> : () -> ()
    %cst_35 = arith.constant dense<0.000000e+00> : vector<8x16x8xf32>
    %86 = tpu.matmul %85, %69, %cst_35 {dimension_numbers = #tpu.dot_dimension_numbers<[2], [1], [1], [2], [0, 0, 0, 1, 1, 2], [0], [0]>} : vector<8x16x16xbf16>, vector<8x16x8xbf16>, vector<8x16x8xf32> -> vector<8x16x8xf32>
    "tpu.trace_stop"() : () -> ()
    %87 = tpu.reciprocal %84 {approx = true} : vector<8x16x1xf32> -> vector<8x16x1xf32>
    %88 = vector.broadcast %87 : vector<8x16x1xf32> to vector<8x16x8xf32>
    %89 = arith.mulf %86, %88 : vector<8x16x8xf32>
    %90 = vector.shape_cast %89 : vector<8x16x8xf32> to vector<128x8xf32>
    %91 = arith.truncf %90 : vector<128x8xf32> to vector<128x8xbf16>
    %c2_36 = arith.constant 2 : index
    %c0_37 = arith.constant 0 : index
    %c0_38 = arith.constant 0 : index
    %92 = vector.load %arg4[%c2_36, %c0_37, %c0_38] : memref<4x8x32xbf16, #tpu.memory_space<vmem>>, vector<1x8x32xbf16>
    %93 = vector.shape_cast %92 : vector<1x8x32xbf16> to vector<8x32xbf16>
    %cst_39 = arith.constant dense<0.000000e+00> : vector<128x32xf32>
    %94 = tpu.matmul %91, %93, %cst_39 {dimension_numbers = #tpu.dot_dimension_numbers<[1], [0], [0], [1], [0, 0, 1, 1], [], []>} : vector<128x8xbf16>, vector<8x32xbf16>, vector<128x32xf32> -> vector<128x32xf32>
    %95 = arith.addf %66, %94 : vector<128x32xf32>
    %96 = vector.extract_strided_slice %7 {offsets = [0, 0, 24], sizes = [8, 16, 8], strides = [1, 1, 1]} : vector<8x16x96xbf16> to vector<8x16x8xbf16>
    %97 = vector.extract_strided_slice %7 {offsets = [0, 0, 56], sizes = [8, 16, 8], strides = [1, 1, 1]} : vector<8x16x96xbf16> to vector<8x16x8xbf16>
    %98 = vector.extract_strided_slice %7 {offsets = [0, 0, 88], sizes = [8, 16, 8], strides = [1, 1, 1]} : vector<8x16x96xbf16> to vector<8x16x8xbf16>
    "tpu.trace_start"() <{level = 10 : i32, message = "bnd,bmd->bnm"}> : () -> ()
    %cst_40 = arith.constant dense<0.000000e+00> : vector<8x16x16xf32>
    %99 = tpu.matmul %96, %97, %cst_40 {dimension_numbers = #tpu.dot_dimension_numbers<[2], [2], [1], [1], [0, 0, 0, 1, 1, 1], [0], [0]>} : vector<8x16x8xbf16>, vector<8x16x8xbf16>, vector<8x16x16xf32> -> vector<8x16x16xf32>
    "tpu.trace_stop"() : () -> ()
    %100 = vector.shape_cast %99 : vector<8x16x16xf32> to vector<2x4x16x16xf32>
    %c0_41 = arith.constant 0 : index
    %c3 = arith.constant 3 : index
    %c0_42 = arith.constant 0 : index
    %c0_43 = arith.constant 0 : index
    %101 = vector.load %arg6[%c0_41, %c3, %c0_42, %c0_43] : memref<4x4x16x16xf32, #tpu.memory_space<vmem>>, vector<4x1x16x16xf32>
    %102 = vector.shape_cast %101 : vector<4x1x16x16xf32> to vector<4x16x16xf32>
    %103 = vector.shape_cast %102 : vector<4x16x16xf32> to vector<1x4x16x16xf32>
    %104 = vector.broadcast %103 : vector<1x4x16x16xf32> to vector<2x4x16x16xf32>
    %105 = arith.addf %100, %104 : vector<2x4x16x16xf32>
    %106 = vector.shape_cast %105 : vector<2x4x16x16xf32> to vector<8x16x16xf32>
    %cst_44 = arith.constant dense<0xFF800000> : vector<8x16xf32>
    %107 = vector.multi_reduction <maximumf>, %106, %cst_44 [2] : vector<8x16x16xf32> to vector<8x16xf32>
    %108 = vector.shape_cast %107 : vector<8x16xf32> to vector<8x16x1xf32>
    %109 = vector.broadcast %108 : vector<8x16x1xf32> to vector<8x16x16xf32>
    %110 = arith.subf %106, %109 : vector<8x16x16xf32>
    %111 = math.exp %110 : vector<8x16x16xf32>
    %cst_45 = arith.constant dense<0.000000e+00> : vector<8x16xf32>
    %112 = vector.multi_reduction <add>, %111, %cst_45 [2] : vector<8x16x16xf32> to vector<8x16xf32>
    %113 = vector.shape_cast %112 : vector<8x16xf32> to vector<8x16x1xf32>
    %114 = arith.truncf %111 : vector<8x16x16xf32> to vector<8x16x16xbf16>
    "tpu.trace_start"() <{level = 10 : i32, message = "bnm,bmd->bnd"}> : () -> ()
    %cst_46 = arith.constant dense<0.000000e+00> : vector<8x16x8xf32>
    %115 = tpu.matmul %114, %98, %cst_46 {dimension_numbers = #tpu.dot_dimension_numbers<[2], [1], [1], [2], [0, 0, 0, 1, 1, 2], [0], [0]>} : vector<8x16x16xbf16>, vector<8x16x8xbf16>, vector<8x16x8xf32> -> vector<8x16x8xf32>
    "tpu.trace_stop"() : () -> ()
    %116 = tpu.reciprocal %113 {approx = true} : vector<8x16x1xf32> -> vector<8x16x1xf32>
    %117 = vector.broadcast %116 : vector<8x16x1xf32> to vector<8x16x8xf32>
    %118 = arith.mulf %115, %117 : vector<8x16x8xf32>
    %119 = vector.shape_cast %118 : vector<8x16x8xf32> to vector<128x8xf32>
    %120 = arith.truncf %119 : vector<128x8xf32> to vector<128x8xbf16>
    %c3_47 = arith.constant 3 : index
    %c0_48 = arith.constant 0 : index
    %c0_49 = arith.constant 0 : index
    %121 = vector.load %arg4[%c3_47, %c0_48, %c0_49] : memref<4x8x32xbf16, #tpu.memory_space<vmem>>, vector<1x8x32xbf16>
    %122 = vector.shape_cast %121 : vector<1x8x32xbf16> to vector<8x32xbf16>
    %cst_50 = arith.constant dense<0.000000e+00> : vector<128x32xf32>
    %123 = tpu.matmul %120, %122, %cst_50 {dimension_numbers = #tpu.dot_dimension_numbers<[1], [0], [0], [1], [0, 0, 1, 1], [], []>} : vector<128x8xbf16>, vector<8x32xbf16>, vector<128x32xf32> -> vector<128x32xf32>
    %124 = arith.addf %95, %123 : vector<128x32xf32>
    %c0_51 = arith.constant 0 : index
    %c0_52 = arith.constant 0 : index
    %125 = vector.load %arg5[%c0_51, %c0_52] : memref<1x32xf32, #tpu.memory_space<vmem>>, vector<1x32xf32>
    %126 = vector.broadcast %125 : vector<1x32xf32> to vector<128x32xf32>
    %127 = arith.addf %124, %126 : vector<128x32xf32>
    %c0_53 = arith.constant 0 : index
    %c0_54 = arith.constant 0 : index
    %128 = vector.load %arg7[%c0_53, %c0_54] : memref<128x32xf32, #tpu.memory_space<vmem>>, vector<128x32xf32>
    tpu.vector_store %arg7[%c0_53, %c0_54], %127 {strides = array<i32>} : memref<128x32xf32, #tpu.memory_space<vmem>>, vector<128x32xf32>,
    return
  }
  func.func @transform_0(%arg0: i32) -> (i32, i32) {
    %c0_i32 = arith.constant 0 : i32
    %c0_i32_0 = arith.constant 0 : i32
    return %arg0, %c0_i32 : i32, i32
  }
  func.func @transform_1(%arg0: i32) -> (i32, i32) {
    %c0_i32 = arith.constant 0 : i32
    %c0_i32_0 = arith.constant 0 : i32
    %c0_i32_1 = arith.constant 0 : i32
    return %c0_i32, %c0_i32_0 : i32, i32
  }
  func.func @transform_2(%arg0: i32) -> (i32, i32) {
    %c0_i32 = arith.constant 0 : i32
    %c0_i32_0 = arith.constant 0 : i32
    %c0_i32_1 = arith.constant 0 : i32
    return %c0_i32, %c0_i32_0 : i32, i32
  }
  func.func @transform_3(%arg0: i32) -> (i32, i32, i32) {
    %c0_i32 = arith.constant 0 : i32
    %c0_i32_0 = arith.constant 0 : i32
    %c0_i32_1 = arith.constant 0 : i32
    %c0_i32_2 = arith.constant 0 : i32
    return %c0_i32, %c0_i32_0, %c0_i32_1 : i32, i32, i32
  }
  func.func @transform_4(%arg0: i32) -> (i32, i32) {
    %c0_i32 = arith.constant 0 : i32
    %c0_i32_0 = arith.constant 0 : i32
    %c0_i32_1 = arith.constant 0 : i32
    return %c0_i32, %c0_i32_0 : i32, i32
  }
  func.func @transform_5(%arg0: i32) -> (i32, i32, i32, i32) {
    %c0_i32 = arith.constant 0 : i32
    %c0_i32_0 = arith.constant 0 : i32
    %c0_i32_1 = arith.constant 0 : i32
    %c0_i32_2 = arith.constant 0 : i32
    %c0_i32_3 = arith.constant 0 : i32
    return %c0_i32, %c0_i32_0, %c0_i32_1, %c0_i32_2 : i32, i32, i32, i32
  }
  func.func @transform_6(%arg0: i32) -> (i32, i32) {
    %c0_i32 = arith.constant 0 : i32
    %c0_i32_0 = arith.constant 0 : i32
    return %arg0, %c0_i32 : i32, i32
  }
}

</mosaic_0001>

<bundles_post_ra>
// kernel: tpu_custom_call.1
= control target key start
LH: loop header
LB: loop body
LE: loop exit
PB: predicated region body
PF: predicated region fallthrough
CT: control target
= control target key end

     0   :  { %11 = vsyncpa [#allocation3], 0  ;;  %s5955_s21 = smov [#allocation2]   ;;  %s7517_s0 = inlined_call_operand.vmem [shape: bf16[128,32], index: 0, kind: input, shape index: {}]   ;;  %s7518_s1 = inlined_call_operand.vmem [shape: bf16[32,96], index: 1, kind: input, shape index: {}]   ;;  %s7519_s2 = inlined_call_operand.vmem [shape: f32[1,96], index: 2, kind: input, shape index: {}]   ;;  %s7520_s3 = inlined_call_operand.vmem [shape: bf16[4,8,32], index: 3, kind: input, shape index: {}]   ;;  %s7521_s4 = inlined_call_operand.vmem [shape: f32[1,32], index: 4, kind: input, shape index: {}]   ;;  %s7522_s5 = inlined_call_operand.hbm [shape: f32[4,4,16,16], index: 5, kind: input, shape index: {}]   ;;  %s7523_s6 = inlined_call_operand.vmem [shape: f32[128,32], index: 6, kind: output, shape index: {}]  }
   0x1   :  { %s27_s22 = sshll.u32 %s5955_s21, 4  ;;  %s5931_s25 = scalar_lea.hbm %s7522_s5, 4096  ;;  %s28_s22 = int_to_ptr.vmem [resolvable:$true] %s27_s22 }
   0x2   :  { %p5932_p0 = scmp.ne.s32.totalorder %s7522_s5, %s5931_s25  ;;  %p5935_p1 = scmp.lt.u32.totalorder %s5931_s25, %s7522_s5 }
   0x4   :  { %p5937_p2 = pnand %p5935_p1, %p5932_p0 }
   0x6   :  { %5940 = shalt.err (!%p5937_p2)
}
   0x7   :  { %s5941_s30 = scalar_lea.vmem %s28_s22, 4096  ;;  %p5946_p4 = scmp.lt.s32.totalorder %s28_s22, %s28_s22 }
   0x8   :  { %p5942_p3 = scmp.ne.s32.totalorder %s28_s22, %s5941_s30  ;;  %p5947_p5 = scmp.lt.s32.totalorder %s5941_s30, %s5941_s30 }
   0xa   :  { %p5948_p6 = por %p5947_p5, %p5946_p4 }
   0xc   :  { %p5949_p7 = pnand %p5948_p6, %p5942_p3 }
   0xe   :  { %5952 = shalt.err (!%p5949_p7)
}
   0xf   :  { %s5956_s7 = smov 128   ;;  %s5957_s8 = smov 8  }
  0x10   :  { %33 = dma.hbm_to_vmem [thread:$0]  %s7522_s5, 4096, %s28_s22, [#allocation3], %s5956_s7, %s5956_s7, %s5957_s8  }
  0x11   :  { %5953 = dma.done.wait [#allocation3], 4096  }
  0x12   :  { %5954 = vsyncadd [#allocation3], 4294963200  ;;  %v5665_v0 = vld [vmem:[%s7518_s1] sm:$0xff]   ;;  %v5666_v1 = vld [vmem:[%s7518_s1 + $0x8] sm:$0xff]   ;;  %vm117_vm0 = vcmask 261120   ;;  %v7524_v10 = vmov 0.0  }
  0x13   :  { %5117 = vmatprep.subr.bf16.mxu0 %v5665_v0  ;;  %v5667_v2 = vld [vmem:[%s7517_s0] sm:$0xff]   ;;  %5593 = vmatprep.subr.bf16.mxu1 %v5665_v0  ;;  %v5668_v3 = vld [vmem:[%s7517_s0 + $0x8] sm:$0xff]   ;;  %v5669_v4 = vld [vmem:[%s7517_s0 + $0x10] sm:$0xff]   ;;  %vm5959_vm1 = vmmov 0   ;;  %s5962_s7 = smov 88   ;;  %s5963_s8 = smov 120  }
  0x14   :  { %5118 = vmatpush3.bf16.msra.mxu0 %v5665_v0  ;;  %5595 = vmatpush3.bf16.msra.mxu1 %v5665_v0  ;;  %v5671_v5 = vld [vmem:[%s7517_s0 + $0x20] sm:$0xff]   ;;  %v5672_v6 = vld [vmem:[%s7517_s0 + $0x28] sm:$0xff]   ;;  %v5673_v7 = vld [vmem:[%s7517_s0 + $0x30] sm:$0xff]   ;;  %vm250_vm2 = vcmask 64512   ;;  %vm672_vm3 = vcmask 130048   ;;  %s5964_s9 = smov 56  }
  0x15   :  { %5119 = vmatprep.subr.bf16.mxu0 %v5666_v1  ;;  %5121 = vmatprep.mubr.msk.bf16.mxu0 %vm117_vm0, %v5667_v2  ;;  %v5670_v8 = vld [vmem:[%s7517_s0 + $0x18] sm:$0xff]   ;;  %v4824_v12 = vld [vmem:[%s7519_s2] ss:$0 sm:$0xff]  ;;  %s5961_s2 = smov 64   ;;  %s5965_s10 = smov 80   ;;  %vm2269_vm4 = vcmask 1043456  }
  0x16   :  { %5594 = vmatprep.subr.bf16.mxu1 %v5666_v1  ;;  %5129 = vmatprep.mubr.msk.bf16.mxu1 %vm117_vm0, %v5671_v5  ;;  %v5674_v9 = vld [vmem:[%s7517_s0 + $0x38] sm:$0xff]   ;;  %s5960_s0 = smov 96   ;;  %s5966_s11 = smov 112  }
  0x17   :  { %s5967_s12 = smov 48   ;;  %s5968_s5 = smov 72  }
  0x18   :  { %5120 = vmatpush3.bf16.msra.mxu0 %v5666_v1  ;;  %5596 = vmatpush3.bf16.msra.mxu1 %v5666_v1  ;;  %s5969_s17 = smov 104   ;;  %s5970_s18 = smov 40  }
  0x19   :  { %5137 = vmatprep.subr.bf16.mxu1 %v7524_v10  ;;  %5161 = vmatprep.subr.bf16.mxu0 %v7524_v10 }
  0x1b   :  { %5122 = vmatmul.mubr.msk.bf16.vlgmr.msra.gmra.mrb[0].mxu0 %vm117_vm0, %v5668_v3  ;;  %5130 = vmatmul.mubr.msk.bf16.vlgmr.msra.gmra.mrb[0].mxu1 %vm117_vm0, %v5672_v6 }
  0x1c   :  { %5125 = vmatprep.mubr.msk.bf16.mxu0 %vm117_vm0, %v5669_v4  ;;  %5133 = vmatprep.mubr.msk.bf16.mxu1 %vm117_vm0, %v5673_v7 }
  0x23   :  { %5126 = vmatmul.mubr.msk.bf16.gmra.mrb[4].mxu0 %vm117_vm0, %v5670_v8  ;;  %5134 = vmatmul.mubr.msk.bf16.gmra.mrb[4].mxu1 %vm117_vm0, %v5674_v9  ;;  %v650_v9 = vld [vmem:[#allocation2 + $0x40] sm:$0xff] }
  0x24   :  { %5139 = vmatprep.mubr.msk.bf16.mxu1 %vm5959_vm1, %v7524_v10  ;;  %5163 = vmatprep.mubr.msk.bf16.mxu0 %vm5959_vm1, %v7524_v10 }
  0xee   :  { %v5123_v11 = vpop.f32.mrb[0].mxu0  ;;  %v5131_v13 = vpop.f32.mrb[0].mxu1 }
  0xef   :  { %v176_v14 = vpop.f32.mrb[1].mxu0  ;;  %v217_v15 = vadd.f32 %v5131_v13, %v4824_v12  ;;  %v208_v16 = vpop.f32.mrb[1].mxu1  ;;  %v185_v20 = vadd.f32 %v5123_v11, %v4824_v12 }
  0xf0   :  { %v5124_v17 = vpop.f32.mrb[2].mxu0  ;;  %v209_v18 = vadd.f32 %v4824_v12, %v208_v16  ;;  %v5132_v19 = vpop.f32.mrb[2].mxu1  ;;  %v177_v25 = vadd.f32 %v4824_v12, %v176_v14 }
  0xf1   :  { %v188_v21 = vadd.f32 %v5124_v17, %v4824_v12  ;;  %v179_v22 = vpop.f32.mrb[3].mxu0  ;;  %v220_v23 = vadd.f32 %v5132_v19, %v4824_v12  ;;  %v211_v24 = vpop.f32.mrb[3].mxu1 }
  0xf2   :  { %v180_v26 = vadd.f32 %v4824_v12, %v179_v22  ;;  %v212_v27 = vadd.f32 %v4824_v12, %v211_v24 }
  0xf3   :  { %v6065_v28 = vpack.c.bf16 %v188_v21, %v185_v20  ;;  %v6067_v29 = vpack.c.bf16 %v220_v23, %v217_v15 }
  0xf4   :  { %v6069_v30 = vpack.c.bf16 %v180_v26, %v177_v25  ;;  %v6071_v31 = vpack.c.bf16 %v212_v27, %v209_v18 }
  0xf5   :  { %7536 = vst [vmem:[#allocation5_spill] sm:$0xff] %v6067_v29 }
  0xf6   :  { %7537 = vst [vmem:[#allocation6_spill] sm:$0xff] %v6071_v31  ;;  %v5127_v32 = vpop.f32.mrb[4].mxu0  ;;  %248 = vrot.lane.b32.xlu0 %v6069_v30, %s5960_s0  ;;  %v5135_v33 = vpop.f32.mrb[4].mxu1 }
  0xf7   :  { %v201_v34 = vadd.f32 %v5127_v32, %v4824_v12  ;;  %v192_v35 = vpop.f32.mrb[5].mxu0  ;;  %v233_v36 = vadd.f32 %v5135_v33, %v4824_v12  ;;  %v224_v37 = vpop.f32.mrb[5].mxu1 }
  0xf8   :  { %v193_v38 = vadd.f32 %v4824_v12, %v192_v35  ;;  %v5128_v39 = vpop.f32.mrb[6].mxu0  ;;  %v225_v40 = vadd.f32 %v4824_v12, %v224_v37  ;;  %v5136_v41 = vpop.f32.mrb[6].mxu1 }
  0xf9   :  { %v204_v42 = vadd.f32 %v5128_v39, %v4824_v12  ;;  %v195_v43 = vpop.f32.mrb[7].mxu0  ;;  %v236_v44 = vadd.f32 %v5136_v41, %v4824_v12  ;;  %v227_v45 = vpop.f32.mrb[7].mxu1 }
  0xfa   :  { %v196_v46 = vadd.f32 %v4824_v12, %v195_v43  ;;  %299 = vrot.lane.b32.xlu0 %v6065_v28, %s5960_s0  ;;  %v228_v47 = vadd.f32 %v4824_v12, %v227_v45  ;;  %v651_v12 = vld [vmem:[#allocation2 + $0x48] sm:$0xff] }
  0xfb   :  { %v6075_v48 = vpack.c.bf16 %v204_v42, %v201_v34  ;;  %v6077_v49 = vpack.c.bf16 %v236_v44, %v233_v36 }
  0xfc   :  { %v6079_v50 = vpack.c.bf16 %v196_v46, %v193_v38  ;;  %v6081_v51 = vpack.c.bf16 %v228_v47, %v225_v40 }
  0xfe   :  { %349 = vrot.lane.b32.xlu1 %v6079_v50, %s5960_s0  ;;  %499 = vrot.lane.b32.xlu0 %v6067_v29, %s5960_s0 }
 0x102   :  { %399 = vrot.lane.b32.xlu1 %v6075_v48, %s5960_s0  ;;  %449 = vrot.lane.b32.xlu0 %v6071_v31, %s5960_s0 }
 0x106   :  { %599 = vrot.lane.b32.xlu1 %v6077_v49, %s5960_s0  ;;  %966 = vrot.lane.b32.xlu0 %v6075_v48, %s5961_s2 }
 0x10a   :  { %549 = vrot.lane.b32.xlu1 %v6081_v51, %s5960_s0  ;;  %1295 = vrot.lane.b32.xlu0 %v6065_v28, %s5962_s7 }
 0x10e   :  { %872 = vrot.lane.b32.xlu1 %v6065_v28, %s5961_s2  ;;  %1397 = vrot.lane.b32.xlu0 %v6075_v48, %s5962_s7 }
 0x112   :  { %1060 = vrot.lane.b32.xlu1 %v6067_v29, %s5961_s2 }
 0x116   :  { %1154 = vrot.lane.b32.xlu1 %v6077_v49, %s5961_s2 }
 0x11a   :  { %1293 = vrot.lane.b32.xlu1 %v6065_v28, %s5963_s8 }
 0x168   :  { %v249_v52 = vpop.permute.xlu0 %248 }
 0x169   :  { %v255_v53 = vsel %vm250_vm2, %v249_v52, 0  ;;  %v654_v52 = vld [vmem:[#allocation2 + $0xc0] sm:$0xff] }
 0x16a   :  { %5138 = vmatpush3.bf16.xpose.msra.mxu1 %v255_v53 }
 0x16b   :  { %5143 = vmatprep.subr.bf16.mxu1 %v7524_v10 }
 0x16c   :  { %v300_v54 = vpop.permute.xlu0 %299 }
 0x16d   :  { %v305_v57 = vsel %vm250_vm2, %v300_v54, 0  ;;  %v655_v54 = vld [vmem:[#allocation2 + $0xc8] sm:$0xff] }
 0x170   :  { %v350_v55 = vpop.permute.xlu1 %349  ;;  %v500_v56 = vpop.permute.xlu0 %499 }
 0x171   :  { %5140 = vmatmul.mubr.msk.bf16.vlgmr.msra.gmra.mrb[8].mxu1 %vm250_vm2, %v6069_v30  ;;  %v355_v61 = vsel %vm250_vm2, %v350_v55, 0  ;;  %v505_v2 = vsel %vm250_vm2, %v500_v56, 0 }
 0x172   :  { %5144 = vmatpush3.bf16.xpose.msra.mxu1 %v305_v57  ;;  %5145 = vmatprep.mubr.msk.bf16.mxu1 %vm5959_vm1, %v7524_v10 }
 0x173   :  { %5149 = vmatprep.subr.bf16.mxu1 %v7524_v10 }
 0x174   :  { %v400_v58 = vpop.permute.xlu1 %399  ;;  %v450_v59 = vpop.permute.xlu0 %449 }
 0x175   :  { %v455_v60 = vsel %vm250_vm2, %v450_v59, 0  ;;  %v405_v1 = vsel %vm250_vm2, %v400_v58, 0 }
 0x176   :  { %5162 = vmatpush3.bf16.xpose.msra.mxu0 %v455_v60 }
 0x177   :  { %5173 = vmatprep.subr.bf16.mxu0 %v7524_v10 }
 0x178   :  { %v600_v62 = vpop.permute.xlu1 %599 }
 0x179   :  { %5146 = vmatmul.mubr.msk.bf16.vlgmr.msra.gmra.mrb[12].mxu1 %vm250_vm2, %v6065_v28  ;;  %v605_v3 = vsel %vm250_vm2, %v600_v62, 0 }
 0x17a   :  { %5150 = vmatpush3.bf16.xpose.msra.mxu1 %v355_v61  ;;  %5151 = vmatprep.mubr.msk.bf16.mxu1 %vm5959_vm1, %v7524_v10 }
 0x17b   :  { %5155 = vmatprep.subr.bf16.mxu1 %v7524_v10 }
 0x17c   :  { %v550_v63 = vpop.permute.xlu1 %549 }
 0x17d   :  { %v555_v0 = vsel %vm250_vm2, %v550_v63, 0  ;;  %5164 = vmatmul.mubr.msk.bf16.vlgmr.msra.gmra.mrb[8].mxu0 %vm250_vm2, %v6071_v31 }
 0x17e   :  { %5174 = vmatpush3.bf16.xpose.msra.mxu0 %v555_v0  ;;  %5175 = vmatprep.mubr.msk.bf16.mxu0 %vm5959_vm1, %v7524_v10 }
 0x17f   :  { %5185 = vmatprep.subr.bf16.mxu0 %v7524_v10 }
 0x180   :  { %v873_v4 = vpop.permute.xlu1 %872 }
 0x181   :  { %5152 = vmatmul.mubr.msk.bf16.vlgmr.msra.gmra.mrb[16].mxu1 %vm250_vm2, %v6079_v50 }
 0x182   :  { %5156 = vmatpush3.bf16.xpose.msra.mxu1 %v405_v1  ;;  %5157 = vmatprep.mubr.msk.bf16.mxu1 %vm5959_vm1, %v7524_v10 }
 0x183   :  { %5167 = vmatprep.subr.bf16.mxu1 %v7524_v10 }
 0x185   :  { %5176 = vmatmul.mubr.msk.bf16.vlgmr.msra.gmra.mrb[12].mxu0 %vm250_vm2, %v6081_v51 }
 0x186   :  { %5187 = vmatprep.mubr.msk.bf16.mxu0 %vm5959_vm1, %v7524_v10 }
 0x189   :  { %5158 = vmatmul.mubr.msk.bf16.vlgmr.msra.gmra.mrb[20].mxu1 %vm250_vm2, %v6075_v48 }
 0x18a   :  { %5168 = vmatpush3.bf16.xpose.msra.mxu1 %v505_v2  ;;  %5169 = vmatprep.mubr.msk.bf16.mxu1 %vm5959_vm1, %v7524_v10  ;;  %v648_v2 = vld [vmem:[#allocation2] sm:$0xff] }
 0x18b   :  { %5179 = vmatprep.subr.bf16.mxu1 %v7524_v10 }
 0x191   :  { %5170 = vmatmul.mubr.msk.bf16.vlgmr.msra.gmra.mrb[24].mxu1 %vm250_vm2, %v6067_v29 }
 0x192   :  { %5180 = vmatpush3.bf16.xpose.msra.mxu1 %v605_v3  ;;  %5181 = vmatprep.mubr.msk.bf16.mxu1 %vm5959_vm1, %v7524_v10 }
 0x193   :  { %5191 = vmatprep.subr.bf16.mxu1 %v7524_v10 }
 0x199   :  { %5182 = vmatmul.mubr.msk.bf16.vlgmr.msra.gmra.mrb[28].mxu1 %vm250_vm2, %v6077_v49 }
 0x19a   :  { %5192 = vmatpush3.bf16.msra.mxu1 %v873_v4  ;;  %5193 = vmatprep.mubr.msk.bf16.mxu1 %vm5959_vm1, %v7524_v10  ;;  %v652_v4 = vld [vmem:[#allocation2 + $0x80] sm:$0xff] }
 0x19b   :  { %5203 = vmatprep.subr.bf16.mxu1 %v7524_v10 }
 0x244   :  { %v6152_v5 = vpop.f32.mrb[8].mxu1 }
 0x245   :  { %v5141_v6 = vpop.f32.mrb[9].mxu1  ;;  %v6203_v3 = vadd.f32 %v648_v2, %v6152_v5 }
 0x246   :  { %v6154_v7 = vpop.f32.mrb[10].mxu1  ;;  %v649_v6 = vld [vmem:[#allocation2 + $0x8] sm:$0xff] }
 0x247   :  { %v5142_v8 = vpop.f32.mrb[11].mxu1 }
 0x24c   :  { %v341_v11 = vpop.f32.mrb[12].mxu1 }
 0x24d   :  { %v6156_v13 = vadd.f32 %v650_v9, %v341_v11  ;;  %v5147_v14 = vpop.f32.mrb[13].mxu1  ;;  %v653_v11 = vld [vmem:[#allocation2 + $0x88] sm:$0xff] }
 0x24e   :  { %v344_v15 = vpop.f32.mrb[14].mxu1 }
 0x24f   :  { %v6158_v16 = vadd.f32 %v651_v12, %v344_v15  ;;  %v5148_v17 = vpop.f32.mrb[15].mxu1  ;;  %v679_v18 = vsel %vm672_vm3, %v6156_v13, -inf }
 0x250   :  { %680 = vmax.xlane.f32.xlu0 %v679_v18  ;;  %v6162_v19 = vpop.f32.mrb[8].mxu0 }
 0x251   :  { %v5165_v20 = vpop.f32.mrb[9].mxu0  ;;  %v682_v21 = vsel %vm672_vm3, %v6158_v16, -inf  ;;  %v6219_v17 = vadd.f32 %v648_v2, %v6162_v19 }
 0x252   :  { %683 = vmax.xlane.f32.xlu1 %v682_v21  ;;  %v6166_v22 = vpop.f32.mrb[10].mxu0  ;;  %v967_v21 = vpop.permute.xlu0 %966 }
 0x253   :  { %v5166_v23 = vpop.f32.mrb[11].mxu0  ;;  %v697_v20 = vsel %vm672_vm3, %v6219_v17, -inf }
 0x254   :  { %v391_v24 = vpop.f32.mrb[16].mxu1  ;;  %v6228_v23 = vpop.permute.xlu1 %1060 }
 0x255   :  { %v5153_v25 = vpop.f32.mrb[17].mxu1  ;;  %v6205_v8 = vadd.f32 %v652_v4, %v391_v24 }
 0x256   :  { %v394_v26 = vpop.f32.mrb[18].mxu1 }
 0x257   :  { %v5154_v27 = vpop.f32.mrb[19].mxu1  ;;  %v6212_v14 = vadd.f32 %v653_v11, %v394_v26  ;;  %v685_v15 = vsel %vm672_vm3, %v6205_v8, -inf  ;;  %v6239_v26 = vpop.permute.xlu0 %1295 }
 0x258   :  { %v591_v32 = vpop.f32.mrb[12].mxu0  ;;  %v6241_v27 = vpop.permute.xlu1 %1154 }
 0x259   :  { %v5177_v33 = vpop.f32.mrb[13].mxu0  ;;  %v688_v18 = vsel %vm672_vm3, %v6212_v14, -inf  ;;  %v6230_v24 = vadd.f32 %v652_v4, %v591_v32 }
 0x25a   :  { %v6168_v34 = vpop.f32.mrb[14].mxu0 }
 0x25b   :  { %v5178_v35 = vpop.f32.mrb[15].mxu0  ;;  %v6235_v25 = vadd.f32 %v653_v11, %v6168_v34  ;;  %v6245_v32 = vpop.permute.xlu0 %1397 }
 0x25c   :  { %v441_v36 = vpop.f32.mrb[20].mxu1  ;;  %v6247_v35 = vpop.permute.xlu1 %1293 }
 0x25d   :  { %v5159_v37 = vpop.f32.mrb[21].mxu1  ;;  %v6174_v53 = vadd.f32 %v654_v52, %v441_v36  ;;  %v712_v33 = vsel %vm672_vm3, %v6235_v25, -inf }
 0x25e   :  { %v444_v38 = vpop.f32.mrb[22].mxu1 }
 0x25f   :  { %v5160_v39 = vpop.f32.mrb[23].mxu1  ;;  %v6178_v56 = vadd.f32 %v655_v54, %v444_v38  ;;  %v691_v57 = vsel %vm672_vm3, %v6174_v53, -inf }
 0x261   :  { %v694_v61 = vsel %vm672_vm3, %v6178_v56, -inf }
 0x263   :  { %1395 = vrot.lane.b32.xlu1 %v6075_v48, %s5963_s8 }
 0x264   :  { %v541_v40 = vpop.f32.mrb[24].mxu1 }
 0x265   :  { %v5171_v41 = vpop.f32.mrb[25].mxu1  ;;  %v6176_v55 = vadd.f32 %v650_v9, %v541_v40  ;;  %v673_v9 = vsel %vm672_vm3, %v6203_v3, -inf }
 0x266   :  { %1499 = vrot.lane.b32.xlu0 %v6067_v29, %s5962_s7  ;;  %v544_v42 = vpop.f32.mrb[26].mxu1 }
 0x267   :  { %v5172_v43 = vpop.f32.mrb[27].mxu1  ;;  %v703_v59 = vsel %vm672_vm3, %v6176_v55, -inf  ;;  %v6186_v60 = vadd.f32 %v651_v12, %v544_v42  ;;  %v6210_v12 = vadd.f32 %v649_v6, %v6154_v7  ;;  %v6224_v7 = vadd.f32 %v649_v6, %v6166_v22 }
 0x268   :  { %v709_v22 = vsel %vm672_vm3, %v6230_v24, -inf }
 0x269   :  { %v706_v0 = vsel %vm672_vm3, %v6186_v60, -inf  ;;  %v676_v5 = vsel %vm672_vm3, %v6210_v12, -inf  ;;  %v700_v19 = vsel %vm672_vm3, %v6224_v7, -inf }
 0x26c   :  { %v641_v44 = vpop.f32.mrb[28].mxu1 }
 0x26d   :  { %v5183_v45 = vpop.f32.mrb[29].mxu1  ;;  %v6182_v58 = vadd.f32 %v654_v52, %v641_v44 }
 0x26e   :  { %v644_v46 = vpop.f32.mrb[30].mxu1 }
 0x26f   :  { %v5184_v47 = vpop.f32.mrb[31].mxu1  ;;  %v715_v62 = vsel %vm672_vm3, %v6182_v58, -inf  ;;  %v6192_v63 = vadd.f32 %v655_v54, %v644_v46 }
 0x271   :  { %v718_v1 = vsel %vm672_vm3, %v6192_v63, -inf }
 0x285   :  { %692 = vmax.xlane.f32.xlu0 %v691_v57 }
 0x287   :  { %704 = vmax.xlane.f32.xlu1 %v703_v59 }
 0x289   :  { %695 = vmax.xlane.f32.xlu0 %v694_v61 }
 0x28b   :  { %716 = vmax.xlane.f32.xlu1 %v715_v62 }
 0x28d   :  { %707 = vmax.xlane.f32.xlu0 %v706_v0 }
 0x291   :  { %719 = vmax.xlane.f32.xlu0 %v718_v1 }
 0x29c   :  { %1497 = vrot.lane.b32.xlu1 %v6067_v29, %s5963_s8 }
 0x2a7   :  { %1601 = vrot.lane.b32.xlu0 %v6077_v49, %s5962_s7 }
 0x2c0   :  { %674 = vmax.xlane.f32.xlu1 %v673_v9 }
 0x2c4   :  { %686 = vmax.xlane.f32.xlu1 %v685_v15 }
 0x2c6   :  { %677 = vmax.xlane.f32.xlu0 %v676_v5 }
 0x2c8   :  { %689 = vmax.xlane.f32.xlu1 %v688_v18 }
 0x2cc   :  { %698 = vmax.xlane.f32.xlu1 %v697_v20 }
 0x2d0   :  { %701 = vmax.xlane.f32.xlu1 %v700_v19 }
 0x2d4   :  { %710 = vmax.xlane.f32.xlu1 %v709_v22 }
 0x2d8   :  { %713 = vmax.xlane.f32.xlu1 %v712_v33 }
 0x2dc   :  { %1599 = vrot.lane.b32.xlu0 %v6077_v49, %s5963_s8 }
 0x2dd   :  { %v681_v34 = vpop.xlane.xlu0 %680 }
 0x2de   :  { %v723_v36 = vsub.f32 %v6156_v13, %v681_v34 }
 0x2df   :  { %v684_v37 = vpop.xlane.xlu1 %683 }
 0x2e0   :  { %v741_v38 = vmul.f32 1.442695, %v723_v36  ;;  %v724_v39 = vsub.f32 %v6158_v16, %v684_v37  ;;  %825 = vrot.lane.b32.xlu0 %v6069_v30, %s5961_s2 }
 0x2e1   :  { %v1500_v42 = vpop.permute.xlu0 %1499 }
 0x2e2   :  { %v743_v40 = vmul.f32 1.442695, %v724_v39  ;;  %5675 = vpow2.f32 %v741_v38  ;;  %v1505_v19 = vsel %vm250_vm2, %v1500_v42, 0 }
 0x2e3   :  { %v1396_v45 = vpop.permute.xlu1 %1395 }
 0x2e4   :  { %5677 = vpow2.f32 %v743_v40  ;;  %1013 = vrot.lane.b32.xlu0 %v6071_v31, %s5961_s2 }
 0x2e8   :  { %1107 = vrot.lane.b32.xlu0 %v6081_v51, %s5961_s2 }
 0x2e9   :  { %919 = vrot.lane.b32.xlu1 %v6079_v50, %s5961_s2 }
 0x2ec   :  { %1244 = vrot.lane.b32.xlu0 %v6069_v30, %s5962_s7  ;;  %v6263_v13 = vpop.eup %5675 }
 0x2ed   :  { %1344 = vrot.lane.b32.xlu1 %v6079_v50, %s5963_s8 }
 0x2ee   :  { %v6267_v16 = vpop.eup %5677 }
 0x2ef   :  { %v818_v41 = vpack.c.bf16 %v6267_v16, %v6263_v13 }
 0x2f0   :  { %1242 = vrot.lane.b32.xlu0 %v6069_v30, %s5963_s8 }
 0x2f1   :  { %1446 = vrot.lane.b32.xlu1 %v6071_v31, %s5963_s8  ;;  %5194 = vmatmul.mubr.msk.bf16.vlgmr.msra.gmra.mrb[32].mxu1 %vm672_vm3, %v818_v41 }
 0x2f2   :  { %5204 = vmatpush3.bf16.msra.mxu1 %v967_v21  ;;  %5205 = vmatprep.mubr.msk.bf16.mxu1 %vm5959_vm1, %v7524_v10  ;;  %v1301_v21 = vsel %vm250_vm2, %v6239_v26, 0 }
 0x2f3   :  { %5215 = vmatprep.subr.bf16.mxu1 %v7524_v10 }
 0x2f4   :  { %1346 = vrot.lane.b32.xlu0 %v6079_v50, %s5962_s7 }
 0x2f5   :  { %1548 = vrot.lane.b32.xlu1 %v6081_v51, %s5963_s8 }
 0x2f8   :  { %1448 = vrot.lane.b32.xlu0 %v6071_v31, %s5962_s7 }
 0x2f9   :  { %1874 = vrot.lane.b32.xlu1 %v6065_v28, %s5964_s9 }
 0x2fc   :  { %1550 = vrot.lane.b32.xlu0 %v6081_v51, %s5962_s7 }
 0x2fd   :  { %2062 = vrot.lane.b32.xlu1 %v6067_v29, %s5964_s9 }
 0x300   :  { %1968 = vrot.lane.b32.xlu0 %v6075_v48, %s5964_s9 }
 0x301   :  { %2156 = vrot.lane.b32.xlu1 %v6077_v49, %s5964_s9 }
 0x304   :  { %2496 = vrot.lane.b32.xlu0 %v6069_v30, %s5965_s10 }
 0x305   :  { %2494 = vrot.lane.b32.xlu1 %v6069_v30, %s5966_s11 }
 0x308   :  { %2547 = vrot.lane.b32.xlu0 %v6065_v28, %s5965_s10 }
 0x309   :  { %2545 = vrot.lane.b32.xlu1 %v6065_v28, %s5966_s11 }
 0x30c   :  { %2598 = vrot.lane.b32.xlu0 %v6079_v50, %s5965_s10 }
 0x30d   :  { %2596 = vrot.lane.b32.xlu1 %v6079_v50, %s5966_s11 }
 0x310   :  { %2649 = vrot.lane.b32.xlu0 %v6075_v48, %s5965_s10 }
 0x311   :  { %2700 = vrot.lane.b32.xlu1 %v6071_v31, %s5965_s10 }
 0x312   :  { %v693_v43 = vpop.xlane.xlu0 %692 }
 0x313   :  { %v727_v44 = vsub.f32 %v6174_v53, %v693_v43 }
 0x314   :  { %2647 = vrot.lane.b32.xlu0 %v6075_v48, %s5966_s11  ;;  %v705_v54 = vpop.xlane.xlu1 %704 }
 0x315   :  { %v749_v46 = vmul.f32 1.442695, %v727_v44  ;;  %v731_v61 = vsub.f32 %v6176_v55, %v705_v54 }
 0x316   :  { %v696_v47 = vpop.xlane.xlu0 %695 }
 0x317   :  { %v728_v52 = vsub.f32 %v6178_v56, %v696_v47  ;;  %5679 = vpow2.f32 %v749_v46  ;;  %v757_v53 = vmul.f32 1.442695, %v731_v61 }
 0x318   :  { %v717_v2 = vpop.xlane.xlu1 %716 }
 0x319   :  { %v751_v57 = vmul.f32 1.442695, %v728_v52  ;;  %v735_v6 = vsub.f32 %v6182_v58, %v717_v2 }
 0x31a   :  { %v708_v59 = vpop.xlane.xlu0 %707 }
 0x31b   :  { %5681 = vpow2.f32 %v751_v57  ;;  %v732_v62 = vsub.f32 %v6186_v60, %v708_v59  ;;  %v765_v15 = vmul.f32 1.442695, %v735_v6 }
 0x31c   :  { %v1498_v22 = vpop.permute.xlu1 %1497 }
 0x31d   :  { %v759_v0 = vmul.f32 1.442695, %v732_v62 }
 0x31e   :  { %v720_v1 = vpop.xlane.xlu0 %719 }
 0x31f   :  { %5683 = vpow2.f32 %v759_v0  ;;  %v736_v4 = vsub.f32 %v6192_v63, %v720_v1 }
 0x320   :  { %5685 = vpow2.f32 %v757_v53 }
 0x321   :  { %v6319_v56 = vpop.eup %5679  ;;  %v767_v11 = vmul.f32 1.442695, %v736_v4 }
 0x323   :  { %5687 = vpow2.f32 %v767_v11 }
 0x324   :  { %5689 = vpow2.f32 %v765_v15 }
 0x325   :  { %v6321_v9 = vpop.eup %5681 }
 0x326   :  { %v820_v55 = vpack.c.bf16 %v6321_v9, %v6319_v56 }
 0x328   :  { %5206 = vmatmul.mubr.msk.bf16.vlgmr.msra.gmra.mrb[36].mxu1 %vm672_vm3, %v820_v55 }
 0x329   :  { %5216 = vmatpush3.bf16.msra.mxu1 %v6228_v23  ;;  %5217 = vmatprep.mubr.msk.bf16.mxu1 %vm5959_vm1, %v7524_v10  ;;  %v6330_v58 = vpop.eup %5683  ;;  %v1403_v23 = vsel %vm250_vm2, %v6245_v32, 0 }
 0x32a   :  { %5227 = vmatprep.subr.bf16.mxu1 %v7524_v10  ;;  %v6332_v60 = vpop.eup %5685 }
 0x32b   :  { %v822_v63 = vpack.c.bf16 %v6330_v58, %v6332_v60 }
 0x32d   :  { %v6341_v5 = vpop.eup %5687 }
 0x32e   :  { %v6343_v18 = vpop.eup %5689 }
 0x32f   :  { %v824_v20 = vpack.c.bf16 %v6341_v5, %v6343_v18 }
 0x330   :  { %5218 = vmatmul.mubr.msk.bf16.vlgmr.msra.gmra.mrb[40].mxu1 %vm672_vm3, %v822_v63 }
 0x331   :  { %5228 = vmatpush3.bf16.msra.mxu1 %v6241_v27  ;;  %5229 = vmatprep.mubr.msk.bf16.mxu1 %vm5959_vm1, %v7524_v10  ;;  %v1602_v27 = vpop.permute.xlu0 %1601 }
 0x332   :  { %5239 = vmatprep.subr.bf16.mxu1 %v7524_v10  ;;  %v1607_v32 = vsel %vm250_vm2, %v1602_v27, 0 }
 0x338   :  { %5230 = vmatmul.mubr.msk.bf16.vlgmr.msra.gmra.mrb[44].mxu1 %vm672_vm3, %v824_v20 }
 0x339   :  { %5241 = vmatprep.mubr.msk.bf16.mxu1 %vm5959_vm1, %v7524_v10 }
 0x33a   :  { %5240 = vmatpush3.bf16.xpose.msra.mxu1 %v1301_v21 }
 0x33b   :  { %5251 = vmatprep.subr.bf16.mxu1 %v7524_v10 }
 0x341   :  { %5242 = vmatmul.mubr.msk.bf16.vlgmr.msra.gmra.mrb[48].mxu1 %vm250_vm2, %v6247_v35 }
 0x342   :  { %5252 = vmatpush3.bf16.xpose.msra.mxu1 %v1403_v23  ;;  %5253 = vmatprep.mubr.msk.bf16.mxu1 %vm5959_vm1, %v7524_v10 }
 0x343   :  { %5263 = vmatprep.subr.bf16.mxu1 %v7524_v10 }
 0x349   :  { %5254 = vmatmul.mubr.msk.bf16.vlgmr.msra.gmra.mrb[52].mxu1 %vm250_vm2, %v1396_v45 }
 0x34a   :  { %5264 = vmatpush3.bf16.xpose.msra.mxu1 %v1505_v19  ;;  %5265 = vmatprep.mubr.msk.bf16.mxu1 %vm5959_vm1, %v7524_v10 }
 0x34b   :  { %5275 = vmatprep.subr.bf16.mxu1 %v7524_v10 }
 0x34d   :  { %v675_v26 = vpop.xlane.xlu1 %674 }
 0x34e   :  { %v721_v33 = vsub.f32 %v6203_v3, %v675_v26 }
 0x350   :  { %v737_v34 = vmul.f32 1.442695, %v721_v33 }
 0x351   :  { %5266 = vmatmul.mubr.msk.bf16.vlgmr.msra.gmra.mrb[56].mxu1 %vm250_vm2, %v1498_v22  ;;  %v687_v35 = vpop.xlane.xlu1 %686 }
 0x352   :  { %5276 = vmatpush3.bf16.xpose.msra.mxu1 %v1607_v32  ;;  %5277 = vmatprep.mubr.msk.bf16.mxu1 %vm5959_vm1, %v7524_v10  ;;  %5691 = vpow2.f32 %v737_v34  ;;  %v725_v41 = vsub.f32 %v6205_v8, %v687_v35 }
 0x353   :  { %v678_v36 = vpop.xlane.xlu0 %677  ;;  %5287 = vmatprep.subr.bf16.mxu1 %v7524_v10 }
 0x354   :  { %v722_v37 = vsub.f32 %v6210_v12, %v678_v36  ;;  %v745_v45 = vmul.f32 1.442695, %v725_v41 }
 0x355   :  { %v690_v38 = vpop.xlane.xlu1 %689 }
 0x356   :  { %v739_v39 = vmul.f32 1.442695, %v722_v37  ;;  %v726_v40 = vsub.f32 %v6212_v14, %v690_v38 }
 0x357   :  { %v1600_v3 = vpop.permute.xlu0 %1599 }
 0x358   :  { %5693 = vpow2.f32 %v739_v39  ;;  %v747_v43 = vmul.f32 1.442695, %v726_v40 }
 0x359   :  { %5278 = vmatmul.mubr.msk.bf16.vlgmr.msra.gmra.mrb[60].mxu1 %vm250_vm2, %v1600_v3  ;;  %v699_v42 = vpop.xlane.xlu1 %698 }
 0x35a   :  { %5289 = vmatprep.mubr.msk.bf16.mxu1 %vm5959_vm1, %v7524_v10  ;;  %5695 = vpow2.f32 %v747_v43  ;;  %v729_v8 = vsub.f32 %v6219_v17, %v699_v42 }
 0x35b   :  { %v826_v44 = vpop.permute.xlu0 %825  ;;  %5697 = vpow2.f32 %v745_v45 }
 0x35c   :  { %5186 = vmatpush3.bf16.msra.mxu0 %v826_v44  ;;  %v6380_v46 = vpop.eup %5691  ;;  %v753_v59 = vmul.f32 1.442695, %v729_v8 }
 0x35d   :  { %v702_v12 = vpop.xlane.xlu1 %701  ;;  %5197 = vmatprep.subr.bf16.mxu0 %v7524_v10 }
 0x35e   :  { %v730_v14 = vsub.f32 %v6224_v7, %v702_v12 }
 0x35f   :  { %v1014_v2 = vpop.permute.xlu0 %1013 }
 0x360   :  { %v755_v54 = vmul.f32 1.442695, %v730_v14 }
 0x361   :  { %v711_v47 = vpop.xlane.xlu1 %710 }
 0x362   :  { %v6382_v52 = vpop.eup %5693  ;;  %5699 = vpow2.f32 %v755_v54  ;;  %v733_v7 = vsub.f32 %v6230_v24, %v711_v47 }
 0x363   :  { %v817_v57 = vpack.c.bf16 %v6382_v52, %v6380_v46  ;;  %5701 = vpow2.f32 %v753_v59  ;;  %v1108_v11 = vpop.permute.xlu0 %1107 }
 0x364   :  { %v6390_v17 = vpop.eup %5695 }
 0x365   :  { %v714_v61 = vpop.xlane.xlu1 %713  ;;  %5188 = vmatmul.mubr.msk.bf16.vlgmr.msra.gmra.mrb[16].mxu0 %vm672_vm3, %v817_v57  ;;  %v6393_v1 = vpop.eup %5697 }
 0x366   :  { %v734_v62 = vsub.f32 %v6235_v25, %v714_v61  ;;  %5199 = vmatprep.mubr.msk.bf16.mxu0 %vm5959_vm1, %v7524_v10  ;;  %v819_v4 = vpack.c.bf16 %v6390_v17, %v6393_v1  ;;  %v761_v25 = vmul.f32 1.442695, %v733_v7 }
 0x367   :  { %v1245_v21 = vpop.permute.xlu0 %1244 }
 0x368   :  { %v763_v53 = vmul.f32 1.442695, %v734_v62  ;;  %v1250_v33 = vsel %vm250_vm2, %v1245_v21, 0 }
 0x369   :  { %v920_v0 = vpop.permute.xlu1 %919 }
 0x36a   :  { %5198 = vmatpush3.bf16.msra.mxu0 %v920_v0  ;;  %5703 = vpow2.f32 %v763_v53 }
 0x36b   :  { %5209 = vmatprep.subr.bf16.mxu0 %v7524_v10  ;;  %5705 = vpow2.f32 %v761_v25  ;;  %v1243_v27 = vpop.permute.xlu0 %1242 }
 0x36c   :  { %v6402_v24 = vpop.eup %5699 }
 0x36d   :  { %v1345_v6 = vpop.permute.xlu1 %1344  ;;  %5200 = vmatmul.mubr.msk.bf16.vlgmr.msra.gmra.mrb[20].mxu0 %vm672_vm3, %v819_v4  ;;  %v6404_v15 = vpop.eup %5701 }
 0x36e   :  { %5210 = vmatpush3.bf16.msra.mxu0 %v1014_v2  ;;  %5211 = vmatprep.mubr.msk.bf16.mxu0 %vm5959_vm1, %v7524_v10  ;;  %v821_v63 = vpack.c.bf16 %v6402_v24, %v6404_v15 }
 0x36f   :  { %5221 = vmatprep.subr.bf16.mxu0 %v7524_v10  ;;  %v1347_v32 = vpop.permute.xlu0 %1346 }
 0x370   :  { %v1352_v35 = vsel %vm250_vm2, %v1347_v32, 0 }
 0x371   :  { %v1447_v55 = vpop.permute.xlu1 %1446 }
 0x373   :  { %v1449_v34 = vpop.permute.xlu0 %1448 }
 0x374   :  { %v6412_v23 = vpop.eup %5703  ;;  %v1454_v36 = vsel %vm250_vm2, %v1449_v34, 0 }
 0x375   :  { %v1549_v20 = vpop.permute.xlu1 %1548  ;;  %5212 = vmatmul.mubr.msk.bf16.vlgmr.msra.gmra.mrb[24].mxu0 %vm672_vm3, %v821_v63  ;;  %v6414_v22 = vpop.eup %5705 }
 0x376   :  { %5222 = vmatpush3.bf16.msra.mxu0 %v1108_v11  ;;  %5223 = vmatprep.mubr.msk.bf16.mxu0 %vm5959_vm1, %v7524_v10  ;;  %v823_v26 = vpack.c.bf16 %v6412_v23, %v6414_v22 }
 0x377   :  { %5233 = vmatprep.subr.bf16.mxu0 %v7524_v10  ;;  %v1551_v37 = vpop.permute.xlu0 %1550 }
 0x378   :  { %v1556_v38 = vsel %vm250_vm2, %v1551_v37, 0 }
 0x379   :  { %v1875_v19 = vpop.permute.xlu1 %1874 }
 0x37a   :  { %5288 = vmatpush3.bf16.msra.mxu1 %v1875_v19 }
 0x37b   :  { %5299 = vmatprep.subr.bf16.mxu1 %v7524_v10 }
 0x37d   :  { %5224 = vmatmul.mubr.msk.bf16.vlgmr.msra.gmra.mrb[28].mxu0 %vm672_vm3, %v823_v26 }
 0x37e   :  { %5235 = vmatprep.mubr.msk.bf16.mxu0 %vm5959_vm1, %v7524_v10 }
 0x37f   :  { %5234 = vmatpush3.bf16.xpose.msra.mxu0 %v1250_v33 }
 0x380   :  { %5245 = vmatprep.subr.bf16.mxu0 %v7524_v10 }
 0x386   :  { %5236 = vmatmul.mubr.msk.bf16.vlgmr.msra.gmra.mrb[32].mxu0 %vm250_vm2, %v1243_v27 }
 0x387   :  { %5246 = vmatpush3.bf16.xpose.msra.mxu0 %v1352_v35  ;;  %5247 = vmatprep.mubr.msk.bf16.mxu0 %vm5959_vm1, %v7524_v10 }
 0x388   :  { %5257 = vmatprep.subr.bf16.mxu0 %v7524_v10 }
 0x38e   :  { %5248 = vmatmul.mubr.msk.bf16.vlgmr.msra.gmra.mrb[36].mxu0 %vm250_vm2, %v1345_v6 }
 0x38f   :  { %5258 = vmatpush3.bf16.xpose.msra.mxu0 %v1454_v36  ;;  %5259 = vmatprep.mubr.msk.bf16.mxu0 %vm5959_vm1, %v7524_v10 }
 0x390   :  { %5269 = vmatprep.subr.bf16.mxu0 %v7524_v10 }
 0x396   :  { %5260 = vmatmul.mubr.msk.bf16.vlgmr.msra.gmra.mrb[40].mxu0 %vm250_vm2, %v1447_v55 }
 0x397   :  { %5270 = vmatpush3.bf16.xpose.msra.mxu0 %v1556_v38  ;;  %5271 = vmatprep.mubr.msk.bf16.mxu0 %vm5959_vm1, %v7524_v10 }
 0x398   :  { %5281 = vmatprep.subr.bf16.mxu0 %v7524_v10 }
 0x39e   :  { %5272 = vmatmul.mubr.msk.bf16.vlgmr.msra.gmra.mrb[44].mxu0 %vm250_vm2, %v1549_v20 }
 0x39f   :  { %5283 = vmatprep.mubr.msk.bf16.mxu0 %vm5959_vm1, %v7524_v10 }
 0x3c4   :  { %v6442_v39 = vpop.f32.mrb[32].mxu1 }
 0x3c5   :  { %7538 = vst [vmem:[#allocation7_spill] sm:$0xff] %v6442_v39  ;;  %v5195_v40 = vpop.f32.mrb[33].mxu1 }
 0x3c6   :  { %v6444_v3 = vpop.f32.mrb[34].mxu1 }
 0x3c7   :  { %7539 = vst [vmem:[#allocation8_spill] sm:$0xff] %v6444_v3  ;;  %v5196_v41 = vpop.f32.mrb[35].mxu1 }
 0x3fb   :  { %v6446_v42 = vpop.f32.mrb[36].mxu1 }
 0x3fc   :  { %7540 = vst [vmem:[#allocation9_spill] sm:$0xff] %v6446_v42  ;;  %v5207_v43 = vpop.f32.mrb[37].mxu1 }
 0x3fd   :  { %v6448_v44 = vpop.f32.mrb[38].mxu1 }
 0x3fe   :  { %7541 = vst [vmem:[#allocation10_spill] sm:$0xff] %v6448_v44  ;;  %v5208_v45 = vpop.f32.mrb[39].mxu1 }
 0x403   :  { %v6450_v12 = vpop.f32.mrb[40].mxu1 }
 0x404   :  { %7542 = vst [vmem:[#allocation11_spill] sm:$0xff] %v6450_v12  ;;  %v5219_v14 = vpop.f32.mrb[41].mxu1 }
 0x405   :  { %v6452_v8 = vpop.f32.mrb[42].mxu1 }
 0x406   :  { %7543 = vst [vmem:[#allocation12_spill] sm:$0xff] %v6452_v8  ;;  %v5220_v47 = vpop.f32.mrb[43].mxu1 }
 0x40b   :  { %v6454_v54 = vpop.f32.mrb[44].mxu1 }
 0x40c   :  { %7544 = vst [vmem:[#allocation13_spill] sm:$0xff] %v6454_v54  ;;  %v5231_v57 = vpop.f32.mrb[45].mxu1 }
 0x40d   :  { %v6456_v59 = vpop.f32.mrb[46].mxu1 }
 0x40e   :  { %7545 = vst [vmem:[#allocation14_spill] sm:$0xff] %v6456_v59  ;;  %v5232_v61 = vpop.f32.mrb[47].mxu1 }
 0x414   :  { %v1337_v62 = vpop.f32.mrb[48].mxu1 }
 0x415   :  { %v5243_v7 = vpop.f32.mrb[49].mxu1 }
 0x416   :  { %v1340_v0 = vpop.f32.mrb[50].mxu1 }
 0x417   :  { %v5244_v53 = vpop.f32.mrb[51].mxu1 }
 0x418   :  { %v1651_v53 = vld [vmem:[#allocation2 + $0x10] sm:$0xff] }
 0x41c   :  { %v1439_v2 = vpop.f32.mrb[52].mxu1 }
 0x41d   :  { %v5255_v4 = vpop.f32.mrb[53].mxu1 }
 0x41e   :  { %v6458_v25 = vpop.f32.mrb[54].mxu1 }
 0x41f   :  { %v5256_v6 = vpop.f32.mrb[55].mxu1 }
 0x420   :  { %v1652_v6 = vld [vmem:[#allocation2 + $0x18] sm:$0xff] }
 0x424   :  { %v1541_v11 = vpop.f32.mrb[56].mxu1 }
 0x425   :  { %v5267_v55 = vpop.f32.mrb[57].mxu1 }
 0x426   :  { %v6460_v63 = vpop.f32.mrb[58].mxu1 }
 0x427   :  { %v5268_v20 = vpop.f32.mrb[59].mxu1 }
 0x42c   :  { %v6462_v21 = vpop.f32.mrb[60].mxu1 }
 0x42d   :  { %v5279_v19 = vpop.f32.mrb[61].mxu1 }
 0x42e   :  { %v6464_v26 = vpop.f32.mrb[62].mxu1  ;;  %v1653_v19 = vld [vmem:[#allocation2 + $0x50] sm:$0xff] }
 0x42f   :  { %v5280_v27 = vpop.f32.mrb[63].mxu1 }
 0x438   :  { %v6466_v33 = vpop.f32.mrb[16].mxu0 }
 0x439   :  { %7546 = vst [vmem:[#allocation15_spill] sm:$0xff] %v6466_v33  ;;  %v5189_v32 = vpop.f32.mrb[17].mxu0 }
 0x43a   :  { %v6468_v35 = vpop.f32.mrb[18].mxu0 }
 0x43b   :  { %7547 = vst [vmem:[#allocation16_spill] sm:$0xff] %v6468_v35  ;;  %v5190_v34 = vpop.f32.mrb[19].mxu0 }
 0x440   :  { %v6470_v36 = vpop.f32.mrb[20].mxu0 }
 0x441   :  { %7548 = vst [vmem:[#allocation17_spill] sm:$0xff] %v6470_v36  ;;  %v5201_v37 = vpop.f32.mrb[21].mxu0 }
 0x442   :  { %v6472_v38 = vpop.f32.mrb[22].mxu0 }
 0x443   :  { %7549 = vst [vmem:[#allocation18_spill] sm:$0xff] %v6472_v38  ;;  %v5202_v40 = vpop.f32.mrb[23].mxu0 }
 0x444   :  { %v6488_v40 = vadd.f32 %v1653_v19, %v1337_v62 }
 0x448   :  { %v6474_v41 = vpop.f32.mrb[24].mxu0 }
 0x449   :  { %7550 = vst [vmem:[#allocation19_spill] sm:$0xff] %v6474_v41  ;;  %v5213_v43 = vpop.f32.mrb[25].mxu0 }
 0x44a   :  { %v6476_v45 = vpop.f32.mrb[26].mxu0 }
 0x44b   :  { %7551 = vst [vmem:[#allocation20_spill] sm:$0xff] %v6476_v45  ;;  %v5214_v14 = vpop.f32.mrb[27].mxu0 }
 0x44c   :  { %v1655_v14 = vld [vmem:[#allocation2 + $0x90] sm:$0xff] }
 0x450   :  { %v6478_v47 = vpop.f32.mrb[28].mxu0 }
 0x451   :  { %7552 = vst [vmem:[#allocation21_spill] sm:$0xff] %v6478_v47  ;;  %v5225_v57 = vpop.f32.mrb[29].mxu0  ;;  %v6506_v47 = vadd.f32 %v1653_v19, %v1541_v11 }
 0x452   :  { %v6480_v61 = vpop.f32.mrb[30].mxu0  ;;  %v1654_v57 = vld [vmem:[#allocation2 + $0x58] sm:$0xff] }
 0x453   :  { %7553 = vst [vmem:[#allocation22_spill] sm:$0xff] %v6480_v61  ;;  %v5226_v7 = vpop.f32.mrb[31].mxu0  ;;  %v1705_v19 = vsel %vm672_vm3, %v6506_v47, -inf }
 0x459   :  { %v1286_v4 = vpop.f32.mrb[32].mxu0 }
 0x45a   :  { %v6482_v55 = vadd.f32 %v1651_v53, %v1286_v4  ;;  %v5237_v20 = vpop.f32.mrb[33].mxu0  ;;  %v1656_v4 = vld [vmem:[#allocation2 + $0x98] sm:$0xff] }
 0x45b   :  { %v1289_v27 = vpop.f32.mrb[34].mxu0 }
 0x45c   :  { %v6484_v32 = vadd.f32 %v1652_v6, %v1289_v27  ;;  %v5238_v34 = vpop.f32.mrb[35].mxu0  ;;  %v1675_v37 = vsel %vm672_vm3, %v6482_v55, -inf  ;;  %v1681_v27 = vsel %vm672_vm3, %v6488_v40, -inf }
 0x45d   :  { %1676 = vmax.xlane.f32.xlu1 %v1675_v37  ;;  %v1657_v34 = vld [vmem:[#allocation2 + $0xd0] sm:$0xff]  ;;  %v6496_v37 = vadd.f32 %v1654_v57, %v1340_v0 }
 0x45e   :  { %v1678_v43 = vsel %vm672_vm3, %v6484_v32, -inf  ;;  %v6502_v61 = vadd.f32 %v1657_v34, %v1439_v2 }
 0x45f   :  { %1679 = vmax.xlane.f32.xlu0 %v1678_v43  ;;  %v1684_v0 = vsel %vm672_vm3, %v6496_v37, -inf }
 0x460   :  { %v1693_v2 = vsel %vm672_vm3, %v6502_v61, -inf }
 0x461   :  { %v1388_v7 = vpop.f32.mrb[36].mxu0 }
 0x462   :  { %v6492_v20 = vadd.f32 %v1655_v14, %v1388_v7  ;;  %v5249_v10 = vpop.f32.mrb[37].mxu0  ;;  %v1658_v7 = vld [vmem:[#allocation2 + $0xd8] sm:$0xff] }
 0x463   :  { %1682 = vmax.xlane.f32.xlu0 %v1681_v27  ;;  %v1391_v59 = vpop.f32.mrb[38].mxu0 }
 0x464   :  { %v6498_v62 = vadd.f32 %v1656_v4, %v1391_v59  ;;  %v5250_v54 = vpop.f32.mrb[39].mxu0  ;;  %v1687_v43 = vsel %vm672_vm3, %v6492_v20, -inf }
 0x465   :  { %1688 = vmax.xlane.f32.xlu1 %v1687_v43  ;;  %v6511_v54 = vadd.f32 %v1658_v7, %v6458_v25 }
 0x466   :  { %v1690_v10 = vsel %vm672_vm3, %v6498_v62, -inf }
 0x467   :  { %1691 = vmax.xlane.f32.xlu0 %v1690_v10  ;;  %v6522_v10 = vadd.f32 %v1654_v57, %v6460_v63  ;;  %v1696_v25 = vsel %vm672_vm3, %v6511_v54, -inf  ;;  %v6537_v63 = vadd.f32 %v1657_v34, %v6462_v21  ;;  %v6542_v57 = vadd.f32 %v1658_v7, %v6464_v26  ;;  %v1969_v21 = vpop.permute.xlu0 %1968  ;;  %v2063_v26 = vpop.permute.xlu1 %2062 }
 0x469   :  { %1685 = vmax.xlane.f32.xlu1 %v1684_v0  ;;  %v1490_v59 = vpop.f32.mrb[40].mxu0 }
 0x46a   :  { %v6513_v27 = vadd.f32 %v1651_v53, %v1490_v59  ;;  %v5261_v43 = vpop.f32.mrb[41].mxu0 }
 0x46b   :  { %1694 = vmax.xlane.f32.xlu0 %v1693_v2  ;;  %v1493_v8 = vpop.f32.mrb[42].mxu0  ;;  %v6554_v34 = vpop.permute.xlu0 %2496 }
 0x46c   :  { %v6517_v12 = vadd.f32 %v1652_v6, %v1493_v8  ;;  %v5262_v11 = vpop.f32.mrb[43].mxu0  ;;  %v1708_v8 = vsel %vm672_vm3, %v6522_v10, -inf  ;;  %v6556_v7 = vpop.permute.xlu1 %2156 }
 0x46d   :  { %1706 = vmax.xlane.f32.xlu1 %v1705_v19  ;;  %v1720_v11 = vsel %vm672_vm3, %v6542_v57, -inf }
 0x46e   :  { %v1702_v19 = vsel %vm672_vm3, %v6517_v12, -inf }
 0x46f   :  { %1697 = vmax.xlane.f32.xlu0 %v1696_v25  ;;  %v6558_v25 = vpop.permute.xlu0 %2547 }
 0x471   :  { %v1592_v53 = vpop.f32.mrb[44].mxu0 }
 0x472   :  { %v6526_v0 = vadd.f32 %v1655_v14, %v1592_v53  ;;  %v5273_v59 = vpop.f32.mrb[45].mxu0  ;;  %v1699_v14 = vsel %vm672_vm3, %v6513_v27, -inf  ;;  %v6560_v53 = vpop.permute.xlu1 %2494 }
 0x473   :  { %1709 = vmax.xlane.f32.xlu0 %v1708_v8  ;;  %v1595_v6 = vpop.f32.mrb[46].mxu0  ;;  %v6564_v8 = vpop.permute.xlu0 %2598 }
 0x474   :  { %v6530_v43 = vadd.f32 %v1656_v4, %v1595_v6  ;;  %v5274_v2 = vpop.f32.mrb[47].mxu0  ;;  %v1717_v4 = vsel %vm672_vm3, %v6537_v63, -inf  ;;  %v1711_v59 = vsel %vm672_vm3, %v6526_v0, -inf }
 0x476   :  { %v6566_v6 = vpop.permute.xlu1 %2545  ;;  %v1714_v2 = vsel %vm672_vm3, %v6530_v43, -inf }
 0x47e   :  { %2751 = vrot.lane.b32.xlu1 %v6067_v29, %s5965_s10 }
 0x489   :  { %2698 = vrot.lane.b32.xlu0 %v6071_v31, %s5966_s11 }
 0x4a2   :  { %1700 = vmax.xlane.f32.xlu1 %v1699_v14  ;;  %v6570_v14 = vpop.permute.xlu0 %2649 }
 0x4a6   :  { %1718 = vmax.xlane.f32.xlu1 %v1717_v4  ;;  %v6572_v4 = vpop.permute.xlu1 %2596 }
 0x4a8   :  { %1721 = vmax.xlane.f32.xlu0 %v1720_v11  ;;  %v6574_v11 = vpop.permute.xlu0 %2647 }
 0x4ac   :  { %1703 = vmax.xlane.f32.xlu0 %v1702_v19  ;;  %v6576_v19 = vpop.permute.xlu1 %2700 }
 0x4b7   :  { %2802 = vrot.lane.b32.xlu1 %v6081_v51, %s5965_s10 }
 0x4c2   :  { %2749 = vrot.lane.b32.xlu0 %v6067_v29, %s5966_s11 }
 0x4db   :  { %1712 = vmax.xlane.f32.xlu1 %v1711_v59 }
 0x4e1   :  { %1715 = vmax.xlane.f32.xlu0 %v1714_v2 }
 0x4ea   :  { %v6582_v45 = vpop.xlane.xlu1 %1676 }
 0x4ec   :  { %2853 = vrot.lane.b32.xlu1 %v6077_v49, %s5965_s10  ;;  %v6580_v59 = vpop.xlane.xlu0 %1679 }
 0x4f0   :  { %1827 = vrot.lane.b32.xlu1 %v6069_v30, %s5964_s9  ;;  %v1683_v41 = vpop.xlane.xlu0 %1682 }
 0x4f1   :  { %v1725_v2 = vsub.f32 %v6488_v40, %v1683_v41 }
 0x4f2   :  { %v6587_v44 = vpop.xlane.xlu1 %1688 }
 0x4f3   :  { %v1743_v38 = vmul.f32 1.442695, %v1725_v2 }
 0x4f4   :  { %1921 = vrot.lane.b32.xlu1 %v6079_v50, %s5964_s9  ;;  %v6591_v42 = vpop.xlane.xlu0 %1691 }
 0x4f5   :  { %5707 = vpow2.f32 %v1743_v38 }
 0x4f6   :  { %v1686_v36 = vpop.xlane.xlu1 %1685 }
 0x4f7   :  { %v1726_v3 = vsub.f32 %v6496_v37, %v1686_v36  ;;  %2800 = vrot.lane.b32.xlu0 %v6081_v51, %s5966_s11 }
 0x4f8   :  { %2109 = vrot.lane.b32.xlu1 %v6081_v51, %s5964_s9  ;;  %v1695_v39 = vpop.xlane.xlu0 %1694 }
 0x4f9   :  { %v1745_v35 = vmul.f32 1.442695, %v1726_v3  ;;  %v1729_v41 = vsub.f32 %v6502_v61, %v1695_v39 }
 0x4fa   :  { %v1707_v37 = vpop.xlane.xlu1 %1706 }
 0x4fb   :  { %5709 = vpow2.f32 %v1745_v35  ;;  %2851 = vrot.lane.b32.xlu0 %v6077_v49, %s5966_s11  ;;  %v1751_v33 = vmul.f32 1.442695, %v1729_v41  ;;  %v1733_v35 = vsub.f32 %v6506_v47, %v1707_v37  ;;  %v775_v37 = vsel %vm672_vm3, %v6263_v13, 0.0 }
 0x4fc   :  { %v1698_v40 = vpop.xlane.xlu0 %1697  ;;  %v790_v13 = vsel %vm672_vm3, %v6321_v9, 0.0  ;;  %v802_v9 = vsel %vm672_vm3, %v6330_v58, 0.0 }
 0x4fd   :  { %v1730_v2 = vsub.f32 %v6511_v54, %v1698_v40  ;;  %v1759_v41 = vmul.f32 1.442695, %v1733_v35  ;;  %v7554_v40 = vmov 0.0  }
 0x4fe   :  { %v6653_v35 = vpop.permute.xlu1 %2751 }
 0x4ff   :  { %v1753_v36 = vmul.f32 1.442695, %v1730_v2  ;;  %2015 = vrot.lane.b32.xlu0 %v6071_v31, %s5964_s9  ;;  %v6606_v39 = vpop.eup %5707 }
 0x500   :  { %v1710_v29 = vpop.xlane.xlu0 %1709 }
 0x501   :  { %5711 = vpow2.f32 %v1753_v36  ;;  %v1734_v3 = vsub.f32 %v6522_v10, %v1710_v29  ;;  %v772_v36 = vsel %vm672_vm3, %v6382_v52, 0.0  ;;  %v787_v52 = vsel %vm672_vm3, %v6319_v56, 0.0 }
 0x502   :  { %5713 = vpow2.f32 %v1751_v33  ;;  %v799_v56 = vsel %vm672_vm3, %v6332_v60, 0.0 }
 0x503   :  { %v1761_v61 = vmul.f32 1.442695, %v1734_v3  ;;  %v781_v3 = vsel %vm672_vm3, %v6393_v1, 0.0  ;;  %v796_v1 = vsel %vm672_vm3, %v6402_v24, 0.0 }
 0x505   :  { %v6608_v38 = vpop.eup %5709  ;;  %5715 = vpow2.f32 %v1761_v61  ;;  %v6663_v61 = vpop.permute.xlu0 %2698 }
 0x506   :  { %v1820_v54 = vpack.c.bf16 %v6608_v38, %v6606_v39  ;;  %5717 = vpow2.f32 %v1759_v41 }
 0x508   :  { %5290 = vmatmul.mubr.msk.bf16.vlgmr.msra.gmra.mrb[64].mxu1 %vm672_vm3, %v1820_v54 }
 0x509   :  { %5300 = vmatpush3.bf16.msra.mxu1 %v1969_v21  ;;  %5301 = vmatprep.mubr.msk.bf16.mxu1 %vm5959_vm1, %v7554_v40 }
 0x50a   :  { %5311 = vmatprep.subr.bf16.mxu1 %v7554_v40 }
 0x50b   :  { %v6616_v29 = vpop.eup %5711 }
 0x50c   :  { %v6618_v33 = vpop.eup %5713 }
 0x50d   :  { %v1822_v47 = vpack.c.bf16 %v6616_v29, %v6618_v33 }
 0x50f   :  { %v6626_v10 = vpop.eup %5715 }
 0x510   :  { %5302 = vmatmul.mubr.msk.bf16.vlgmr.msra.gmra.mrb[68].mxu1 %vm672_vm3, %v1822_v47  ;;  %v6628_v21 = vpop.eup %5717  ;;  %v808_v47 = vsel %vm672_vm3, %v6412_v23, 0.0 }
 0x511   :  { %5312 = vmatpush3.bf16.msra.mxu1 %v2063_v26  ;;  %5313 = vmatprep.mubr.msk.bf16.mxu1 %vm5959_vm1, %v7554_v40  ;;  %v1824_v2 = vpack.c.bf16 %v6626_v10, %v6628_v21  ;;  %v769_v26 = vsel %vm672_vm3, %v6380_v46, 0.0  ;;  %v784_v46 = vsel %vm672_vm3, %v6390_v17, 0.0 }
 0x512   :  { %5323 = vmatprep.subr.bf16.mxu1 %v7554_v40 }
 0x518   :  { %5314 = vmatmul.mubr.msk.bf16.vlgmr.msra.gmra.mrb[72].mxu1 %vm672_vm3, %v1824_v2 }
 0x519   :  { %5324 = vmatpush3.bf16.msra.mxu1 %v6556_v7  ;;  %5325 = vmatprep.mubr.msk.bf16.mxu1 %vm5959_vm1, %v7554_v40  ;;  %v778_v7 = vsel %vm672_vm3, %v6267_v16, 0.0  ;;  %v793_v16 = vsel %vm672_vm3, %v6404_v15, 0.0  ;;  %v805_v15 = vsel %vm672_vm3, %v6414_v22, 0.0  ;;  %v814_v22 = vsel %vm672_vm3, %v6341_v5, 0.0 }
 0x51a   :  { %5365 = vmatprep.subr.bf16.mxu1 %v7554_v40  ;;  %v2553_v5 = vsel %vm250_vm2, %v6558_v25, 0 }
 0x51c   :  { %770 = vadd.xlane.f32.xlu1 %v769_v26  ;;  %v811_v26 = vsel %vm672_vm3, %v6343_v18, 0.0  ;;  %v2604_v18 = vsel %vm250_vm2, %v6564_v8, 0 }
 0x51e   :  { %773 = vadd.xlane.f32.xlu0 %v772_v36 }
 0x520   :  { %776 = vadd.xlane.f32.xlu1 %v775_v37  ;;  %v2655_v37 = vsel %vm250_vm2, %v6570_v14, 0  ;;  %v2706_v14 = vsel %vm250_vm2, %v6576_v19, 0 }
 0x522   :  { %779 = vadd.xlane.f32.xlu0 %v778_v7 }
 0x524   :  { %782 = vadd.xlane.f32.xlu1 %v781_v3 }
 0x526   :  { %785 = vadd.xlane.f32.xlu0 %v784_v46 }
 0x528   :  { %788 = vadd.xlane.f32.xlu1 %v787_v52  ;;  %v2757_v52 = vsel %vm250_vm2, %v6653_v35, 0 }
 0x52a   :  { %791 = vadd.xlane.f32.xlu0 %v790_v13 }
 0x52c   :  { %794 = vadd.xlane.f32.xlu1 %v793_v16 }
 0x52e   :  { %797 = vadd.xlane.f32.xlu0 %v796_v1  ;;  %v1777_v1 = vsel %vm672_vm3, %v6606_v39, 0.0  ;;  %v1780_v39 = vsel %vm672_vm3, %v6608_v38, 0.0 }
 0x52f   :  { %v6659_v17 = vpop.xlane.xlu1 %1700 }
 0x530   :  { %800 = vadd.xlane.f32.xlu1 %v799_v56 }
 0x532   :  { %803 = vadd.xlane.f32.xlu0 %v802_v9 }
 0x533   :  { %v1719_v54 = vpop.xlane.xlu1 %1718 }
 0x534   :  { %v1737_v41 = vsub.f32 %v6537_v63, %v1719_v54  ;;  %806 = vadd.xlane.f32.xlu1 %v805_v15 }
 0x535   :  { %v1722_v24 = vpop.xlane.xlu0 %1721 }
 0x536   :  { %v1767_v2 = vmul.f32 1.442695, %v1737_v41  ;;  %v1738_v60 = vsub.f32 %v6542_v57, %v1722_v24  ;;  %809 = vadd.xlane.f32.xlu0 %v808_v47  ;;  %v2502_v57 = vsel %vm250_vm2, %v6554_v34, 0  ;;  %v1723_v34 = vsub.f32 %v6482_v55, %v6582_v45 }
 0x537   :  { %v1727_v45 = vsub.f32 %v6492_v20, %v6587_v44  ;;  %v2803_v55 = vpop.permute.xlu1 %2802 }
 0x538   :  { %v1769_v58 = vmul.f32 1.442695, %v1738_v60  ;;  %812 = vadd.xlane.f32.xlu1 %v811_v26  ;;  %5719 = vpow2.f32 %v1767_v2  ;;  %v1739_v25 = vmul.f32 1.442695, %v1723_v34  ;;  %v2808_v41 = vsel %vm250_vm2, %v2803_v55, 0 }
 0x539   :  { %v1789_v26 = vsel %vm672_vm3, %v6618_v33, 0.0  ;;  %v1801_v34 = vsel %vm672_vm3, %v6628_v21, 0.0 }
 0x53a   :  { %5721 = vpow2.f32 %v1769_v58  ;;  %815 = vadd.xlane.f32.xlu0 %v814_v22  ;;  %v1792_v22 = vsel %vm672_vm3, %v6616_v29, 0.0 }
 0x53b   :  { %5723 = vpow2.f32 %v1739_v25 }
 0x542   :  { %v6677_v63 = vpop.eup %5719 }
 0x544   :  { %v6679_v36 = vpop.eup %5721 }
 0x545   :  { %v1826_v23 = vpack.c.bf16 %v6679_v36, %v6677_v63  ;;  %v5724_v20 = vpop.eup %5723  ;;  %v1816_v55 = vsel %vm672_vm3, %v6679_v36, 0.0 }
 0x547   :  { %5326 = vmatmul.mubr.msk.bf16.vlgmr.msra.gmra.mrb[76].mxu1 %vm672_vm3, %v1826_v23 }
 0x548   :  { %5366 = vmatpush3.bf16.xpose.msra.mxu1 %v2502_v57  ;;  %5367 = vmatprep.mubr.msk.bf16.mxu1 %vm5959_vm1, %v7554_v40 }
 0x549   :  { %3079 = vrot.lane.b32.xlu1 %v6069_v30, %s5967_s12  ;;  %5371 = vmatprep.subr.bf16.mxu1 %v7554_v40 }
 0x54d   :  { %3173 = vrot.lane.b32.xlu1 %v6079_v50, %s5967_s12 }
 0x54f   :  { %5368 = vmatmul.mubr.msk.bf16.vlgmr.msra.gmra.mrb[80].mxu1 %vm250_vm2, %v6560_v53  ;;  %v1724_v53 = vsub.f32 %v6484_v32, %v6580_v59  ;;  %v1728_v32 = vsub.f32 %v6498_v62, %v6591_v42  ;;  %v1731_v42 = vsub.f32 %v6513_v27, %v6659_v17 }
 0x550   :  { %5372 = vmatpush3.bf16.xpose.msra.mxu1 %v2553_v5  ;;  %3126 = vrot.lane.b32.xlu0 %v6065_v28, %s5967_s12 }
 0x551   :  { %3220 = vrot.lane.b32.xlu1 %v6075_v48, %s5967_s12  ;;  %5373 = vmatprep.mubr.msk.bf16.mxu1 %vm5959_vm1, %v7554_v40  ;;  %v1741_v8 = vmul.f32 1.442695, %v1724_v53  ;;  %v1749_v7 = vmul.f32 1.442695, %v1728_v32  ;;  %v1755_v13 = vmul.f32 1.442695, %v1731_v42 }
 0x552   :  { %5377 = vmatprep.subr.bf16.mxu1 %v7554_v40  ;;  %v1804_v53 = vsel %vm672_vm3, %v6626_v10, 0.0  ;;  %v1813_v10 = vsel %vm672_vm3, %v6677_v63, 0.0 }
 0x553   :  { %5725 = vpow2.f32 %v1741_v8 }
 0x557   :  { %5374 = vmatmul.mubr.msk.bf16.vlgmr.msra.gmra.mrb[84].mxu1 %vm250_vm2, %v6566_v6  ;;  %v1704_v6 = vpop.xlane.xlu0 %1703 }
 0x558   :  { %5378 = vmatpush3.bf16.xpose.msra.mxu1 %v2604_v18  ;;  %5379 = vmatprep.mubr.msk.bf16.mxu1 %vm5959_vm1, %v7554_v40  ;;  %v1732_v19 = vsub.f32 %v6517_v12, %v1704_v6  ;;  %v7555_v6 = vld [vmem:[#allocation5_spill] sm:$0xff] }
 0x559   :  { %5383 = vmatprep.subr.bf16.mxu1 %v7554_v40 }
 0x55a   :  { %v1757_v27 = vmul.f32 1.442695, %v1732_v19 }
 0x55b   :  { %v2750_v44 = vpop.permute.xlu0 %2749 }
 0x55d   :  { %v5726_v46 = vpop.eup %5725 }
 0x55e   :  { %v1819_v35 = vpack.c.bf16 %v5726_v46, %v5724_v20 }
 0x55f   :  { %5380 = vmatmul.mubr.msk.bf16.vlgmr.msra.gmra.mrb[88].mxu1 %vm250_vm2, %v6572_v4  ;;  %v1747_v4 = vmul.f32 1.442695, %v1727_v45 }
 0x560   :  { %5384 = vmatpush3.bf16.xpose.msra.mxu1 %v2655_v37  ;;  %5385 = vmatprep.mubr.msk.bf16.mxu1 %vm5959_vm1, %v7554_v40 }
 0x561   :  { %5389 = vmatprep.subr.bf16.mxu1 %v7554_v40  ;;  %5727 = vpow2.f32 %v1747_v4 }
 0x562   :  { %5729 = vpow2.f32 %v1749_v7 }
 0x563   :  { %5731 = vpow2.f32 %v1755_v13 }
 0x564   :  { %5733 = vpow2.f32 %v1757_v27  ;;  %v7558_v27 = vld [vmem:[#allocation7_spill] sm:$0xff] }
 0x567   :  { %5386 = vmatmul.mubr.msk.bf16.vlgmr.msra.gmra.mrb[92].mxu1 %vm250_vm2, %v6574_v11  ;;  %v1771_v11 = vsel %vm672_vm3, %v5724_v20, 0.0 }
 0x568   :  { %5390 = vmatpush3.bf16.xpose.msra.mxu1 %v2706_v14  ;;  %v1713_v59 = vpop.xlane.xlu1 %1712  ;;  %5391 = vmatprep.mubr.msk.bf16.mxu1 %vm5959_vm1, %v7554_v40 }
 0x569   :  { %5395 = vmatprep.subr.bf16.mxu1 %v7554_v40  ;;  %v1735_v17 = vsub.f32 %v6526_v0, %v1713_v59 }
 0x56b   :  { %v5728_v9 = vpop.eup %5727  ;;  %v1763_v24 = vmul.f32 1.442695, %v1735_v17 }
 0x56c   :  { %v2854_v62 = vpop.permute.xlu1 %2853  ;;  %v5730_v0 = vpop.eup %5729 }
 0x56d   :  { %v1786_v2 = vsel %vm672_vm3, %v5730_v0, 0.0  ;;  %v1821_v60 = vpack.c.bf16 %v5730_v0, %v5728_v9  ;;  %5735 = vpow2.f32 %v1763_v24  ;;  %v5732_v58 = vpop.eup %5731  ;;  %v2859_v57 = vsel %vm250_vm2, %v2854_v62, 0  ;;  %v7556_v62 = vld [vmem:[#allocation15_spill] sm:$0xff] }
 0x56e   :  { %v1716_v3 = vpop.xlane.xlu0 %1715  ;;  %v5734_v23 = vpop.eup %5733  ;;  %v1795_v33 = vsel %vm672_vm3, %v5732_v58, 0.0 }
 0x56f   :  { %1772 = vadd.xlane.f32.xlu0 %v1771_v11  ;;  %5392 = vmatmul.mubr.msk.bf16.vlgmr.msra.gmra.mrb[96].mxu1 %vm250_vm2, %v6663_v61  ;;  %v1774_v61 = vsel %vm672_vm3, %v5726_v46, 0.0  ;;  %v1736_v54 = vsub.f32 %v6530_v43, %v1716_v3  ;;  %v1783_v43 = vsel %vm672_vm3, %v5728_v9, 0.0  ;;  %v1798_v29 = vsel %vm672_vm3, %v5734_v23, 0.0  ;;  %v7557_v3 = vld [vmem:[#allocation16_spill] sm:$0xff] }
 0x570   :  { %5396 = vmatpush3.bf16.xpose.msra.mxu1 %v2757_v52  ;;  %v1828_v16 = vpop.permute.xlu1 %1827  ;;  %5397 = vmatprep.mubr.msk.bf16.mxu1 %vm5959_vm1, %v7554_v40  ;;  %v1823_v5 = vpack.c.bf16 %v5734_v23, %v5732_v58 }
 0x571   :  { %5282 = vmatpush3.bf16.msra.mxu0 %v1828_v16  ;;  %5401 = vmatprep.subr.bf16.mxu1 %v7554_v40  ;;  %v1765_v47 = vmul.f32 1.442695, %v1736_v54 }
 0x572   :  { %v2801_v12 = vpop.permute.xlu0 %2800  ;;  %5293 = vmatprep.subr.bf16.mxu0 %v7554_v40 }
 0x573   :  { %1778 = vadd.xlane.f32.xlu0 %v1777_v1  ;;  %5737 = vpow2.f32 %v1765_v47  ;;  %v7559_v1 = vld [vmem:[#allocation8_spill] sm:$0xff] }
 0x574   :  { %v1922_v56 = vpop.permute.xlu1 %1921  ;;  %5284 = vmatmul.mubr.msk.bf16.vlgmr.msra.gmra.mrb[48].mxu0 %vm672_vm3, %v1819_v35 }
 0x575   :  { %5294 = vmatpush3.bf16.msra.mxu0 %v1922_v56  ;;  %1775 = vadd.xlane.f32.xlu1 %v1774_v61  ;;  %v2906_v61 = vld [vmem:[#allocation2 + $0x68] sm:$0xff] }
 0x576   :  { %v2852_v15 = vpop.permute.xlu0 %2851  ;;  %5295 = vmatprep.mubr.msk.bf16.mxu0 %vm5959_vm1, %v7554_v40  ;;  %5305 = vmatprep.subr.bf16.mxu0 %v7554_v40 }
 0x577   :  { %1781 = vadd.xlane.f32.xlu0 %v1780_v39  ;;  %5398 = vmatmul.mubr.msk.bf16.vlgmr.msra.gmra.mrb[100].mxu1 %vm250_vm2, %v2750_v44  ;;  %v5736_v25 = vpop.eup %5735  ;;  %v7560_v39 = vld [vmem:[#allocation17_spill] sm:$0xff] }
 0x578   :  { %5402 = vmatpush3.bf16.xpose.msra.mxu1 %v2808_v41  ;;  %5403 = vmatprep.mubr.msk.bf16.mxu1 %vm5959_vm1, %v7554_v40  ;;  %v2110_v18 = vpop.permute.xlu1 %2109  ;;  %v1807_v8 = vsel %vm672_vm3, %v5736_v25, 0.0  ;;  %v7561_v41 = vld [vmem:[#allocation18_spill] sm:$0xff] }
 0x579   :  { %1784 = vadd.xlane.f32.xlu1 %v1783_v43  ;;  %5407 = vmatprep.subr.bf16.mxu1 %v7554_v40 }
 0x57a   :  { %v2016_v38 = vpop.permute.xlu0 %2015 }
 0x57b   :  { %1787 = vadd.xlane.f32.xlu0 %v1786_v2 }
 0x57c   :  { %5296 = vmatmul.mubr.msk.bf16.vlgmr.msra.gmra.mrb[52].mxu0 %vm672_vm3, %v1821_v60 }
 0x57d   :  { %5306 = vmatpush3.bf16.msra.mxu0 %v2016_v38  ;;  %1790 = vadd.xlane.f32.xlu1 %v1789_v26  ;;  %v5738_v37 = vpop.eup %5737  ;;  %v7562_v26 = vld [vmem:[#allocation9_spill] sm:$0xff] }
 0x57e   :  { %5307 = vmatprep.mubr.msk.bf16.mxu0 %vm5959_vm1, %v7554_v40  ;;  %5317 = vmatprep.subr.bf16.mxu0 %v7554_v40  ;;  %v1810_v21 = vsel %vm672_vm3, %v5738_v37, 0.0  ;;  %v1825_v45 = vpack.c.bf16 %v5738_v37, %v5736_v25 }
 0x57f   :  { %1793 = vadd.xlane.f32.xlu0 %v1792_v22  ;;  %5404 = vmatmul.mubr.msk.bf16.vlgmr.msra.gmra.mrb[104].mxu1 %vm250_vm2, %v2801_v12  ;;  %v7563_v22 = vld [vmem:[#allocation10_spill] sm:$0xff] }
 0x580   :  { %5408 = vmatpush3.bf16.xpose.msra.mxu1 %v2859_v57  ;;  %5409 = vmatprep.mubr.msk.bf16.mxu1 %vm5959_vm1, %v7554_v40 }
 0x581   :  { %1796 = vadd.xlane.f32.xlu1 %v1795_v33  ;;  %5419 = vmatprep.subr.bf16.mxu1 %v7554_v40 }
 0x583   :  { %1799 = vadd.xlane.f32.xlu0 %v1798_v29 }
 0x584   :  { %5308 = vmatmul.mubr.msk.bf16.vlgmr.msra.gmra.mrb[56].mxu0 %vm672_vm3, %v1823_v5 }
 0x585   :  { %5318 = vmatpush3.bf16.msra.mxu0 %v2110_v18  ;;  %1802 = vadd.xlane.f32.xlu1 %v1801_v34  ;;  %v7564_v34 = vld [vmem:[#allocation19_spill] sm:$0xff] }
 0x586   :  { %5319 = vmatprep.mubr.msk.bf16.mxu0 %vm5959_vm1, %v7554_v40 }
 0x587   :  { %1805 = vadd.xlane.f32.xlu0 %v1804_v53  ;;  %5410 = vmatmul.mubr.msk.bf16.vlgmr.msra.gmra.mrb[108].mxu1 %vm250_vm2, %v2852_v15  ;;  %v7565_v53 = vld [vmem:[#allocation20_spill] sm:$0xff] }
 0x588   :  { %5421 = vmatprep.mubr.msk.bf16.mxu1 %vm5959_vm1, %v7554_v40 }
 0x589   :  { %1808 = vadd.xlane.f32.xlu1 %v1807_v8 }
 0x58b   :  { %1811 = vadd.xlane.f32.xlu0 %v1810_v21 }
 0x58c   :  { %5320 = vmatmul.mubr.msk.bf16.vlgmr.msra.gmra.mrb[60].mxu0 %vm672_vm3, %v1825_v45 }
 0x58d   :  { %1814 = vadd.xlane.f32.xlu1 %v1813_v10 }
 0x58f   :  { %1817 = vadd.xlane.f32.xlu0 %v1816_v55  ;;  %v4875_v55 = vld [vmem:[%s7520_s3 + $0x4] sm:$0xf] }
 0x590   :  { %5645 = vmatprep.subr.msk.bf16.mxu0 %vm2269_vm4, %v4875_v55 }
 0x59e   :  { %3314 = vrot.lane.b32.xlu1 %v7555_v6, %s5967_s12 }
 0x5a5   :  { %3267 = vrot.lane.b32.xlu0 %v6071_v31, %s5967_s12  ;;  %v6954_v31 = vld [vmem:[#allocation2 + $0xe8] sm:$0xff] }
 0x5a9   :  { %v771_v32 = vpop.xlane.xlu1 %770 }
 0x5aa   :  { %5739 = vrcp.f32 %v771_v32  ;;  %v7566_v32 = vld [vmem:[#allocation11_spill] sm:$0xff] }
 0x5ab   :  { %v774_v14 = vpop.xlane.xlu0 %773 }
 0x5ac   :  { %5741 = vrcp.f32 %v774_v14 }
 0x5ad   :  { %v777_v4 = vpop.xlane.xlu1 %776 }
 0x5ae   :  { %5743 = vrcp.f32 %v777_v4  ;;  %v7567_v4 = vld [vmem:[#allocation12_spill] sm:$0xff] }
 0x5af   :  { %v780_v59 = vpop.xlane.xlu0 %779 }
 0x5b0   :  { %5745 = vrcp.f32 %v780_v59 }
 0x5b1   :  { %v783_v63 = vpop.xlane.xlu1 %782 }
 0x5b2   :  { %5747 = vrcp.f32 %v783_v63 }
 0x5b3   :  { %v786_v7 = vpop.xlane.xlu0 %785 }
 0x5b4   :  { %v5740_v44 = vpop.eup %5739  ;;  %5749 = vrcp.f32 %v786_v7  ;;  %v2271_v7 = vsel %vm2269_vm4, %v4875_v55, 0 }
 0x5b5   :  { %v789_v36 = vpop.xlane.xlu1 %788  ;;  %v6800_v19 = vmul.f32 %v5740_v44, %v7556_v62  ;;  %5330 = vmatpush3.bf16.msra.mxu0 %v2271_v7  ;;  %v7569_v62 = vld [vmem:[#allocation22_spill] sm:$0xff] }
 0x5b6   :  { %v5742_v20 = vpop.eup %5741  ;;  %5751 = vrcp.f32 %v789_v36 }
 0x5b7   :  { %v792_v42 = vpop.xlane.xlu0 %791  ;;  %v6803_v11 = vmul.f32 %v5742_v20, %v7557_v3  ;;  %v7568_v20 = vld [vmem:[#allocation21_spill] sm:$0xff] }
 0x5b8   :  { %v5744_v46 = vpop.eup %5743  ;;  %5753 = vrcp.f32 %v792_v42 }
 0x5b9   :  { %v795_v52 = vpop.xlane.xlu1 %794  ;;  %v6808_v12 = vmul.f32 %v5744_v46, %v7558_v27  ;;  %v7570_v27 = vld [vmem:[#allocation13_spill] sm:$0xff] }
 0x5ba   :  { %v5746_v16 = vpop.eup %5745  ;;  %5755 = vrcp.f32 %v795_v52  ;;  %v2903_v52 = vld [vmem:[#allocation2 + $0x20] sm:$0xff] }
 0x5bb   :  { %v6811_v35 = vmul.f32 %v5746_v16, %v7559_v1  ;;  %v798_v17 = vpop.xlane.xlu0 %797 }
 0x5bc   :  { %v5748_v56 = vpop.eup %5747  ;;  %5757 = vrcp.f32 %v798_v17  ;;  %v7571_v17 = vld [vmem:[#allocation14_spill] sm:$0xff] }
 0x5bd   :  { %v801_v9 = vpop.xlane.xlu1 %800  ;;  %v6816_v0 = vmul.f32 %v5748_v56, %v7560_v39 }
 0x5be   :  { %v5750_v54 = vpop.eup %5749  ;;  %5759 = vrcp.f32 %v801_v9 }
 0x5bf   :  { %v804_v15 = vpop.xlane.xlu0 %803  ;;  %v6819_v24 = vmul.f32 %v5750_v54, %v7561_v41 }
 0x5c0   :  { %v5752_v43 = vpop.eup %5751  ;;  %5761 = vrcp.f32 %v804_v15 }
 0x5c1   :  { %v807_v47 = vpop.xlane.xlu1 %806  ;;  %v6824_v58 = vmul.f32 %v5752_v43, %v7562_v26  ;;  %v6872_v26 = vld [vmem:[%s7520_s3] sm:$0xf] }
 0x5c2   :  { %v5754_v2 = vpop.eup %5753  ;;  %5763 = vrcp.f32 %v807_v47  ;;  %5646 = vmatprep.subr.msk.bf16.mxu0 %vm2269_vm4, %v6872_v26 }
 0x5c3   :  { %v810_v60 = vpop.xlane.xlu0 %809  ;;  %v6827_v23 = vmul.f32 %v5754_v2, %v7563_v22 }
 0x5c4   :  { %v5756_v57 = vpop.eup %5755  ;;  %5765 = vrcp.f32 %v810_v60 }
 0x5c5   :  { %v813_v33 = vpop.xlane.xlu1 %812  ;;  %v6832_v25 = vmul.f32 %v5756_v57, %v7564_v34 }
 0x5c6   :  { %v5758_v5 = vpop.eup %5757  ;;  %5767 = vrcp.f32 %v813_v33 }
 0x5c7   :  { %v816_v18 = vpop.xlane.xlu0 %815  ;;  %v6835_v37 = vmul.f32 %v5758_v5, %v7565_v53 }
 0x5c8   :  { %v5760_v8 = vpop.eup %5759  ;;  %5769 = vrcp.f32 %v816_v18 }
 0x5c9   :  { %v6843_v14 = vmul.f32 %v5760_v8, %v7566_v32  ;;  %v6876_v18 = vpop.permute.xlu1 %3079 }
 0x5ca   :  { %v5762_v45 = vpop.eup %5761 }
 0x5cb   :  { %v3127_v10 = vpop.permute.xlu0 %3126  ;;  %v6846_v59 = vmul.f32 %v5762_v45, %v7567_v4 }
 0x5cc   :  { %v5764_v63 = vpop.eup %5763  ;;  %5420 = vmatpush3.bf16.msra.mxu1 %v3127_v10 }
 0x5cd   :  { %5431 = vmatprep.subr.bf16.mxu1 %v7554_v40  ;;  %v6854_v42 = vmul.f32 %v5764_v63, %v7568_v20  ;;  %v6878_v34 = vpop.permute.xlu1 %3173 }
 0x5ce   :  { %v5766_v36 = vpop.eup %5765  ;;  %7572 = vst [vmem:[#allocation15_spill] sm:$0xff] %v6878_v34 }
 0x5cf   :  { %v6857_v3 = vmul.f32 %v5766_v36, %v7569_v62 }
 0x5d0   :  { %v5768_v46 = vpop.eup %5767 }
 0x5d1   :  { %v6862_v1 = vmul.f32 %v5768_v46, %v7570_v27  ;;  %v6882_v8 = vpop.permute.xlu1 %3220 }
 0x5d2   :  { %v5770_v16 = vpop.eup %5769  ;;  %7573 = vst [vmem:[#allocation16_spill] sm:$0xff] %v6882_v8 }
 0x5d3   :  { %v6865_v56 = vmul.f32 %v5770_v16, %v7571_v17 }
 0x5db   :  { %v1914_v54 = vpop.f32.mrb[64].mxu1 }
 0x5dc   :  { %v5291_v15 = vpop.f32.mrb[65].mxu1 }
 0x5dd   :  { %v1917_v39 = vpop.f32.mrb[66].mxu1  ;;  %v6952_v15 = vld [vmem:[#allocation2 + $0xe0] sm:$0xff] }
 0x5de   :  { %v5292_v41 = vpop.f32.mrb[67].mxu1 }
 0x5e3   :  { %v2008_v43 = vpop.f32.mrb[68].mxu1 }
 0x5e4   :  { %v5303_v47 = vpop.f32.mrb[69].mxu1 }
 0x5e5   :  { %v2011_v2 = vpop.f32.mrb[70].mxu1 }
 0x5e6   :  { %v5304_v60 = vpop.f32.mrb[71].mxu1 }
 0x5eb   :  { %v2102_v22 = vpop.f32.mrb[72].mxu1 }
 0x5ec   :  { %v5315_v57 = vpop.f32.mrb[73].mxu1 }
 0x5ed   :  { %v2105_v33 = vpop.f32.mrb[74].mxu1 }
 0x5ee   :  { %v5316_v5 = vpop.f32.mrb[75].mxu1 }
 0x5fc   :  { %v6880_v53 = vpop.xlane.xlu0 %1772 }
 0x600   :  { %v1779_v45 = vpop.xlane.xlu0 %1778 }
 0x601   :  { %5771 = vrcp.f32 %v1779_v45 }
 0x602   :  { %v6884_v10 = vpop.xlane.xlu1 %1775 }
 0x604   :  { %v1782_v55 = vpop.xlane.xlu0 %1781 }
 0x605   :  { %5773 = vrcp.f32 %v1782_v55 }
 0x606   :  { %v6886_v32 = vpop.xlane.xlu1 %1784 }
 0x608   :  { %v6888_v4 = vpop.xlane.xlu0 %1787 }
 0x60a   :  { %v1791_v63 = vpop.xlane.xlu1 %1790 }
 0x60b   :  { %5775 = vrcp.f32 %v1791_v63  ;;  %v5772_v36 = vpop.eup %5771 }
 0x60c   :  { %v1794_v7 = vpop.xlane.xlu0 %1793  ;;  %v6892_v46 = vmul.f32 %v5772_v36, %v1914_v54 }
 0x60d   :  { %5777 = vrcp.f32 %v1794_v7 }
 0x60e   :  { %v6890_v20 = vpop.xlane.xlu1 %1796 }
 0x60f   :  { %v5774_v62 = vpop.eup %5773 }
 0x610   :  { %v6894_v16 = vmul.f32 %v5774_v62, %v1917_v39  ;;  %v6896_v27 = vpop.xlane.xlu0 %1799 }
 0x612   :  { %v1803_v17 = vpop.xlane.xlu1 %1802 }
 0x613   :  { %5779 = vrcp.f32 %v1803_v17 }
 0x614   :  { %v1806_v41 = vpop.xlane.xlu0 %1805 }
 0x615   :  { %v5776_v47 = vpop.eup %5775  ;;  %5781 = vrcp.f32 %v1806_v41 }
 0x616   :  { %v6900_v60 = vpop.xlane.xlu1 %1808  ;;  %v6904_v45 = vmul.f32 %v5776_v47, %v2008_v43  ;;  %v2904_v47 = vld [vmem:[#allocation2 + $0x28] sm:$0xff] }
 0x617   :  { %v5778_v57 = vpop.eup %5777 }
 0x618   :  { %v6902_v5 = vpop.xlane.xlu0 %1811  ;;  %v6906_v54 = vmul.f32 %v5778_v57, %v2011_v2 }
 0x61a   :  { %v1815_v39 = vpop.xlane.xlu1 %1814  ;;  %v2196_v55 = vpop.f32.mrb[76].mxu1 }
 0x61b   :  { %5783 = vrcp.f32 %v1815_v39  ;;  %v5327_v7 = vpop.f32.mrb[77].mxu1 }
 0x61c   :  { %v2199_v36 = vpop.f32.mrb[78].mxu1  ;;  %v1818_v62 = vpop.xlane.xlu0 %1817 }
 0x61d   :  { %v5780_v17 = vpop.eup %5779  ;;  %5785 = vrcp.f32 %v1818_v62  ;;  %v5328_v41 = vpop.f32.mrb[79].mxu1 }
 0x61e   :  { %v6910_v44 = vmul.f32 %v5780_v17, %v2102_v22  ;;  %v2905_v17 = vld [vmem:[#allocation2 + $0x60] sm:$0xff]  ;;  %5787 = vrcp.f32 %v6880_v53 }
 0x61f   :  { %v5782_v9 = vpop.eup %5781  ;;  %5789 = vrcp.f32 %v6884_v10 }
 0x620   :  { %v6912_v43 = vmul.f32 %v5782_v9, %v2105_v33  ;;  %5791 = vrcp.f32 %v6886_v32 }
 0x621   :  { %5793 = vrcp.f32 %v6888_v4 }
 0x622   :  { %v2538_v2 = vpop.f32.mrb[80].mxu1  ;;  %5795 = vrcp.f32 %v6890_v20 }
 0x623   :  { %v6916_v21 = vadd.f32 %v2903_v52, %v2538_v2  ;;  %v5369_v39 = vpop.f32.mrb[81].mxu1  ;;  %5797 = vrcp.f32 %v6896_v27 }
 0x624   :  { %v2541_v7 = vpop.f32.mrb[82].mxu1  ;;  %5799 = vrcp.f32 %v6900_v60 }
 0x625   :  { %v5784_v29 = vpop.eup %5783  ;;  %v6918_v38 = vadd.f32 %v2904_v47, %v2541_v7  ;;  %v5370_v62 = vpop.f32.mrb[83].mxu1  ;;  %v2927_v41 = vsel %vm672_vm3, %v6916_v21, -inf  ;;  %5801 = vrcp.f32 %v6902_v5 }
 0x626   :  { %2928 = vmax.xlane.f32.xlu1 %v2927_v41  ;;  %v6924_v33 = vmul.f32 %v5784_v29, %v2196_v55 }
 0x627   :  { %v5786_v22 = vpop.eup %5785  ;;  %v2930_v9 = vsel %vm672_vm3, %v6918_v38, -inf }
 0x628   :  { %2931 = vmax.xlane.f32.xlu0 %v2930_v9  ;;  %v6926_v2 = vmul.f32 %v5786_v22, %v2199_v36  ;;  %v6938_v36 = vld [vmem:[#allocation2 + $0xa0] sm:$0xff]  ;;  %v6940_v9 = vld [vmem:[#allocation2 + $0xa8] sm:$0xff] }
 0x62a   :  { %v2589_v39 = vpop.f32.mrb[84].mxu1 }
 0x62b   :  { %v6930_v62 = vadd.f32 %v2905_v17, %v2589_v39  ;;  %v5375_v13 = vpop.f32.mrb[85].mxu1 }
 0x62c   :  { %v2592_v57 = vpop.f32.mrb[86].mxu1 }
 0x62d   :  { %v6932_v41 = vadd.f32 %v2906_v61, %v2592_v57  ;;  %v5376_v63 = vpop.f32.mrb[87].mxu1  ;;  %v2933_v29 = vsel %vm672_vm3, %v6930_v62, -inf }
 0x62e   :  { %2934 = vmax.xlane.f32.xlu1 %v2933_v29 }
 0x62f   :  { %v2936_v55 = vsel %vm672_vm3, %v6932_v41, -inf }
 0x630   :  { %2937 = vmax.xlane.f32.xlu0 %v2936_v55 }
 0x632   :  { %v2640_v22 = vpop.f32.mrb[88].mxu1 }
 0x633   :  { %v6943_v39 = vadd.f32 %v6938_v36, %v2640_v22  ;;  %v5381_v13 = vpop.f32.mrb[89].mxu1 }
 0x634   :  { %v2643_v57 = vpop.f32.mrb[90].mxu1 }
 0x635   :  { %7574 = vst [vmem:[#allocation7_spill] sm:$0xff] %v6943_v39  ;;  %v6946_v63 = vadd.f32 %v6940_v9, %v2643_v57  ;;  %v5382_v7 = vpop.f32.mrb[91].mxu1  ;;  %v2939_v29 = vsel %vm672_vm3, %v6943_v39, -inf }
 0x636   :  { %2940 = vmax.xlane.f32.xlu1 %v2939_v29 }
 0x637   :  { %7575 = vst [vmem:[#allocation8_spill] sm:$0xff] %v6946_v63  ;;  %v2942_v55 = vsel %vm672_vm3, %v6946_v63, -inf }
 0x638   :  { %2943 = vmax.xlane.f32.xlu0 %v2942_v55 }
 0x63a   :  { %v2691_v6 = vpop.f32.mrb[92].mxu1 }
 0x63b   :  { %v6957_v22 = vadd.f32 %v6952_v15, %v2691_v6  ;;  %v5387_v13 = vpop.f32.mrb[93].mxu1 }
 0x63c   :  { %v2694_v57 = vpop.f32.mrb[94].mxu1 }
 0x63d   :  { %7576 = vst [vmem:[#allocation17_spill] sm:$0xff] %v6957_v22  ;;  %v6960_v7 = vadd.f32 %v6954_v31, %v2694_v57  ;;  %v5388_v8 = vpop.f32.mrb[95].mxu1  ;;  %v2945_v29 = vsel %vm672_vm3, %v6957_v22, -inf }
 0x63e   :  { %2946 = vmax.xlane.f32.xlu1 %v2945_v29  ;;  %v5788_v29 = vpop.eup %5787 }
 0x63f   :  { %7577 = vst [vmem:[#allocation18_spill] sm:$0xff] %v6960_v7  ;;  %v2948_v55 = vsel %vm672_vm3, %v6960_v7, -inf }
 0x640   :  { %2949 = vmax.xlane.f32.xlu0 %v2948_v55  ;;  %v5790_v55 = vpop.eup %5789 }
 0x642   :  { %v2742_v6 = vpop.f32.mrb[96].mxu1 }
 0x643   :  { %v6968_v34 = vadd.f32 %v2903_v52, %v2742_v6  ;;  %v5393_v13 = vpop.f32.mrb[97].mxu1 }
 0x644   :  { %v2745_v63 = vpop.f32.mrb[98].mxu1 }
 0x645   :  { %7578 = vst [vmem:[#allocation9_spill] sm:$0xff] %v6968_v34  ;;  %v6970_v57 = vadd.f32 %v2904_v47, %v2745_v63  ;;  %v5394_v8 = vpop.f32.mrb[99].mxu1  ;;  %v2951_v22 = vsel %vm672_vm3, %v6968_v34, -inf }
 0x646   :  { %2952 = vmax.xlane.f32.xlu1 %v2951_v22 }
 0x647   :  { %7579 = vst [vmem:[#allocation10_spill] sm:$0xff] %v6970_v57  ;;  %v1867_v53 = vpop.f32.mrb[48].mxu0  ;;  %v2954_v10 = vsel %vm672_vm3, %v6970_v57, -inf }
 0x648   :  { %v5285_v52 = vpop.f32.mrb[49].mxu0  ;;  %2955 = vmax.xlane.f32.xlu0 %v2954_v10  ;;  %v2219_v47 = vmul.f32 %v5788_v29, %v1867_v53  ;;  %v2395_v10 = vsel %vm2269_vm4, %v6872_v26, 0  ;;  %v5792_v53 = vpop.eup %5791 }
 0x649   :  { %v1870_v6 = vpop.f32.mrb[50].mxu0  ;;  %v5794_v26 = vpop.eup %5793 }
 0x64a   :  { %v2220_v63 = vmul.f32 %v5790_v55, %v1870_v6  ;;  %v5286_v13 = vpop.f32.mrb[51].mxu0  ;;  %v2793_v8 = vpop.f32.mrb[100].mxu1 }
 0x64b   :  { %v6978_v7 = vadd.f32 %v2905_v17, %v2793_v8  ;;  %v5399_v34 = vpop.f32.mrb[101].mxu1 }
 0x64c   :  { %v2235_v32 = vpack.c.bf16 %v2220_v63, %v2219_v47  ;;  %v2796_v22 = vpop.f32.mrb[102].mxu1  ;;  %v7580_v34 = vpack.c.bf16 %v6894_v16, %v6892_v46 }
 0x64d   :  { %v6980_v39 = vadd.f32 %v2906_v61, %v2796_v22  ;;  %v5400_v4 = vpop.f32.mrb[103].mxu1  ;;  %v2957_v57 = vsel %vm672_vm3, %v6978_v7, -inf  ;;  %v5796_v22 = vpop.eup %5795 }
 0x64e   :  { %2958 = vmax.xlane.f32.xlu1 %v2957_v57  ;;  %5331 = vmatprep.mubr.msk.bf16.mxu0 %vm250_vm2, %v2235_v32 }
 0x64f   :  { %v1961_v17 = vpop.f32.mrb[52].mxu0  ;;  %5332 = vmatmul.mubr.msk.bf16.vlgmr.msra.gmra.mrb[64].mxu0 %vm250_vm2, %v7580_v34  ;;  %v2960_v61 = vsel %vm672_vm3, %v6980_v39, -inf }
 0x650   :  { %v5297_v29 = vpop.f32.mrb[53].mxu0  ;;  %2961 = vmax.xlane.f32.xlu0 %v2960_v61  ;;  %5348 = vmatpush3.bf16.msra.mxu0 %v2395_v10  ;;  %v2223_v57 = vmul.f32 %v5792_v53, %v1961_v17  ;;  %v5798_v10 = vpop.eup %5797 }
 0x651   :  { %v1964_v20 = vpop.f32.mrb[54].mxu0  ;;  %5413 = vmatprep.subr.bf16.mxu0 %v7554_v40 }
 0x652   :  { %v2224_v52 = vmul.f32 %v5794_v26, %v1964_v20  ;;  %v5298_v27 = vpop.f32.mrb[55].mxu0  ;;  %v2844_v55 = vpop.f32.mrb[104].mxu1 }
 0x653   :  { %v6997_v6 = vadd.f32 %v6938_v36, %v2844_v55  ;;  %v5405_v46 = vpop.f32.mrb[105].mxu1  ;;  %v7581_v36 = vpack.c.bf16 %v6906_v54, %v6904_v45  ;;  %v7582_v27 = vpack.c.bf16 %v6912_v43, %v6910_v44  ;;  %v5800_v55 = vpop.eup %5799  ;;  %v7584_v44 = vpack.c.bf16 %v6803_v11, %v6800_v19 }
 0x654   :  { %v2237_v16 = vpack.c.bf16 %v2224_v52, %v2223_v57  ;;  %v2847_v47 = vpop.f32.mrb[106].mxu1  ;;  %v5802_v46 = vpop.eup %5801  ;;  %v7585_v43 = vpack.c.bf16 %v6811_v35, %v6808_v12  ;;  %v7587_v19 = vpack.c.bf16 %v6827_v23, %v6824_v58  ;;  %v7588_v11 = vpack.c.bf16 %v6835_v37, %v6832_v25 }
 0x655   :  { %v7000_v63 = vadd.f32 %v6940_v9, %v2847_v47  ;;  %v5406_v13 = vpop.f32.mrb[107].mxu1  ;;  %v2963_v8 = vsel %vm672_vm3, %v6997_v6, -inf  ;;  %v7589_v12 = vpack.c.bf16 %v6846_v59, %v6843_v14  ;;  %v7590_v35 = vpack.c.bf16 %v6857_v3, %v6854_v42  ;;  %v7089_v58 = vpop.permute.xlu0 %3267 }
 0x656   :  { %2964 = vmax.xlane.f32.xlu1 %v2963_v8  ;;  %5335 = vmatprep.mubr.msk.bf16.mxu0 %vm250_vm2, %v2237_v16 }
 0x657   :  { %v2055_v32 = vpop.f32.mrb[56].mxu0  ;;  %5336 = vmatmul.mubr.msk.bf16.gmra.mrb[68].mxu0 %vm250_vm2, %v7581_v36  ;;  %v2966_v9 = vsel %vm672_vm3, %v7000_v63, -inf  ;;  %v7583_v36 = vpack.c.bf16 %v6926_v2, %v6924_v33  ;;  %v7586_v33 = vpack.c.bf16 %v6819_v24, %v6816_v0  ;;  %v7591_v0 = vpack.c.bf16 %v6865_v56, %v6862_v1  ;;  %v7087_v24 = vpop.permute.xlu1 %3314 }
 0x658   :  { %2967 = vmax.xlane.f32.xlu0 %v2966_v9  ;;  %v5309_v4 = vpop.f32.mrb[57].mxu0  ;;  %v2227_v60 = vmul.f32 %v5796_v22, %v2055_v32 }
 0x659   :  { %v2058_v17 = vpop.f32.mrb[58].mxu0 }
 0x65a   :  { %v2228_v34 = vmul.f32 %v5798_v10, %v2058_v17  ;;  %v5310_v61 = vpop.f32.mrb[59].mxu0  ;;  %v2895_v53 = vpop.f32.mrb[108].mxu1  ;;  %v7592_v17 = vld [vmem:[#allocation7_spill] sm:$0xff] }
 0x65b   :  { %v7014_v5 = vadd.f32 %v6952_v15, %v2895_v53  ;;  %v5411_v29 = vpop.f32.mrb[109].mxu1  ;;  %v7593_v53 = vld [vmem:[#allocation8_spill] sm:$0xff] }
 0x65c   :  { %v2239_v26 = vpack.c.bf16 %v2228_v34, %v2227_v60  ;;  %v2898_v45 = vpop.f32.mrb[110].mxu1 }
 0x65d   :  { %v7017_v54 = vadd.f32 %v6954_v31, %v2898_v45  ;;  %v5412_v20 = vpop.f32.mrb[111].mxu1  ;;  %v2969_v57 = vsel %vm672_vm3, %v7014_v5, -inf }
 0x65e   :  { %2970 = vmax.xlane.f32.xlu1 %v2969_v57  ;;  %5339 = vmatprep.mubr.msk.bf16.mxu0 %vm250_vm2, %v2239_v26  ;;  %v7594_v26 = vld [vmem:[#allocation15_spill] sm:$0xff] }
 0x65f   :  { %v2149_v52 = vpop.f32.mrb[60].mxu0  ;;  %5340 = vmatmul.mubr.msk.bf16.gmra.mrb[72].mxu0 %vm250_vm2, %v7582_v27  ;;  %v2972_v15 = vsel %vm672_vm3, %v7017_v54, -inf  ;;  %v7595_v27 = vld [vmem:[#allocation17_spill] sm:$0xff] }
 0x660   :  { %2973 = vmax.xlane.f32.xlu0 %v2972_v15  ;;  %v5321_v31 = vpop.f32.mrb[61].mxu0  ;;  %v2231_v47 = vmul.f32 %v5800_v55, %v2149_v52 }
 0x661   :  { %v2152_v16 = vpop.f32.mrb[62].mxu0 }
 0x662   :  { %v2232_v13 = vmul.f32 %v5802_v46, %v2152_v16  ;;  %v5322_v8 = vpop.f32.mrb[63].mxu0  ;;  %v7596_v16 = vld [vmem:[#allocation18_spill] sm:$0xff] }
 0x664   :  { %v2241_v32 = vpack.c.bf16 %v2232_v13, %v2231_v47 }
 0x666   :  { %5343 = vmatprep.mubr.msk.bf16.mxu0 %vm250_vm2, %v2241_v32  ;;  %v7597_v32 = vld [vmem:[#allocation16_spill] sm:$0xff] }
 0x667   :  { %5344 = vmatmul.mubr.msk.bf16.gmra.mrb[76].mxu0 %vm250_vm2, %v7583_v36 }
 0x668   :  { %5349 = vmatprep.mubr.msk.bf16.mxu0 %vm250_vm2, %v7584_v44 }
 0x66f   :  { %3408 = vrot.lane.b32.xlu1 %v6077_v49, %s5967_s12  ;;  %5350 = vmatmul.mubr.msk.bf16.vlgmr.msra.gmra.mrb[64].mxu0 %vm250_vm2, %v7585_v43 }
 0x670   :  { %5414 = vmatpush3.bf16.msra.mxu0 %v6876_v18  ;;  %5353 = vmatprep.mubr.msk.bf16.mxu0 %vm250_vm2, %v7586_v33 }
 0x671   :  { %5425 = vmatprep.subr.bf16.mxu0 %v7554_v40 }
 0x673   :  { %3639 = vrot.lane.b32.xlu1 %v6069_v30, %s5968_s5 }
 0x676   :  { %3361 = vrot.lane.b32.xlu0 %v6081_v51, %s5967_s12 }
 0x677   :  { %3637 = vrot.lane.b32.xlu1 %v6069_v30, %s5969_s17  ;;  %5354 = vmatmul.mubr.msk.bf16.gmra.mrb[68].mxu0 %vm250_vm2, %v7587_v19  ;;  %v7598_v19 = vld [vmem:[#allocation9_spill] sm:$0xff] }
 0x678   :  { %5357 = vmatprep.mubr.msk.bf16.mxu0 %vm250_vm2, %v7588_v11 }
 0x67a   :  { %3690 = vrot.lane.b32.xlu0 %v6065_v28, %s5968_s5 }
 0x67b   :  { %3688 = vrot.lane.b32.xlu1 %v6065_v28, %s5969_s17 }
 0x67f   :  { %3741 = vrot.lane.b32.xlu1 %v6079_v50, %s5968_s5  ;;  %5358 = vmatmul.mubr.msk.bf16.gmra.mrb[72].mxu0 %vm250_vm2, %v7589_v12 }
 0x680   :  { %5361 = vmatprep.mubr.msk.bf16.mxu0 %vm250_vm2, %v7590_v35 }
 0x683   :  { %3739 = vrot.lane.b32.xlu1 %v6079_v50, %s5969_s17 }
 0x687   :  { %3792 = vrot.lane.b32.xlu1 %v6075_v48, %s5968_s5  ;;  %5362 = vmatmul.mubr.msk.bf16.gmra.mrb[76].mxu0 %vm250_vm2, %v7591_v0 }
 0x688   :  { %5415 = vmatprep.mubr.msk.bf16.mxu0 %vm5959_vm1, %v7554_v40 }
 0x6b3   :  { %v2929_v23 = vpop.xlane.xlu1 %2928 }
 0x6b4   :  { %v2975_v25 = vsub.f32 %v6916_v21, %v2929_v23 }
 0x6b5   :  { %v2932_v37 = vpop.xlane.xlu0 %2931 }
 0x6b6   :  { %v2991_v14 = vmul.f32 1.442695, %v2975_v25  ;;  %v2976_v59 = vsub.f32 %v6918_v38, %v2932_v37  ;;  %v7599_v25 = vld [vmem:[#allocation10_spill] sm:$0xff] }
 0x6b8   :  { %5803 = vpow2.f32 %v2991_v14  ;;  %v2993_v42 = vmul.f32 1.442695, %v2976_v59 }
 0x6ba   :  { %5805 = vpow2.f32 %v2993_v42 }
 0x6bb   :  { %v2935_v3 = vpop.xlane.xlu1 %2934 }
 0x6bc   :  { %v2977_v1 = vsub.f32 %v6930_v62, %v2935_v3 }
 0x6bd   :  { %v2938_v56 = vpop.xlane.xlu0 %2937 }
 0x6be   :  { %v2995_v18 = vmul.f32 1.442695, %v2977_v1  ;;  %v2978_v2 = vsub.f32 %v6932_v41, %v2938_v56 }
 0x6c0   :  { %5807 = vpow2.f32 %v2995_v18  ;;  %v2997_v9 = vmul.f32 1.442695, %v2978_v2 }
 0x6c2   :  { %v5804_v22 = vpop.eup %5803  ;;  %5809 = vpow2.f32 %v2997_v9 }
 0x6c3   :  { %v2941_v4 = vpop.xlane.xlu1 %2940  ;;  %v3023_v21 = vsel %vm672_vm3, %v5804_v22, 0.0 }
 0x6c4   :  { %v5806_v10 = vpop.eup %5805  ;;  %v2979_v38 = vsub.f32 %v7592_v17, %v2941_v4  ;;  %3024 = vadd.xlane.f32.xlu0 %v3023_v21 }
 0x6c5   :  { %v3071_v60 = vpack.c.bf16 %v5806_v10, %v5804_v22  ;;  %v2944_v34 = vpop.xlane.xlu0 %2943  ;;  %v3026_v61 = vsel %vm672_vm3, %v5806_v10, 0.0 }
 0x6c6   :  { %v2999_v62 = vmul.f32 1.442695, %v2979_v38  ;;  %v2980_v29 = vsub.f32 %v7593_v53, %v2944_v34  ;;  %3027 = vadd.xlane.f32.xlu1 %v3026_v61 }
 0x6c7   :  { %5416 = vmatmul.mubr.msk.bf16.vlgmr.msra.gmra.mrb[80].mxu0 %vm672_vm3, %v3071_v60 }
 0x6c8   :  { %5811 = vpow2.f32 %v2999_v62  ;;  %v3001_v41 = vmul.f32 1.442695, %v2980_v29  ;;  %5426 = vmatpush3.bf16.msra.mxu0 %v7594_v26  ;;  %5427 = vmatprep.mubr.msk.bf16.mxu0 %vm5959_vm1, %v7554_v40 }
 0x6c9   :  { %5437 = vmatprep.subr.bf16.mxu0 %v7554_v40 }
 0x6ca   :  { %v5808_v45 = vpop.eup %5807  ;;  %5813 = vpow2.f32 %v3001_v41 }
 0x6cb   :  { %v2947_v20 = vpop.xlane.xlu1 %2946  ;;  %v3029_v57 = vsel %vm672_vm3, %v5808_v45, 0.0 }
 0x6cc   :  { %v5810_v52 = vpop.eup %5809  ;;  %v2981_v15 = vsub.f32 %v7595_v27, %v2947_v20  ;;  %3030 = vadd.xlane.f32.xlu0 %v3029_v57 }
 0x6cd   :  { %v2950_v55 = vpop.xlane.xlu0 %2949  ;;  %v3072_v31 = vpack.c.bf16 %v5810_v52, %v5808_v45  ;;  %v3032_v13 = vsel %vm672_vm3, %v5810_v52, 0.0 }
 0x6ce   :  { %v3003_v46 = vmul.f32 1.442695, %v2981_v15  ;;  %v2982_v47 = vsub.f32 %v7596_v16, %v2950_v55 }
 0x6cf   :  { %5422 = vmatmul.mubr.msk.bf16.vlgmr.msra.gmra.mrb[112].mxu1 %vm672_vm3, %v3072_v31 }
 0x6d0   :  { %5815 = vpow2.f32 %v3003_v46  ;;  %v3005_v8 = vmul.f32 1.442695, %v2982_v47  ;;  %5432 = vmatpush3.bf16.msra.mxu1 %v7597_v32  ;;  %3033 = vadd.xlane.f32.xlu0 %v3032_v13 }
 0x6d1   :  { %5433 = vmatprep.mubr.msk.bf16.mxu1 %vm5959_vm1, %v7554_v40  ;;  %5443 = vmatprep.subr.bf16.mxu1 %v7554_v40 }
 0x6d2   :  { %v5812_v36 = vpop.eup %5811  ;;  %5817 = vpow2.f32 %v3005_v8 }
 0x6d3   :  { %v2953_v44 = vpop.xlane.xlu1 %2952  ;;  %v3035_v43 = vsel %vm672_vm3, %v5812_v36, 0.0 }
 0x6d4   :  { %v5814_v33 = vpop.eup %5813  ;;  %v2983_v11 = vsub.f32 %v7598_v19, %v2953_v44  ;;  %3036 = vadd.xlane.f32.xlu1 %v3035_v43  ;;  %v7600_v44 = vld [vmem:[#allocation6_spill] sm:$0xff] }
 0x6d5   :  { %v2956_v12 = vpop.xlane.xlu0 %2955  ;;  %v3038_v35 = vsel %vm672_vm3, %v5814_v33, 0.0  ;;  %v3073_v0 = vpack.c.bf16 %v5814_v33, %v5812_v36 }
 0x6d6   :  { %v3007_v23 = vmul.f32 1.442695, %v2983_v11  ;;  %v2984_v37 = vsub.f32 %v7599_v25, %v2956_v12  ;;  %3039 = vadd.xlane.f32.xlu0 %v3038_v35  ;;  %v7601_v11 = vld [vmem:[#allocation5_spill] sm:$0xff] }
 0x6d7   :  { %5428 = vmatmul.mubr.msk.bf16.vlgmr.msra.gmra.mrb[84].mxu0 %vm672_vm3, %v3073_v0 }
 0x6d8   :  { %5819 = vpow2.f32 %v3007_v23  ;;  %v3009_v14 = vmul.f32 1.442695, %v2984_v37  ;;  %5438 = vmatpush3.bf16.msra.mxu0 %v7089_v58  ;;  %5439 = vmatprep.mubr.msk.bf16.mxu0 %vm5959_vm1, %v7554_v40 }
 0x6d9   :  { %5449 = vmatprep.subr.bf16.mxu0 %v7554_v40 }
 0x6da   :  { %v5816_v59 = vpop.eup %5815  ;;  %5821 = vpow2.f32 %v3009_v14 }
 0x6db   :  { %v2959_v42 = vpop.xlane.xlu1 %2958  ;;  %v3041_v3 = vsel %vm672_vm3, %v5816_v59, 0.0 }
 0x6dc   :  { %v5818_v1 = vpop.eup %5817  ;;  %v2985_v56 = vsub.f32 %v6978_v7, %v2959_v42  ;;  %3042 = vadd.xlane.f32.xlu1 %v3041_v3 }
 0x6dd   :  { %v2962_v18 = vpop.xlane.xlu0 %2961  ;;  %v3044_v2 = vsel %vm672_vm3, %v5818_v1, 0.0  ;;  %v3074_v9 = vpack.c.bf16 %v5818_v1, %v5816_v59 }
 0x6de   :  { %v3011_v22 = vmul.f32 1.442695, %v2985_v56  ;;  %v2986_v58 = vsub.f32 %v6980_v39, %v2962_v18  ;;  %3045 = vadd.xlane.f32.xlu0 %v3044_v2 }
 0x6df   :  { %5434 = vmatmul.mubr.msk.bf16.vlgmr.msra.gmra.mrb[116].mxu1 %vm672_vm3, %v3074_v9 }
 0x6e0   :  { %5823 = vpow2.f32 %v3011_v22  ;;  %v3013_v4 = vmul.f32 1.442695, %v2986_v58  ;;  %5444 = vmatpush3.bf16.msra.mxu1 %v7087_v24  ;;  %5445 = vmatprep.mubr.msk.bf16.mxu1 %vm5959_vm1, %v7554_v40 }
 0x6e1   :  { %5455 = vmatprep.subr.bf16.mxu1 %v7554_v40 }
 0x6e2   :  { %v5820_v7 = vpop.eup %5819  ;;  %5825 = vpow2.f32 %v3013_v4 }
 0x6e3   :  { %v2965_v21 = vpop.xlane.xlu1 %2964  ;;  %v3047_v10 = vsel %vm672_vm3, %v5820_v7, 0.0 }
 0x6e4   :  { %v5822_v17 = vpop.eup %5821  ;;  %v2987_v39 = vsub.f32 %v6997_v6, %v2965_v21  ;;  %3048 = vadd.xlane.f32.xlu1 %v3047_v10 }
 0x6e5   :  { %v2968_v38 = vpop.xlane.xlu0 %2967  ;;  %v3050_v60 = vsel %vm672_vm3, %v5822_v17, 0.0  ;;  %v3075_v34 = vpack.c.bf16 %v5822_v17, %v5820_v7 }
 0x6e6   :  { %v3015_v61 = vmul.f32 1.442695, %v2987_v39  ;;  %v2988_v24 = vsub.f32 %v7000_v63, %v2968_v38  ;;  %3051 = vadd.xlane.f32.xlu0 %v3050_v60 }
 0x6e7   :  { %5440 = vmatmul.mubr.msk.bf16.vlgmr.msra.gmra.mrb[88].mxu0 %vm672_vm3, %v3075_v34 }
 0x6e8   :  { %5827 = vpow2.f32 %v3015_v61  ;;  %v3017_v62 = vmul.f32 1.442695, %v2988_v24  ;;  %5451 = vmatprep.mubr.msk.bf16.mxu0 %vm5959_vm1, %v7554_v40 }
 0x6ea   :  { %v5824_v53 = vpop.eup %5823  ;;  %5829 = vpow2.f32 %v3017_v62 }
 0x6eb   :  { %v2971_v29 = vpop.xlane.xlu1 %2970  ;;  %v3053_v6 = vsel %vm672_vm3, %v5824_v53, 0.0 }
 0x6ec   :  { %v5826_v41 = vpop.eup %5825  ;;  %v2989_v26 = vsub.f32 %v7014_v5, %v2971_v29  ;;  %3054 = vadd.xlane.f32.xlu1 %v3053_v6 }
 0x6ed   :  { %v2974_v45 = vpop.xlane.xlu0 %2973  ;;  %v3056_v63 = vsel %vm672_vm3, %v5826_v41, 0.0  ;;  %v3076_v20 = vpack.c.bf16 %v5826_v41, %v5824_v53 }
 0x6ee   :  { %v3019_v57 = vmul.f32 1.442695, %v2989_v26  ;;  %v2990_v52 = vsub.f32 %v7017_v54, %v2974_v45  ;;  %3057 = vadd.xlane.f32.xlu0 %v3056_v63 }
 0x6ef   :  { %v3409_v27 = vpop.permute.xlu1 %3408  ;;  %5446 = vmatmul.mubr.msk.bf16.vlgmr.msra.gmra.mrb[120].mxu1 %vm672_vm3, %v3076_v20 }
 0x6f0   :  { %5831 = vpow2.f32 %v3019_v57  ;;  %v3021_v15 = vmul.f32 1.442695, %v2990_v52  ;;  %5456 = vmatpush3.bf16.msra.mxu1 %v3409_v27  ;;  %5457 = vmatprep.mubr.msk.bf16.mxu1 %vm5959_vm1, %v7554_v40 }
 0x6f1   :  { %v3362_v55 = vpop.permute.xlu0 %3361  ;;  %5479 = vmatprep.subr.bf16.mxu1 %v7554_v40 }
 0x6f2   :  { %v5828_v5 = vpop.eup %5827  ;;  %5833 = vpow2.f32 %v3021_v15  ;;  %5450 = vmatpush3.bf16.msra.mxu0 %v3362_v55 }
 0x6f3   :  { %v3059_v31 = vsel %vm672_vm3, %v5828_v5, 0.0  ;;  %v3640_v16 = vpop.permute.xlu1 %3639 }
 0x6f4   :  { %v5830_v46 = vpop.eup %5829  ;;  %3060 = vadd.xlane.f32.xlu0 %v3059_v31  ;;  %v3645_v33 = vsel %vm250_vm2, %v3640_v16, 0 }
 0x6f5   :  { %v3077_v54 = vpack.c.bf16 %v5830_v46, %v5828_v5  ;;  %v3062_v47 = vsel %vm672_vm3, %v5830_v46, 0.0  ;;  %v3691_v35 = vpop.permute.xlu0 %3690 }
 0x6f6   :  { %v3696_v0 = vsel %vm250_vm2, %v3691_v35, 0 }
 0x6f7   :  { %5452 = vmatmul.mubr.msk.bf16.vlgmr.msra.gmra.mrb[92].mxu0 %vm672_vm3, %v3077_v54  ;;  %v3638_v36 = vpop.permute.xlu1 %3637 }
 0x6f8   :  { %3063 = vadd.xlane.f32.xlu0 %v3062_v47 }
 0x6fa   :  { %v5832_v13 = vpop.eup %5831 }
 0x6fb   :  { %v3065_v8 = vsel %vm672_vm3, %v5832_v13, 0.0  ;;  %v3689_v12 = vpop.permute.xlu1 %3688 }
 0x6fc   :  { %v5834_v32 = vpop.eup %5833  ;;  %3066 = vadd.xlane.f32.xlu0 %v3065_v8 }
 0x6fd   :  { %3843 = vrot.lane.b32.xlu1 %v7600_v44, %s5968_s5  ;;  %v3078_v43 = vpack.c.bf16 %v5834_v32, %v5832_v13  ;;  %v3068_v19 = vsel %vm672_vm3, %v5834_v32, 0.0 }
 0x6ff   :  { %5458 = vmatmul.mubr.msk.bf16.vlgmr.msra.gmra.mrb[124].mxu1 %vm672_vm3, %v3078_v43  ;;  %v3742_v23 = vpop.permute.xlu1 %3741 }
 0x700   :  { %5480 = vmatpush3.bf16.xpose.msra.mxu1 %v3645_v33  ;;  %3069 = vadd.xlane.f32.xlu0 %v3068_v19  ;;  %v3747_v37 = vsel %vm250_vm2, %v3742_v23, 0 }
 0x701   :  { %3894 = vrot.lane.b32.xlu1 %v7601_v11, %s5968_s5  ;;  %5481 = vmatprep.mubr.msk.bf16.mxu1 %vm5959_vm1, %v7554_v40 }
 0x702   :  { %5485 = vmatprep.subr.bf16.mxu1 %v7554_v40 }
 0x703   :  { %v3740_v25 = vpop.permute.xlu1 %3739 }
 0x705   :  { %3945 = vrot.lane.b32.xlu1 %v6081_v51, %s5968_s5 }
 0x707   :  { %5482 = vmatmul.mubr.msk.bf16.vlgmr.msra.gmra.mrb[128].mxu1 %vm250_vm2, %v3638_v36  ;;  %v3793_v14 = vpop.permute.xlu1 %3792 }
 0x708   :  { %5486 = vmatpush3.bf16.xpose.msra.mxu1 %v3696_v0  ;;  %5487 = vmatprep.mubr.msk.bf16.mxu1 %vm5959_vm1, %v7554_v40  ;;  %v3798_v59 = vsel %vm250_vm2, %v3793_v14, 0 }
 0x709   :  { %3996 = vrot.lane.b32.xlu1 %v6077_v49, %s5968_s5  ;;  %5491 = vmatprep.subr.bf16.mxu1 %v7554_v40 }
 0x70d   :  { %3994 = vrot.lane.b32.xlu1 %v6077_v49, %s5969_s17 }
 0x70f   :  { %5488 = vmatmul.mubr.msk.bf16.vlgmr.msra.gmra.mrb[132].mxu1 %vm250_vm2, %v3689_v12 }
 0x710   :  { %5492 = vmatpush3.bf16.xpose.msra.mxu1 %v3747_v37  ;;  %5493 = vmatprep.mubr.msk.bf16.mxu1 %vm5959_vm1, %v7554_v40 }
 0x711   :  { %4222 = vrot.lane.b32.xlu1 %v6069_v30, %s5970_s18  ;;  %5497 = vmatprep.subr.bf16.mxu1 %v7554_v40  ;;  %v4908_v30 = vld [vmem:[%s7520_s3 + $0x8] sm:$0xf] }
 0x712   :  { %5647 = vmatprep.subr.msk.bf16.mxu0 %vm2269_vm4, %v4908_v30 }
 0x715   :  { %4316 = vrot.lane.b32.xlu1 %v6079_v50, %s5970_s18  ;;  %v3522_v50 = vsel %vm2269_vm4, %v4908_v30, 0 }
 0x716   :  { %3790 = vrot.lane.b32.xlu0 %v6075_v48, %s5969_s17  ;;  %5462 = vmatpush3.bf16.msra.mxu0 %v3522_v50 }
 0x717   :  { %5494 = vmatmul.mubr.msk.bf16.vlgmr.msra.gmra.mrb[136].mxu1 %vm250_vm2, %v3740_v25  ;;  %5503 = vmatprep.subr.bf16.mxu0 %v7554_v40 }
 0x718   :  { %5498 = vmatpush3.bf16.xpose.msra.mxu1 %v3798_v59  ;;  %5499 = vmatprep.mubr.msk.bf16.mxu1 %vm5959_vm1, %v7554_v40 }
 0x719   :  { %4363 = vrot.lane.b32.xlu1 %v6075_v48, %s5970_s18  ;;  %5509 = vmatprep.subr.bf16.mxu1 %v7554_v40 }
 0x71a   :  { %3841 = vrot.lane.b32.xlu0 %v7600_v44, %s5969_s17 }
 0x71e   :  { %3892 = vrot.lane.b32.xlu0 %v7601_v11, %s5969_s17 }
 0x722   :  { %3943 = vrot.lane.b32.xlu0 %v6081_v51, %s5969_s17 }
 0x726   :  { %4269 = vrot.lane.b32.xlu0 %v6065_v28, %s5970_s18 }
 0x751   :  { %v3025_v48 = vpop.xlane.xlu0 %3024 }
 0x752   :  { %5835 = vrcp.f32 %v3025_v48 }
 0x753   :  { %v3028_v1 = vpop.xlane.xlu1 %3027 }
 0x754   :  { %5837 = vrcp.f32 %v3028_v1 }
 0x759   :  { %v3031_v42 = vpop.xlane.xlu0 %3030 }
 0x75a   :  { %5839 = vrcp.f32 %v3031_v42 }
 0x75c   :  { %v5836_v41 = vpop.eup %5835 }
 0x75d   :  { %v3034_v3 = vpop.xlane.xlu0 %3033 }
 0x75e   :  { %5841 = vrcp.f32 %v3034_v3  ;;  %v5838_v45 = vpop.eup %5837 }
 0x761   :  { %v3037_v18 = vpop.xlane.xlu1 %3036 }
 0x762   :  { %5843 = vrcp.f32 %v3037_v18 }
 0x763   :  { %v3040_v56 = vpop.xlane.xlu0 %3039 }
 0x764   :  { %5845 = vrcp.f32 %v3040_v56  ;;  %v5840_v46 = vpop.eup %5839 }
 0x768   :  { %v5842_v16 = vpop.eup %5841 }
 0x769   :  { %v3043_v9 = vpop.xlane.xlu1 %3042 }
 0x76a   :  { %5847 = vrcp.f32 %v3043_v9 }
 0x76b   :  { %v3046_v2 = vpop.xlane.xlu0 %3045 }
 0x76c   :  { %5849 = vrcp.f32 %v3046_v2  ;;  %v5844_v19 = vpop.eup %5843 }
 0x76e   :  { %v5846_v35 = vpop.eup %5845 }
 0x771   :  { %v7205_v58 = vpop.xlane.xlu1 %3048 }
 0x772   :  { %5851 = vrcp.f32 %v7205_v58 }
 0x773   :  { %v7203_v22 = vpop.xlane.xlu0 %3051 }
 0x774   :  { %5853 = vrcp.f32 %v7203_v22  ;;  %v5848_v30 = vpop.eup %5847 }
 0x776   :  { %v5850_v48 = vpop.eup %5849 }
 0x779   :  { %v7209_v7 = vpop.xlane.xlu1 %3054 }
 0x77a   :  { %5855 = vrcp.f32 %v7209_v7 }
 0x77b   :  { %v7207_v4 = vpop.xlane.xlu0 %3057 }
 0x77c   :  { %5857 = vrcp.f32 %v7207_v4  ;;  %v5852_v9 = vpop.eup %5851 }
 0x77d   :  { %v3844_v10 = vpop.permute.xlu1 %3843 }
 0x77e   :  { %v3849_v43 = vsel %vm250_vm2, %v3844_v10, 0  ;;  %v5854_v10 = vpop.eup %5853 }
 0x781   :  { %v7211_v21 = vpop.xlane.xlu0 %3060  ;;  %v3895_v39 = vpop.permute.xlu1 %3894 }
 0x782   :  { %v3900_v61 = vsel %vm250_vm2, %v3895_v39, 0  ;;  %5859 = vrcp.f32 %v7211_v21 }
 0x785   :  { %v7213_v28 = vpop.xlane.xlu0 %3063  ;;  %v7219_v60 = vpop.permute.xlu1 %3945 }
 0x786   :  { %5861 = vrcp.f32 %v7213_v28 }
 0x789   :  { %v7215_v17 = vpop.xlane.xlu0 %3066  ;;  %v3997_v62 = vpop.permute.xlu1 %3996 }
 0x78a   :  { %v4002_v29 = vsel %vm250_vm2, %v3997_v62, 0  ;;  %5863 = vrcp.f32 %v7215_v17 }
 0x78d   :  { %v7217_v38 = vpop.xlane.xlu0 %3069  ;;  %v3995_v55 = vpop.permute.xlu1 %3994 }
 0x78e   :  { %5865 = vrcp.f32 %v7217_v38  ;;  %v7256_v38 = vld [vmem:[#allocation2 + $0x30] sm:$0xff] }
 0x791   :  { %v3791_v34 = vpop.permute.xlu0 %3790 }
 0x792   :  { %5500 = vmatmul.mubr.msk.bf16.vlgmr.msra.gmra.mrb[140].mxu1 %vm250_vm2, %v3791_v34 }
 0x793   :  { %5510 = vmatpush3.bf16.xpose.msra.mxu1 %v3900_v61  ;;  %5511 = vmatprep.mubr.msk.bf16.mxu1 %vm5959_vm1, %v7554_v40 }
 0x794   :  { %5521 = vmatprep.subr.bf16.mxu1 %v7554_v40 }
 0x795   :  { %v7226_v24 = vpop.permute.xlu0 %3841 }
 0x799   :  { %v3893_v53 = vpop.permute.xlu0 %3892 }
 0x79a   :  { %v3119_v6 = vpop.f32.mrb[80].mxu0  ;;  %5512 = vmatmul.mubr.msk.bf16.vlgmr.msra.gmra.mrb[144].mxu1 %vm250_vm2, %v3893_v53  ;;  %v5856_v53 = vpop.eup %5855 }
 0x79b   :  { %5522 = vmatpush3.bf16.xpose.msra.mxu1 %v4002_v29  ;;  %v5417_v26 = vpop.f32.mrb[81].mxu0  ;;  %5523 = vmatprep.mubr.msk.bf16.mxu1 %vm5959_vm1, %v7554_v40  ;;  %v3471_v20 = vmul.f32 %v5836_v41, %v3119_v6  ;;  %v5858_v6 = vpop.eup %5857 }
 0x79c   :  { %v3122_v63 = vpop.f32.mrb[82].mxu0  ;;  %5533 = vmatprep.subr.bf16.mxu1 %v7554_v40 }
 0x79d   :  { %v3472_v57 = vmul.f32 %v5838_v45, %v3122_v63  ;;  %v5418_v52 = vpop.f32.mrb[83].mxu0  ;;  %v7233_v27 = vpop.permute.xlu0 %3943 }
 0x79f   :  { %v3487_v15 = vpack.c.bf16 %v3472_v57, %v3471_v20  ;;  %v5860_v20 = vpop.eup %5859 }
 0x7a0   :  { %v5862_v28 = vpop.eup %5861 }
 0x7a1   :  { %5463 = vmatprep.mubr.msk.bf16.mxu0 %vm250_vm2, %v3487_v15  ;;  %v4270_v5 = vpop.permute.xlu0 %4269 }
 0x7a2   :  { %v3166_v31 = vpop.f32.mrb[112].mxu1  ;;  %5524 = vmatmul.mubr.msk.bf16.vlgmr.msra.gmra.mrb[148].mxu1 %vm250_vm2, %v3995_v55 }
 0x7a3   :  { %5534 = vmatpush3.bf16.msra.mxu1 %v4270_v5  ;;  %v5423_v54 = vpop.f32.mrb[113].mxu1  ;;  %5535 = vmatprep.mubr.msk.bf16.mxu1 %vm5959_vm1, %v7554_v40  ;;  %v3473_v13 = vmul.f32 %v5840_v46, %v3166_v31  ;;  %v5864_v46 = vpop.eup %5863 }
 0x7a4   :  { %v3169_v47 = vpop.f32.mrb[114].mxu1  ;;  %5545 = vmatprep.subr.bf16.mxu1 %v7554_v40  ;;  %v5866_v17 = vpop.eup %5865 }
 0x7a5   :  { %v3474_v8 = vmul.f32 %v5842_v16, %v3169_v47  ;;  %v5424_v32 = vpop.f32.mrb[115].mxu1 }
 0x7a7   :  { %v3488_v36 = vpack.c.bf16 %v3474_v8, %v3473_v13 }
 0x7a9   :  { %5464 = vmatmul.mubr.msk.bf16.vlgmr.msra.gmra.mrb[64].mxu0 %vm250_vm2, %v3488_v36 }
 0x7aa   :  { %5504 = vmatpush3.bf16.xpose.msra.mxu0 %v3849_v43  ;;  %v3213_v33 = vpop.f32.mrb[84].mxu0 }
 0x7ab   :  { %v5429_v12 = vpop.f32.mrb[85].mxu0  ;;  %5515 = vmatprep.subr.bf16.mxu0 %v7554_v40  ;;  %v3475_v23 = vmul.f32 %v5844_v19, %v3213_v33  ;;  %v7259_v33 = vld [vmem:[#allocation2 + $0x38] sm:$0xff] }
 0x7ac   :  { %v3216_v0 = vpop.f32.mrb[86].mxu0 }
 0x7ad   :  { %v3476_v25 = vmul.f32 %v5846_v35, %v3216_v0  ;;  %v5430_v37 = vpop.f32.mrb[87].mxu0 }
 0x7af   :  { %v3489_v14 = vpack.c.bf16 %v3476_v25, %v3475_v23 }
 0x7b1   :  { %5467 = vmatprep.mubr.msk.bf16.mxu0 %vm250_vm2, %v3489_v14  ;;  %v4048_v14 = vld [vmem:[#allocation2 + $0x70] sm:$0xff] }
 0x7b2   :  { %v3260_v59 = vpop.f32.mrb[116].mxu1 }
 0x7b3   :  { %v5435_v50 = vpop.f32.mrb[117].mxu1  ;;  %v3477_v3 = vmul.f32 %v5848_v30, %v3260_v59  ;;  %v3951_v59 = vsel %vm250_vm2, %v7219_v60, 0 }
 0x7b4   :  { %v3263_v42 = vpop.f32.mrb[118].mxu1  ;;  %v4049_v50 = vld [vmem:[#allocation2 + $0x78] sm:$0xff] }
 0x7b5   :  { %v3478_v1 = vmul.f32 %v5850_v48, %v3263_v42  ;;  %v5436_v56 = vpop.f32.mrb[119].mxu1 }
 0x7b7   :  { %v3490_v18 = vpack.c.bf16 %v3478_v1, %v3477_v3 }
 0x7b9   :  { %5468 = vmatmul.mubr.msk.bf16.gmra.mrb[68].mxu0 %vm250_vm2, %v3490_v18  ;;  %v4223_v18 = vpop.permute.xlu1 %4222 }
 0x7ba   :  { %v3307_v2 = vpop.f32.mrb[88].mxu0 }
 0x7bb   :  { %v5441_v58 = vpop.f32.mrb[89].mxu0  ;;  %v3479_v39 = vmul.f32 %v5852_v9, %v3307_v2 }
 0x7bc   :  { %v3310_v22 = vpop.f32.mrb[90].mxu0  ;;  %v7289_v58 = vld [vmem:[#allocation2 + $0xb8] sm:$0xff] }
 0x7bd   :  { %v3480_v34 = vmul.f32 %v5854_v10, %v3310_v22  ;;  %v5442_v61 = vpop.f32.mrb[91].mxu0 }
 0x7bf   :  { %v3491_v62 = vpack.c.bf16 %v3480_v34, %v3479_v39 }
 0x7c1   :  { %5471 = vmatprep.mubr.msk.bf16.mxu0 %vm250_vm2, %v3491_v62 }
 0x7c2   :  { %v3354_v7 = vpop.f32.mrb[120].mxu1 }
 0x7c3   :  { %v5447_v29 = vpop.f32.mrb[121].mxu1  ;;  %v3481_v41 = vmul.f32 %v5856_v53, %v3354_v7  ;;  %v4317_v7 = vpop.permute.xlu1 %4316  ;;  %v4052_v53 = vld [vmem:[#allocation2 + $0xf0] sm:$0xff] }
 0x7c4   :  { %v3357_v4 = vpop.f32.mrb[122].mxu1 }
 0x7c5   :  { %v3482_v26 = vmul.f32 %v5858_v6, %v3357_v4  ;;  %v5448_v45 = vpop.f32.mrb[123].mxu1  ;;  %v4053_v6 = vld [vmem:[#allocation2 + $0xf8] sm:$0xff] }
 0x7c7   :  { %v3492_v63 = vpack.c.bf16 %v3482_v26, %v3481_v41 }
 0x7c9   :  { %5472 = vmatmul.mubr.msk.bf16.gmra.mrb[72].mxu0 %vm250_vm2, %v3492_v63 }
 0x7ca   :  { %v3401_v21 = vpop.f32.mrb[92].mxu0 }
 0x7cb   :  { %v3483_v57 = vmul.f32 %v5860_v20, %v3401_v21  ;;  %v5453_v52 = vpop.f32.mrb[93].mxu0  ;;  %v4364_v21 = vpop.permute.xlu1 %4363 }
 0x7cc   :  { %v3404_v15 = vpop.f32.mrb[94].mxu0 }
 0x7cd   :  { %v3484_v55 = vmul.f32 %v5862_v28, %v3404_v15  ;;  %v5454_v5 = vpop.f32.mrb[95].mxu0 }
 0x7cf   :  { %v3493_v31 = vpack.c.bf16 %v3484_v55, %v3483_v57 }
 0x7d1   :  { %5475 = vmatprep.mubr.msk.bf16.mxu0 %vm250_vm2, %v3493_v31 }
 0x7d2   :  { %v3448_v54 = vpop.f32.mrb[124].mxu1 }
 0x7d3   :  { %v3485_v16 = vmul.f32 %v5864_v46, %v3448_v54  ;;  %v5459_v47 = vpop.f32.mrb[125].mxu1 }
 0x7d4   :  { %v3451_v13 = vpop.f32.mrb[126].mxu1 }
 0x7d5   :  { %v3486_v8 = vmul.f32 %v5866_v17, %v3451_v13  ;;  %v5460_v32 = vpop.f32.mrb[127].mxu1 }
 0x7d7   :  { %v3494_v36 = vpack.c.bf16 %v3486_v8, %v3485_v16 }
 0x7d9   :  { %5476 = vmatmul.mubr.msk.bf16.gmra.mrb[76].mxu0 %vm250_vm2, %v3494_v36 }
 0x7da   :  { %v3681_v43 = vpop.f32.mrb[128].mxu1  ;;  %5505 = vmatprep.mubr.msk.bf16.mxu0 %vm5959_vm1, %v7554_v40 }
 0x7db   :  { %v4054_v19 = vadd.f32 %v7256_v38, %v3681_v43  ;;  %v5483_v12 = vpop.f32.mrb[129].mxu1 }
 0x7dc   :  { %v3684_v35 = vpop.f32.mrb[130].mxu1 }
 0x7dd   :  { %v7265_v0 = vadd.f32 %v7259_v33, %v3684_v35  ;;  %v5484_v23 = vpop.f32.mrb[131].mxu1  ;;  %v4070_v25 = vsel %vm672_vm3, %v4054_v19, -inf }
 0x7de   :  { %4071 = vmax.xlane.f32.xlu0 %v4070_v25 }
 0x7df   :  { %v4073_v37 = vsel %vm672_vm3, %v7265_v0, -inf }
 0x7e0   :  { %4074 = vmax.xlane.f32.xlu1 %v4073_v37 }
 0x7e1   :  { %5506 = vmatmul.mubr.msk.bf16.vlgmr.msra.gmra.mrb[96].mxu0 %vm250_vm2, %v7226_v24  ;;  %v7283_v24 = vld [vmem:[#allocation2 + $0xb0] sm:$0xff] }
 0x7e2   :  { %5516 = vmatpush3.bf16.xpose.msra.mxu0 %v3951_v59  ;;  %v3732_v30 = vpop.f32.mrb[132].mxu1  ;;  %5517 = vmatprep.mubr.msk.bf16.mxu0 %vm5959_vm1, %v7554_v40 }
 0x7e3   :  { %v7276_v48 = vadd.f32 %v4048_v14, %v3732_v30  ;;  %v5489_v42 = vpop.f32.mrb[133].mxu1  ;;  %5527 = vmatprep.subr.bf16.mxu0 %v7554_v40 }
 0x7e4   :  { %v3735_v3 = vpop.f32.mrb[134].mxu1 }
 0x7e5   :  { %v7279_v1 = vadd.f32 %v4049_v50, %v3735_v3  ;;  %v5490_v56 = vpop.f32.mrb[135].mxu1  ;;  %v4076_v60 = vsel %vm672_vm3, %v7276_v48, -inf }
 0x7e6   :  { %4077 = vmax.xlane.f32.xlu0 %v4076_v60 }
 0x7e7   :  { %v4079_v2 = vsel %vm672_vm3, %v7279_v1, -inf }
 0x7e9   :  { %5518 = vmatmul.mubr.msk.bf16.vlgmr.msra.gmra.mrb[100].mxu0 %vm250_vm2, %v7233_v27 }
 0x7ea   :  { %5528 = vmatpush3.bf16.msra.mxu0 %v4223_v18  ;;  %4080 = vmax.xlane.f32.xlu0 %v4079_v2  ;;  %v3783_v9 = vpop.f32.mrb[136].mxu1 }
 0x7eb   :  { %v7292_v10 = vadd.f32 %v7283_v24, %v3783_v9  ;;  %v5495_v22 = vpop.f32.mrb[137].mxu1  ;;  %5529 = vmatprep.mubr.msk.bf16.mxu0 %vm5959_vm1, %v7554_v40  ;;  %5539 = vmatprep.subr.bf16.mxu0 %v7554_v40 }
 0x7ec   :  { %v3786_v39 = vpop.f32.mrb[138].mxu1 }
 0x7ed   :  { %v7298_v27 = vadd.f32 %v7289_v58, %v3786_v39  ;;  %v5496_v34 = vpop.f32.mrb[139].mxu1  ;;  %v4082_v61 = vsel %vm672_vm3, %v7292_v10, -inf }
 0x7ee   :  { %4083 = vmax.xlane.f32.xlu1 %v4082_v61 }
 0x7ef   :  { %v4085_v62 = vsel %vm672_vm3, %v7298_v27, -inf }
 0x7f0   :  { %4086 = vmax.xlane.f32.xlu0 %v4085_v62 }
 0x865   :  { %v3834_v29 = vpop.f32.mrb[140].mxu1 }
 0x866   :  { %v7304_v4 = vadd.f32 %v4052_v53, %v3834_v29  ;;  %v5501_v41 = vpop.f32.mrb[141].mxu1 }
 0x867   :  { %v3837_v26 = vpop.f32.mrb[142].mxu1 }
 0x868   :  { %v7306_v45 = vadd.f32 %v4053_v6, %v3837_v26  ;;  %v5502_v63 = vpop.f32.mrb[143].mxu1  ;;  %v4088_v20 = vsel %vm672_vm3, %v7304_v4, -inf }
 0x869   :  { %4089 = vmax.xlane.f32.xlu1 %v4088_v20 }
 0x86a   :  { %v4091_v57 = vsel %vm672_vm3, %v7306_v45, -inf }
 0x86b   :  { %4092 = vmax.xlane.f32.xlu0 %v4091_v57  ;;  %v4072_v52 = vpop.xlane.xlu0 %4071 }
 0x86c   :  { %v4118_v28 = vsub.f32 %v4054_v19, %v4072_v52 }
 0x86d   :  { %v4075_v15 = vpop.xlane.xlu1 %4074  ;;  %v3936_v55 = vpop.f32.mrb[144].mxu1 }
 0x86e   :  { %v4134_v5 = vmul.f32 1.442695, %v4118_v28  ;;  %v4119_v31 = vsub.f32 %v7265_v0, %v4075_v15  ;;  %v7313_v46 = vadd.f32 %v4048_v14, %v3936_v55  ;;  %v5513_v54 = vpop.f32.mrb[145].mxu1 }
 0x86f   :  { %v3939_v16 = vpop.f32.mrb[146].mxu1 }
 0x870   :  { %v4136_v47 = vmul.f32 1.442695, %v4119_v31  ;;  %v7315_v17 = vadd.f32 %v4049_v50, %v3939_v16  ;;  %v5514_v13 = vpop.f32.mrb[147].mxu1  ;;  %v4100_v8 = vsel %vm672_vm3, %v7313_v46, -inf  ;;  %5867 = vpow2.f32 %v4134_v5 }
 0x871   :  { %4101 = vmax.xlane.f32.xlu1 %v4100_v8 }
 0x872   :  { %5869 = vpow2.f32 %v4136_v47  ;;  %v4103_v32 = vsel %vm672_vm3, %v7315_v17, -inf }
 0x873   :  { %4104 = vmax.xlane.f32.xlu0 %v4103_v32  ;;  %v4078_v36 = vpop.xlane.xlu0 %4077 }
 0x874   :  { %v4120_v43 = vsub.f32 %v7276_v48, %v4078_v36 }
 0x875   :  { %v4038_v19 = vpop.f32.mrb[148].mxu1 }
 0x876   :  { %v7322_v12 = vadd.f32 %v4052_v53, %v4038_v19  ;;  %v5525_v35 = vpop.f32.mrb[149].mxu1  ;;  %v4138_v0 = vmul.f32 1.442695, %v4120_v43 }
 0x877   :  { %v4041_v23 = vpop.f32.mrb[150].mxu1  ;;  %v4081_v25 = vpop.xlane.xlu0 %4080 }
 0x878   :  { %v7324_v37 = vadd.f32 %v4053_v6, %v4041_v23  ;;  %v4121_v14 = vsub.f32 %v7279_v1, %v4081_v25  ;;  %v5526_v59 = vpop.f32.mrb[151].mxu1  ;;  %v4112_v30 = vsel %vm672_vm3, %v7322_v12, -inf  ;;  %5871 = vpow2.f32 %v4138_v0 }
 0x879   :  { %4113 = vmax.xlane.f32.xlu1 %v4112_v30 }
 0x87a   :  { %v4140_v50 = vmul.f32 1.442695, %v4121_v14  ;;  %v4115_v48 = vsel %vm672_vm3, %v7324_v37, -inf  ;;  %v7331_v42 = vpop.eup %5867 }
 0x87b   :  { %v4084_v3 = vpop.xlane.xlu1 %4083  ;;  %4116 = vmax.xlane.f32.xlu0 %v4115_v48 }
 0x87c   :  { %v7333_v56 = vpop.eup %5869  ;;  %5873 = vpow2.f32 %v4140_v50  ;;  %v4122_v60 = vsub.f32 %v7292_v10, %v4084_v3 }
 0x87d   :  { %v4087_v1 = vpop.xlane.xlu0 %4086  ;;  %v4214_v18 = vpack.c.bf16 %v7333_v56, %v7331_v42 }
 0x87e   :  { %v4142_v2 = vmul.f32 1.442695, %v4122_v60  ;;  %v4123_v9 = vsub.f32 %v7298_v27, %v4087_v1 }
 0x87f   :  { %5530 = vmatmul.mubr.msk.bf16.vlgmr.msra.gmra.mrb[104].mxu0 %vm672_vm3, %v4214_v18 }
 0x880   :  { %v4144_v22 = vmul.f32 1.442695, %v4123_v9  ;;  %5540 = vmatpush3.bf16.msra.mxu0 %v4317_v7  ;;  %5541 = vmatprep.mubr.msk.bf16.mxu0 %vm5959_vm1, %v7554_v40  ;;  %5875 = vpow2.f32 %v4142_v2 }
 0x881   :  { %5551 = vmatprep.subr.bf16.mxu0 %v7554_v40 }
 0x882   :  { %5877 = vpow2.f32 %v4144_v22  ;;  %v5872_v39 = vpop.eup %5871 }
 0x886   :  { %v5874_v10 = vpop.eup %5873 }
 0x887   :  { %v4215_v34 = vpack.c.bf16 %v5874_v10, %v5872_v39  ;;  %v4175_v8 = vsel %vm672_vm3, %v5874_v10, 0.0 }
 0x889   :  { %5536 = vmatmul.mubr.msk.bf16.vlgmr.msra.gmra.mrb[152].mxu1 %vm672_vm3, %v4215_v34 }
 0x88a   :  { %5546 = vmatpush3.bf16.msra.mxu1 %v4364_v21  ;;  %5547 = vmatprep.mubr.msk.bf16.mxu1 %vm5959_vm1, %v7554_v40  ;;  %v5876_v27 = vpop.eup %5875 }
 0x88b   :  { %5557 = vmatprep.subr.bf16.mxu1 %v7554_v40 }
 0x88c   :  { %v5878_v61 = vpop.eup %5877 }
 0x88d   :  { %v4216_v62 = vpack.c.bf16 %v5878_v61, %v5876_v27  ;;  %v4181_v32 = vsel %vm672_vm3, %v5878_v61, 0.0 }
 0x88f   :  { %5542 = vmatmul.mubr.msk.bf16.vlgmr.msra.gmra.mrb[108].mxu0 %vm672_vm3, %v4216_v62 }
 0x890   :  { %5553 = vmatprep.mubr.msk.bf16.mxu0 %vm5959_vm1, %v7554_v40 }
 0x8b4   :  { %v3885_v7 = vpop.f32.mrb[96].mxu0 }
 0x8b5   :  { %v7351_v53 = vadd.f32 %v7256_v38, %v3885_v7  ;;  %v5507_v29 = vpop.f32.mrb[97].mxu0 }
 0x8b6   :  { %v3888_v6 = vpop.f32.mrb[98].mxu0 }
 0x8b7   :  { %v7354_v41 = vadd.f32 %v7259_v33, %v3888_v6  ;;  %v5508_v26 = vpop.f32.mrb[99].mxu0  ;;  %v4094_v63 = vsel %vm672_vm3, %v7351_v53, -inf }
 0x8b8   :  { %4095 = vmax.xlane.f32.xlu1 %v4094_v63 }
 0x8b9   :  { %v4097_v20 = vsel %vm672_vm3, %v7354_v41, -inf }
 0x8ba   :  { %4098 = vmax.xlane.f32.xlu0 %v4097_v20 }
 0x8bc   :  { %v3987_v21 = vpop.f32.mrb[100].mxu0 }
 0x8bd   :  { %v5519_v57 = vpop.f32.mrb[101].mxu0  ;;  %v7365_v38 = vadd.f32 %v7283_v24, %v3987_v21 }
 0x8be   :  { %v3990_v52 = vpop.f32.mrb[102].mxu0 }
 0x8bf   :  { %v5520_v28 = vpop.f32.mrb[103].mxu0  ;;  %v7368_v33 = vadd.f32 %v7289_v58, %v3990_v52  ;;  %v4106_v15 = vsel %vm672_vm3, %v7365_v38, -inf }
 0x8c1   :  { %v4109_v55 = vsel %vm672_vm3, %v7368_v33, -inf }
 0x8c9   :  { %4457 = vrot.lane.b32.xlu1 %v7601_v11, %s5970_s18 }
 0x8d0   :  { %4410 = vrot.lane.b32.xlu0 %v7600_v44, %s5970_s18 }
 0x8ed   :  { %4107 = vmax.xlane.f32.xlu1 %v4106_v15 }
 0x8ef   :  { %4110 = vmax.xlane.f32.xlu0 %v4109_v55 }
 0x8f6   :  { %v4090_v5 = vpop.xlane.xlu1 %4089 }
 0x8f7   :  { %v4124_v11 = vsub.f32 %v7304_v4, %v4090_v5  ;;  %v4169_v4 = vsel %vm672_vm3, %v7333_v56, 0.0 }
 0x8f8   :  { %v4093_v31 = vpop.xlane.xlu0 %4092 }
 0x8f9   :  { %v4146_v54 = vmul.f32 1.442695, %v4124_v11  ;;  %v4125_v44 = vsub.f32 %v7306_v45, %v4093_v31  ;;  %v4166_v45 = vsel %vm672_vm3, %v7331_v42, 0.0 }
 0x8fb   :  { %v4148_v24 = vmul.f32 1.442695, %v4125_v44  ;;  %5879 = vpow2.f32 %v4146_v54 }
 0x8fd   :  { %5881 = vpow2.f32 %v4148_v24 }
 0x8fe   :  { %4551 = vrot.lane.b32.xlu1 %v6077_v49, %s5970_s18  ;;  %v4178_v49 = vsel %vm672_vm3, %v5876_v27, 0.0  ;;  %v4102_v19 = vpop.xlane.xlu1 %4101 }
 0x8ff   :  { %v4128_v0 = vsub.f32 %v7313_v46, %v4102_v19 }
 0x900   :  { %v4105_v36 = vpop.xlane.xlu0 %4104 }
 0x901   :  { %v4129_v35 = vsub.f32 %v7315_v17, %v4105_v36  ;;  %v4154_v25 = vmul.f32 1.442695, %v4128_v0 }
 0x903   :  { %v4156_v23 = vmul.f32 1.442695, %v4129_v35 }
 0x905   :  { %4504 = vrot.lane.b32.xlu0 %v6081_v51, %s5970_s18  ;;  %v5880_v58 = vpop.eup %5879  ;;  %v4172_v51 = vsel %vm672_vm3, %v5872_v39, 0.0  ;;  %5883 = vpow2.f32 %v4156_v23 }
 0x906   :  { %v4184_v13 = vsel %vm672_vm3, %v5880_v58, 0.0  ;;  %5885 = vpow2.f32 %v4154_v25  ;;  %v4114_v14 = vpop.xlane.xlu1 %4113 }
 0x907   :  { %v5882_v16 = vpop.eup %5881  ;;  %v4132_v28 = vsub.f32 %v7322_v12, %v4114_v14  ;;  %v4933_v12 = vld [vmem:[%s7520_s3 + $0xc] sm:$0xf] }
 0x908   :  { %v4217_v47 = vpack.c.bf16 %v5882_v16, %v5880_v58  ;;  %v4187_v43 = vsel %vm672_vm3, %v5882_v16, 0.0  ;;  %v4117_v59 = vpop.xlane.xlu0 %4116 }
 0x909   :  { %v4133_v52 = vsub.f32 %v7324_v37, %v4117_v59  ;;  %v4162_v15 = vmul.f32 1.442695, %v4132_v28 }
 0x90a   :  { %5548 = vmatmul.mubr.msk.bf16.vlgmr.msra.gmra.mrb[156].mxu1 %vm672_vm3, %v4217_v47 }
 0x90b   :  { %5559 = vmatprep.mubr.msk.bf16.mxu1 %vm5959_vm1, %v7554_v40 }
 0x90f   :  { %v5884_v42 = vpop.eup %5883 }
 0x910   :  { %v5886_v1 = vpop.eup %5885 }
 0x911   :  { %v4219_v18 = vpack.c.bf16 %v5884_v42, %v5886_v1  ;;  %v4196_v7 = vsel %vm672_vm3, %v5886_v1, 0.0 }
 0x922   :  { %4170 = vadd.xlane.f32.xlu1 %v4169_v4 }
 0x924   :  { %4167 = vadd.xlane.f32.xlu0 %v4166_v45 }
 0x926   :  { %4179 = vadd.xlane.f32.xlu1 %v4178_v49 }
 0x928   :  { %4173 = vadd.xlane.f32.xlu0 %v4172_v51  ;;  %v4665_v51 = vsel %vm2269_vm4, %v4933_v12, 0 }
 0x92a   :  { %4185 = vadd.xlane.f32.xlu1 %v4184_v13 }
 0x92c   :  { %4176 = vadd.xlane.f32.xlu0 %v4175_v8 }
 0x930   :  { %4182 = vadd.xlane.f32.xlu0 %v4181_v32 }
 0x934   :  { %4188 = vadd.xlane.f32.xlu0 %v4187_v43 }
 0x945   :  { %v4096_v30 = vpop.xlane.xlu1 %4095 }
 0x946   :  { %v4126_v50 = vsub.f32 %v7351_v53, %v4096_v30  ;;  %v4199_v53 = vsel %vm672_vm3, %v5884_v42, 0.0 }
 0x947   :  { %v4099_v48 = vpop.xlane.xlu0 %4098 }
 0x948   :  { %v4150_v3 = vmul.f32 1.442695, %v4126_v50  ;;  %v4127_v56 = vsub.f32 %v7354_v41, %v4099_v48 }
 0x949   :  { %v4458_v60 = vpop.permute.xlu1 %4457 }
 0x94a   :  { %5887 = vpow2.f32 %v4150_v3  ;;  %v4152_v17 = vmul.f32 1.442695, %v4127_v56  ;;  %5558 = vmatpush3.bf16.msra.mxu1 %v4458_v60 }
 0x94b   :  { %v4411_v46 = vpop.permute.xlu0 %4410  ;;  %5569 = vmatprep.subr.bf16.mxu1 %v7554_v40 }
 0x94c   :  { %5889 = vpow2.f32 %v4152_v17  ;;  %5552 = vmatpush3.bf16.msra.mxu0 %v4411_v46 }
 0x94d   :  { %5560 = vmatmul.mubr.msk.bf16.vlgmr.msra.gmra.mrb[160].mxu1 %vm672_vm3, %v4219_v18  ;;  %5563 = vmatprep.subr.bf16.mxu0 %v7554_v40 }
 0x94e   :  { %5571 = vmatprep.mubr.msk.bf16.mxu1 %vm5959_vm1, %v7554_v40 }
 0x952   :  { %v7402_v2 = vpop.f32.mrb[104].mxu0 }
 0x953   :  { %v5531_v9 = vpop.f32.mrb[105].mxu0 }
 0x954   :  { %v5888_v22 = vpop.eup %5887  ;;  %v7404_v39 = vpop.f32.mrb[106].mxu0 }
 0x955   :  { %v5532_v10 = vpop.f32.mrb[107].mxu0  ;;  %v4190_v34 = vsel %vm672_vm3, %v5888_v22, 0.0 }
 0x956   :  { %v5890_v27 = vpop.eup %5889  ;;  %4191 = vadd.xlane.f32.xlu1 %v4190_v34 }
 0x957   :  { %v4193_v61 = vsel %vm672_vm3, %v5890_v27, 0.0  ;;  %v4218_v62 = vpack.c.bf16 %v5890_v27, %v5888_v22 }
 0x958   :  { %4194 = vadd.xlane.f32.xlu0 %v4193_v61 }
 0x959   :  { %5554 = vmatmul.mubr.msk.bf16.vlgmr.msra.gmra.mrb[112].mxu0 %vm672_vm3, %v4218_v62 }
 0x95a   :  { %4197 = vadd.xlane.f32.xlu1 %v4196_v7  ;;  %5565 = vmatprep.mubr.msk.bf16.mxu0 %vm5959_vm1, %v7554_v40  ;;  %v4164_v40 = vmul.f32 1.442695, %v4133_v52 }
 0x95c   :  { %v7413_v29 = vpop.f32.mrb[152].mxu1  ;;  %4200 = vadd.xlane.f32.xlu0 %v4199_v53  ;;  %5891 = vpow2.f32 %v4164_v40 }
 0x95d   :  { %v5537_v6 = vpop.f32.mrb[153].mxu1  ;;  %5893 = vpow2.f32 %v4162_v15 }
 0x95e   :  { %v7415_v41 = vpop.f32.mrb[154].mxu1 }
 0x95f   :  { %v5538_v26 = vpop.f32.mrb[155].mxu1 }
 0x962   :  { %v7417_v63 = vpop.f32.mrb[108].mxu0 }
 0x963   :  { %v5543_v20 = vpop.f32.mrb[109].mxu0 }
 0x964   :  { %v7419_v21 = vpop.f32.mrb[110].mxu0 }
 0x965   :  { %v5544_v57 = vpop.f32.mrb[111].mxu0 }
 0x966   :  { %v5892_v31 = vpop.eup %5891 }
 0x967   :  { %v5894_v58 = vpop.eup %5893  ;;  %v4211_v8 = vsel %vm672_vm3, %v5892_v31, 0.0 }
 0x968   :  { %v4221_v47 = vpack.c.bf16 %v5892_v31, %v5894_v58  ;;  %v4208_v13 = vsel %vm672_vm3, %v5894_v58, 0.0 }
 0x97a   :  { %v4108_v55 = vpop.xlane.xlu1 %4107 }
 0x97b   :  { %v4130_v5 = vsub.f32 %v7365_v38, %v4108_v55 }
 0x97c   :  { %v4111_v11 = vpop.xlane.xlu0 %4110 }
 0x97d   :  { %v4158_v54 = vmul.f32 1.442695, %v4130_v5  ;;  %v4131_v44 = vsub.f32 %v7368_v33, %v4111_v11 }
 0x97e   :  { %v4552_v24 = vpop.permute.xlu1 %4551 }
 0x97f   :  { %5895 = vpow2.f32 %v4158_v54  ;;  %v4160_v16 = vmul.f32 1.442695, %v4131_v44  ;;  %5570 = vmatpush3.bf16.msra.mxu1 %v4552_v24 }
 0x980   :  { %v4505_v37 = vpop.permute.xlu0 %4504 }
 0x981   :  { %5897 = vpow2.f32 %v4160_v16  ;;  %5564 = vmatpush3.bf16.msra.mxu0 %v4505_v37 }
 0x982   :  { %5572 = vmatmul.mubr.msk.bf16.vlgmr.msra.gmra.mrb[164].mxu1 %vm672_vm3, %v4221_v47  ;;  %5648 = vmatprep.subr.msk.bf16.mxu0 %vm2269_vm4, %v4933_v12 }
 0x989   :  { %v5896_v38 = vpop.eup %5895 }
 0x98a   :  { %v4202_v33 = vsel %vm672_vm3, %v5896_v38, 0.0 }
 0x98b   :  { %v5898_v4 = vpop.eup %5897  ;;  %4203 = vadd.xlane.f32.xlu1 %v4202_v33 }
 0x98c   :  { %v4205_v45 = vsel %vm672_vm3, %v5898_v4, 0.0  ;;  %v4220_v49 = vpack.c.bf16 %v5898_v4, %v5896_v38 }
 0x98d   :  { %4206 = vadd.xlane.f32.xlu0 %v4205_v45 }
 0x98e   :  { %5566 = vmatmul.mubr.msk.bf16.vlgmr.msra.gmra.mrb[116].mxu0 %vm672_vm3, %v4220_v49 }
 0x98f   :  { %4209 = vadd.xlane.f32.xlu1 %v4208_v13  ;;  %5576 = vmatpush3.bf16.msra.mxu0 %v4665_v51 }
 0x991   :  { %4212 = vadd.xlane.f32.xlu0 %v4211_v8 }
 0x9af   :  { %v4171_v32 = vpop.xlane.xlu1 %4170 }
 0x9b0   :  { %5899 = vrcp.f32 %v4171_v32 }
 0x9b1   :  { %v4168_v36 = vpop.xlane.xlu0 %4167 }
 0x9b2   :  { %5901 = vrcp.f32 %v4168_v36 }
 0x9b3   :  { %v4180_v19 = vpop.xlane.xlu1 %4179 }
 0x9b5   :  { %v4174_v43 = vpop.xlane.xlu0 %4173 }
 0x9b6   :  { %5903 = vrcp.f32 %v4174_v43 }
 0x9b9   :  { %v4177_v35 = vpop.xlane.xlu0 %4176 }
 0x9ba   :  { %v5900_v0 = vpop.eup %5899  ;;  %5905 = vrcp.f32 %v4177_v35 }
 0x9bb   :  { %5907 = vrcp.f32 %v4180_v19  ;;  %v4615_v59 = vmul.f32 %v5900_v0, %v7404_v39 }
 0x9bc   :  { %v5902_v23 = vpop.eup %5901 }
 0x9bd   :  { %v4183_v25 = vpop.xlane.xlu0 %4182  ;;  %v4614_v14 = vmul.f32 %v5902_v23, %v7402_v2  ;;  %v4186_v2 = vpop.xlane.xlu1 %4185 }
 0x9be   :  { %5909 = vrcp.f32 %v4183_v25 }
 0x9bf   :  { %v4630_v30 = vpack.c.bf16 %v4615_v59, %v4614_v14  ;;  %5911 = vrcp.f32 %v4186_v2 }
 0x9c0   :  { %v5904_v50 = vpop.eup %5903 }
 0x9c1   :  { %5577 = vmatprep.mubr.msk.bf16.mxu0 %vm250_vm2, %v4630_v30  ;;  %v4616_v42 = vmul.f32 %v5904_v50, %v7413_v29  ;;  %v4189_v9 = vpop.xlane.xlu0 %4188 }
 0x9c2   :  { %5913 = vrcp.f32 %v4189_v9 }
 0x9c4   :  { %v5906_v48 = vpop.eup %5905 }
 0x9c5   :  { %v4617_v3 = vmul.f32 %v5906_v48, %v7415_v41  ;;  %v5908_v56 = vpop.eup %5907  ;;  %v4942_v48 = vld [vmem:[%s7521_s4] ss:$0 sm:$0xff] }
 0x9c6   :  { %v4618_v17 = vmul.f32 %v5908_v56, %v7417_v63 }
 0x9c7   :  { %v4631_v60 = vpack.c.bf16 %v4617_v3, %v4616_v42 }
 0x9c8   :  { %v5910_v1 = vpop.eup %5909 }
 0x9c9   :  { %5578 = vmatmul.mubr.msk.bf16.vlgmr.msra.gmra.mrb[64].mxu0 %vm250_vm2, %v4631_v60  ;;  %v4619_v46 = vmul.f32 %v5910_v1, %v7419_v21  ;;  %v5912_v39 = vpop.eup %5911 }
 0x9cb   :  { %v4632_v18 = vpack.c.bf16 %v4619_v46, %v4618_v17 }
 0x9cc   :  { %v5914_v34 = vpop.eup %5913 }
 0x9cd   :  { %5581 = vmatprep.mubr.msk.bf16.mxu0 %vm250_vm2, %v4632_v18 }
 0x9dd   :  { %v4403_v22 = vpop.f32.mrb[156].mxu1 }
 0x9de   :  { %v5549_v10 = vpop.f32.mrb[157].mxu1  ;;  %v4620_v61 = vmul.f32 %v5912_v39, %v4403_v22 }
 0x9df   :  { %v4406_v27 = vpop.f32.mrb[158].mxu1 }
 0x9e0   :  { %v4621_v62 = vmul.f32 %v5914_v34, %v4406_v27  ;;  %v5550_v7 = vpop.f32.mrb[159].mxu1 }
 0x9e2   :  { %v4633_v53 = vpack.c.bf16 %v4621_v62, %v4620_v61 }
 0x9e3   :  { %v4192_v29 = vpop.xlane.xlu1 %4191 }
 0x9e4   :  { %5582 = vmatmul.mubr.msk.bf16.gmra.mrb[68].mxu0 %vm250_vm2, %v4633_v53 }
 0x9e5   :  { %v4195_v6 = vpop.xlane.xlu0 %4194 }
 0x9e7   :  { %v4198_v41 = vpop.xlane.xlu1 %4197 }
 0x9e8   :  { %5915 = vrcp.f32 %v4198_v41 }
 0x9e9   :  { %v4201_v26 = vpop.xlane.xlu0 %4200 }
 0x9ea   :  { %5917 = vrcp.f32 %v4201_v26 }
 0x9eb   :  { %5919 = vrcp.f32 %v4192_v29 }
 0x9ec   :  { %5921 = vrcp.f32 %v4195_v6 }
 0x9f2   :  { %v5916_v20 = vpop.eup %5915 }
 0x9f4   :  { %v5918_v57 = vpop.eup %5917 }
 0x9f5   :  { %v5920_v11 = vpop.eup %5919 }
 0x9f6   :  { %v5922_v54 = vpop.eup %5921 }
 0xa18   :  { %v4204_v37 = vpop.xlane.xlu1 %4203 }
 0xa1a   :  { %v4207_v47 = vpop.xlane.xlu0 %4206 }
 0xa1c   :  { %v4210_v38 = vpop.xlane.xlu1 %4209 }
 0xa1d   :  { %5923 = vrcp.f32 %v4210_v38 }
 0xa1e   :  { %v4213_v33 = vpop.xlane.xlu0 %4212 }
 0xa1f   :  { %5925 = vrcp.f32 %v4213_v33 }
 0xa20   :  { %v4497_v63 = vpop.f32.mrb[160].mxu1  ;;  %5927 = vrcp.f32 %v4204_v37 }
 0xa21   :  { %v5561_v21 = vpop.f32.mrb[161].mxu1  ;;  %v4624_v28 = vmul.f32 %v5916_v20, %v4497_v63  ;;  %5929 = vrcp.f32 %v4207_v47 }
 0xa22   :  { %v4500_v52 = vpop.f32.mrb[162].mxu1 }
 0xa23   :  { %v4625_v40 = vmul.f32 %v5918_v57, %v4500_v52  ;;  %v5562_v15 = vpop.f32.mrb[163].mxu1 }
 0xa25   :  { %v4635_v55 = vpack.c.bf16 %v4625_v40, %v4624_v28 }
 0xa27   :  { %v5924_v45 = vpop.eup %5923 }
 0xa29   :  { %v5926_v51 = vpop.eup %5925 }
 0xa2a   :  { %v5928_v35 = vpop.eup %5927 }
 0xa2b   :  { %v5930_v23 = vpop.eup %5929 }
 0xa2c   :  { %v4450_v5 = vpop.f32.mrb[112].mxu0 }
 0xa2d   :  { %v5555_v31 = vpop.f32.mrb[113].mxu0  ;;  %v4622_v24 = vmul.f32 %v5920_v11, %v4450_v5 }
 0xa2e   :  { %v4453_v44 = vpop.f32.mrb[114].mxu0 }
 0xa2f   :  { %v4623_v58 = vmul.f32 %v5922_v54, %v4453_v44  ;;  %v5556_v16 = vpop.f32.mrb[115].mxu0 }
 0xa31   :  { %v4634_v12 = vpack.c.bf16 %v4623_v58, %v4622_v24 }
 0xa33   :  { %5585 = vmatprep.mubr.msk.bf16.mxu0 %vm250_vm2, %v4634_v12 }
 0xa34   :  { %5586 = vmatmul.mubr.msk.bf16.gmra.mrb[72].mxu0 %vm250_vm2, %v4635_v55 }
 0xa55   :  { %v4591_v4 = vpop.f32.mrb[164].mxu1 }
 0xa56   :  { %v5573_v49 = vpop.f32.mrb[165].mxu1  ;;  %v4628_v8 = vmul.f32 %v5924_v45, %v4591_v4 }
 0xa57   :  { %v4594_v13 = vpop.f32.mrb[166].mxu1 }
 0xa58   :  { %v4629_v32 = vmul.f32 %v5926_v51, %v4594_v13  ;;  %v5574_v36 = vpop.f32.mrb[167].mxu1 }
 0xa5a   :  { %v4637_v43 = vpack.c.bf16 %v4629_v32, %v4628_v8 }
 0xa61   :  { %v4544_v19 = vpop.f32.mrb[116].mxu0 }
 0xa62   :  { %v5567_v0 = vpop.f32.mrb[117].mxu0  ;;  %v4626_v14 = vmul.f32 %v5928_v35, %v4544_v19 }
 0xa63   :  { %v4547_v25 = vpop.f32.mrb[118].mxu0 }
 0xa64   :  { %v4627_v59 = vmul.f32 %v5930_v23, %v4547_v25  ;;  %v5568_v30 = vpop.f32.mrb[119].mxu0 }
 0xa66   :  { %v4636_v50 = vpack.c.bf16 %v4627_v59, %v4626_v14 }
 0xa68   :  { %5589 = vmatprep.mubr.msk.bf16.mxu0 %vm250_vm2, %v4636_v50 }
 0xa69   :  { %5590 = vmatmul.mubr.msk.bf16.gmra.mrb[76].mxu0 %vm250_vm2, %v4637_v43 }
 0xa9c   :  { %v5579_v42 = vpop.f32.mrb[64].mxu0 }
 0xa9d   :  { %v4789_v3 = vadd.f32 %v5579_v42, %v4942_v48  ;;  %v4701_v56 = vpop.f32.mrb[65].mxu0 }
 0xa9e   :  { %v4787_v60 = vadd.f32 %v4942_v48, %v4701_v56  ;;  %v5580_v1 = vpop.f32.mrb[66].mxu0 }
 0xa9f   :  { %4805 = vst.msk [vmem:[%s7523_s6 + $0x10] sm:$0xff] %vm117_vm0, %v4789_v3  ;;  %v4790_v17 = vadd.f32 %v5580_v1, %v4942_v48  ;;  %v4704_v46 = vpop.f32.mrb[67].mxu0 }
 0xaa0   :  { %4803 = vst.msk [vmem:[%s7523_s6] sm:$0xff] %vm117_vm0, %v4787_v60  ;;  %v4788_v18 = vadd.f32 %v4942_v48, %v4704_v46 }
 0xaa1   :  { %4806 = vst.msk [vmem:[%s7523_s6 + $0x18] sm:$0xff] %vm117_vm0, %v4790_v17 }
 0xaa2   :  { %4804 = vst.msk [vmem:[%s7523_s6 + $0x8] sm:$0xff] %vm117_vm0, %v4788_v18 }
 0xab7   :  { %v5583_v2 = vpop.f32.mrb[68].mxu0 }
 0xab8   :  { %v4793_v9 = vadd.f32 %v5583_v2, %v4942_v48  ;;  %v4717_v22 = vpop.f32.mrb[69].mxu0 }
 0xab9   :  { %v4791_v39 = vadd.f32 %v4942_v48, %v4717_v22  ;;  %v5584_v10 = vpop.f32.mrb[70].mxu0 }
 0xaba   :  { %4809 = vst.msk [vmem:[%s7523_s6 + $0x30] sm:$0xff] %vm117_vm0, %v4793_v9  ;;  %v4794_v34 = vadd.f32 %v5584_v10, %v4942_v48  ;;  %v4720_v27 = vpop.f32.mrb[71].mxu0 }
 0xabb   :  { %4807 = vst.msk [vmem:[%s7523_s6 + $0x20] sm:$0xff] %vm117_vm0, %v4791_v39  ;;  %v4792_v61 = vadd.f32 %v4942_v48, %v4720_v27 }
 0xabc   :  { %4810 = vst.msk [vmem:[%s7523_s6 + $0x38] sm:$0xff] %vm117_vm0, %v4794_v34 }
 0xabd   :  { %4808 = vst.msk [vmem:[%s7523_s6 + $0x28] sm:$0xff] %vm117_vm0, %v4792_v61 }
 0xb07   :  { %v5587_v62 = vpop.f32.mrb[72].mxu0 }
 0xb08   :  { %v4797_v7 = vadd.f32 %v5587_v62, %v4942_v48  ;;  %v4733_v53 = vpop.f32.mrb[73].mxu0 }
 0xb09   :  { %v4795_v29 = vadd.f32 %v4942_v48, %v4733_v53  ;;  %v5588_v6 = vpop.f32.mrb[74].mxu0 }
 0xb0a   :  { %4813 = vst.msk [vmem:[%s7523_s6 + $0x50] sm:$0xff] %vm117_vm0, %v4797_v7  ;;  %v4798_v41 = vadd.f32 %v5588_v6, %v4942_v48  ;;  %v4736_v26 = vpop.f32.mrb[75].mxu0 }
 0xb0b   :  { %4811 = vst.msk [vmem:[%s7523_s6 + $0x40] sm:$0xff] %vm117_vm0, %v4795_v29  ;;  %v4796_v63 = vadd.f32 %v4942_v48, %v4736_v26 }
 0xb0c   :  { %4814 = vst.msk [vmem:[%s7523_s6 + $0x58] sm:$0xff] %vm117_vm0, %v4798_v41 }
 0xb0d   :  { %4812 = vst.msk [vmem:[%s7523_s6 + $0x48] sm:$0xff] %vm117_vm0, %v4796_v63 }
 0xb3c   :  { %v5591_v20 = vpop.f32.mrb[76].mxu0 }
 0xb3d   :  { %v4801_v21 = vadd.f32 %v5591_v20, %v4942_v48  ;;  %v4749_v57 = vpop.f32.mrb[77].mxu0 }
 0xb3e   :  { %v4799_v52 = vadd.f32 %v4942_v48, %v4749_v57  ;;  %v5592_v28 = vpop.f32.mrb[78].mxu0 }
 0xb3f   :  { %4817 = vst.msk [vmem:[%s7523_s6 + $0x70] sm:$0xff] %vm117_vm0, %v4801_v21  ;;  %v4802_v40 = vadd.f32 %v5592_v28, %v4942_v48  ;;  %v4752_v15 = vpop.f32.mrb[79].mxu0 }
 0xb40   :  { %4815 = vst.msk [vmem:[%s7523_s6 + $0x60] sm:$0xff] %vm117_vm0, %v4799_v52  ;;  %v4800_v55 = vadd.f32 %v4942_v48, %v4752_v15 }
 0xb41   :  { %4818 = vst.msk [vmem:[%s7523_s6 + $0x78] sm:$0xff] %vm117_vm0, %v4802_v40 }
 0xb42   :  { %4816 = vst.msk [vmem:[%s7523_s6 + $0x68] sm:$0xff] %vm117_vm0, %v4800_v55 }
 0xb43   :  { %4823 = vsyncpa [#allocation3], 1 }

</bundles_post_ra>
